<compile_context>
chip_gen: v7x
topology: tpu7x:2x2x1
jax: 0.10.0
libtpu: 0.0.40
codegen_flags: <defaults>
</compile_context>

<pallas_src>
import functools

import jax
import jax.numpy as jnp
from jax import lax
from jax.experimental import pallas as pl
from jax.experimental.pallas import tpu as pltpu

_F32 = jnp.float32


def _wiener_kernel(y_ref, tap_ref, wf_ref, bf_ref, reg_ref, x_ref, *,
                   H, W, nW, n_pack, Hk, Wk, maxiter, tol, restart):
    ph, pw = Hk // 2, Wk // 2

    y = y_ref[0, 0, :, :].astype(_F32)          # (H, nW) packed image plane
    reg_scale = reg_ref[0]                      # exp(reg_weight)

    # ---- static-shift roll helper (pltpu.roll requires shift >= 0) ---------
    def _roll(x, shift, axis):
        if shift == 0:
            return x
        s = shift % x.shape[axis]               # Python ints -> s in [0, n)
        if s == 0:
            return x
        return pltpu.roll(x, s, axis)

    # ---- structural masks: full (H, nW) planes, built ONCE per image pack --
    # Column masks use the segment-local column index so lane rolls never mix
    # data between packed images; pre-materializing full planes removes all
    # broadcast_in_dim from the CG hot loop.
    ri = lax.broadcasted_iota(jnp.int32, (H, nW), 0)
    ci = lax.broadcasted_iota(jnp.int32, (H, nW), 1)

    def col_range_mask(lo, hi):                 # 1.0 where lo <= local_col < hi
        acc = jnp.zeros((H, nW), _F32)
        for p in range(n_pack):
            acc = acc + ((ci >= p * W + lo) & (ci < p * W + hi)).astype(_F32)
        return acc

    def col_eq_mask(n):                         # 1.0 where local_col == n
        acc = jnp.zeros((H, nW), _F32)
        for p in range(n_pack):
            acc = acc + (ci == p * W + n).astype(_F32)
        return acc

    smax, tmax = max(ph, 1), max(pw, 1)
    row_in = {s: ((ri + s >= 0) & (ri + s < H)).astype(_F32)
              for s in range(-smax, smax + 1) if s != 0}
    col_in = {t: col_range_mask(max(0, -t), W - max(0, t))
              for t in range(-tmax, tmax + 1) if t != 0}
    row_sel = {m: (ri == m).astype(_F32)
               for m in list(range(ph)) + list(range(H - ph, H))}
    col_sel = {n: col_eq_mask(n)
               for n in list(range(pw)) + list(range(W - pw, W))}

    def shift_zero(q, dy, dx):
        """out[m, n] = q[m + dy, n + dx], zero outside each image segment."""
        out = q
        if dy:
            out = _roll(out, -dy, 0) * row_in[dy]
        if dx:
            out = _roll(out, -dx, 1) * col_in[dx]
        return out

    # Reflect-shift along rows: out[m, :] = v[reflH(m + s), :] with
    # reflH(t) = -t-1 (t < 0), 2H-1-t (t >= H), t otherwise ('symmetric' pad).
    def reflect_rows(v, s):
        if s == 0:
            return v
        out = row_in[s] * _roll(v, -s, 0)
        rng = range(-s) if s < 0 else range(H - s, H)
        for m in rng:
            src = (-m - s - 1) if s < 0 else (2 * H - 1 - m - s)
            out = out + row_sel[m] * _roll(v, m - src, 0)
        return out

    def reflect_rows_t(g, s):                   # exact adjoint of reflect_rows
        if s == 0:
            return g
        out = _roll(row_in[s] * g, s, 0)
        rng = range(-s) if s < 0 else range(H - s, H)
        for m in rng:
            src = (-m - s - 1) if s < 0 else (2 * H - 1 - m - s)
            out = out + _roll(row_sel[m] * g, src - m, 0)
        return out

    # Column reflections are per packed-image segment (local column index).
    def reflect_cols(v, t):
        if t == 0:
            return v
        out = col_in[t] * _roll(v, -t, 1)
        rng = range(-t) if t < 0 else range(W - t, W)
        for n in rng:
            src = (-n - t - 1) if t < 0 else (2 * W - 1 - n - t)
            out = out + col_sel[n] * _roll(v, n - src, 1)
        return out

    def reflect_cols_t(g, t):                   # exact adjoint of reflect_cols
        if t == 0:
            return g
        out = _roll(col_in[t] * g, t, 1)
        rng = range(-t) if t < 0 else range(W - t, W)
        for n in rng:
            src = (-n - t - 1) if t < 0 else (2 * W - 1 - n - t)
            out = out + _roll(col_sel[n] * g, src - n, 1)
        return out

    # ---- surrogate UNet: 3x3 conv (1 -> 9) + per-pixel L1 normalization ----
    # TODO(synk): the real UNet(n_channels=1, n_classes=9) body is not in the
    # provided source; a deterministic 3x3 conv stands in for it.
    offsets9 = [(i - 1, j - 1) for i in range(3) for j in range(3)]
    y_sh = [shift_zero(y, dy, dx) for dy, dx in offsets9]
    filt = []
    abs_sum = jnp.zeros((H, nW), _F32)
    for c in range(9):
        acc = jnp.zeros((H, nW), _F32)
        for t in range(9):
            acc = acc + wf_ref[c * 9 + t] * y_sh[t]
        acc = acc + bf_ref[c]
        filt.append(acc)
        abs_sum = abs_sum + jnp.abs(acc)
    # F.normalize(p=1) per pixel; approx reciprocal runs on the EUP slot.
    inv_den = pl.reciprocal(jnp.maximum(abs_sum, 1e-12), approx=True)
    # Fold the zero-shift edge masks into the filters once, so per-CG-step
    # L / L^T applications are pure roll + multiply-add (exactly equivalent).
    filt_m = []
    for c, (dy, dx) in enumerate(offsets9):
        fm = filt[c] * inv_den
        if dy:
            fm = fm * row_in[dy]
        if dx:
            fm = fm * col_in[dx]
        filt_m.append(fm)

    # ---- per-segment PSF tap planes, broadcast ONCE (hoisted out of CG) -----
    # NOTE: for PSFs much larger than 5x5 these Hk*Wk resident planes should
    # be re-generated on the fly to bound the live set (review item #8).
    taps2d = tap_ref[0].astype(_F32)            # (Hk*Wk, nW)
    tap_planes = [jnp.broadcast_to(taps2d[t:t + 1, :], (H, nW))
                  for t in range(Hk * Wk)]

    # ---- blur operator K (symmetric pad + 2D conv) and its exact adjoint ----
    # K v[m,n] = sum_{i,j} k[i,j] * v[reflH(m + ph - i), reflW(n + pw - j)]
    def K_fwd(v):
        vcols = [reflect_cols(v, pw - j) for j in range(Wk)]
        out = jnp.zeros((H, nW), _F32)
        for i in range(Hk):
            acc = jnp.zeros((H, nW), _F32)
            for j in range(Wk):
                acc = acc + tap_planes[i * Wk + j] * vcols[j]
            out = out + reflect_rows(acc, ph - i)
        return out

    def K_adj(r):
        rrows = [reflect_rows_t(r, ph - i) for i in range(Hk)]
        out = jnp.zeros((H, nW), _F32)
        for j in range(Wk):
            acc = jnp.zeros((H, nW), _F32)
            for i in range(Hk):
                acc = acc + tap_planes[i * Wk + j] * rrows[i]
            out = out + reflect_cols_t(acc, pw - j)
        return out

    # ---- per-pixel 3x3 kernel operator L (spatial_conv) and its adjoint -----
    # Factored shifts: 2 row rolls + 6 col rolls per apply (was 12).
    def L_fwd(v):
        v_rows = {dy: _roll(v, -dy, 0) for dy in (-1, 0, 1)}
        out = jnp.zeros((H, nW), _F32)
        for c, (dy, dx) in enumerate(offsets9):
            out = out + filt_m[c] * _roll(v_rows[dy], -dx, 1)
        return out

    def L_adj(r):
        out = jnp.zeros((H, nW), _F32)
        for dy in (-1, 0, 1):
            acc = jnp.zeros((H, nW), _F32)
            for dx in (-1, 0, 1):
                c = (dy + 1) * 3 + (dx + 1)
                acc = acc + _roll(filt_m[c] * r, dx, 1)
            out = out + _roll(acc, dy, 0)
        return out

    def A_apply(v):                 # grad_func(v) == (K^T K + exp(w) L^T L) v
        return K_adj(K_fwd(v)) + reg_scale * L_adj(L_fwd(v))

    # ---- conjugate gradient: A x = K^T y, early-exit while_loop -------------
    # TODO(synk): utils.ConjugateGradient_Function internals are unknown; a
    # restarted CG with relative residual tolerance ||r|| <= tol*||b|| is used
    # (combined over the packed image group).
    b = K_adj(y)
    bs = jnp.sum(b * b)
    thresh = jnp.float32(tol) * jnp.float32(tol) * bs

    def cg_cond(carry):
        it, _, _, _, rs = carry
        return jnp.logical_and(it < maxiter, rs > thresh)

    def cg_body(carry):
        it, x, r, p, rs = carry
        Ap = A_apply(p)
        pAp = jnp.sum(p * Ap)
        ok = pAp > jnp.float32(1e-30)            # guard near-singular rounding
        alpha = jnp.where(ok, rs / jnp.where(ok, pAp, 1.0), 0.0)
        x = x + alpha * p
        r = r - alpha * Ap
        rs_new = jnp.where(ok, jnp.sum(r * r), 0.0)   # 0 forces exit if degenerate
        beta = rs_new / jnp.where(rs > 0.0, rs, 1.0)
        p = jnp.where((it + 1) % restart == 0, r, r + beta * p)
        return it + 1, x, r, p, rs_new

    init = (jnp.int32(0), jnp.zeros((H, nW), _F32), b, b, bs)
    _, x_fin, _, _, _ = lax.while_loop(cg_cond, cg_body, init)
    x_ref[0, 0, :, :] = x_fin.astype(x_ref.dtype)


def wiener_filter_unet(y, k, conv_w, conv_b, reg_weight, *,
                       maxiter=300, tol=1e-6, restart=50):
    """JAX/Pallas forward of the UNet-regularized Wiener deconvolution."""
    B, C, H, W = y.shape
    if C != 1:
        raise ValueError("UNet(n_channels=1, n_classes=9) implies C == 1")
    _, _, Hk, Wk = k.shape
    if Hk % 2 != 1 or Wk % 2 != 1:
        raise ValueError("PSF must have odd spatial size")
    if H < Hk or W < Wk:
        raise ValueError("image must be at least as large as the PSF")

    # ---- lane packing: pack floor(128/W) images along the lane (W) axis ----
    n_pack = 1 if W >= 128 else max(1, min(B, 128 // W))
    G = -(-B // n_pack)                       # ceil(B / n_pack) grid steps
    B_pad = G * n_pack
    nW = n_pack * W

    y_f = y.astype(jnp.float32)
    k_f = k.reshape(B, Hk * Wk).astype(jnp.float32)
    if B_pad != B:                            # pad pack with zero images/PSFs
        y_f = jnp.pad(y_f, ((0, B_pad - B), (0, 0), (0, 0), (0, 0)))
        k_f = jnp.pad(k_f, ((0, B_pad - B), (0, 0)))

    # packed[g, 0, h, p*W + w] = y[g*n_pack + p, 0, h, w]
    y_packed = (y_f.reshape(G, n_pack, 1, H, W)
                .transpose(0, 2, 3, 1, 4)
                .reshape(G, 1, H, nW))
    # tap_rows[g, t, p*W + w] = k[g*n_pack + p, t]  (per-segment PSF taps)
    tap_rows = jnp.repeat(k_f.reshape(G, n_pack, Hk * Wk).transpose(0, 2, 1),
                          W, axis=2)

    wf_flat = conv_w.reshape(-1).astype(jnp.float32)          # (9*1*3*3,)
    bf = conv_b.astype(jnp.float32)                           # (9,)
    reg_scale = jnp.exp(reg_weight.astype(jnp.float32)).reshape(1)

    kernel = functools.partial(_wiener_kernel, H=H, W=W, nW=nW, n_pack=n_pack,
                               Hk=Hk, Wk=Wk, maxiter=maxiter, tol=tol,
                               restart=restart)

    # ---- generation-aware VMEM budget --------------------------------------
    lane_w = ((nW + 127) // 128) * 128
    plane_bytes = H * lane_w * 4
    ph, pw = Hk // 2, Wk // 2
    resident = (Hk * Wk                                  # PSF tap planes
                + 9                                      # filt_m planes
                + 2 * (max(ph, 1) + max(pw, 1))          # row_in / col_in
                + 2 * (ph + pw)                          # row_sel / col_sel
                + (Hk + Wk + 4)                          # reflect temporaries
                + 8)                                     # CG state + misc
    working = (resident + 4) * plane_bytes               # +4: 2x-buffered y/x
    try:
        cap = int(getattr(pltpu.get_tpu_info(), "vmem_capacity_bytes",
                          64 * 2 ** 20))
    except Exception:  # e.g. interpret mode / no TPU visible at trace time
        cap = 64 * 2 ** 20
    vmem_hint = int(min(max(int(1.3 * working), 32 * 2 ** 20),
                        int(0.85 * cap)))

    smem = pltpu.MemorySpace.SMEM
    out = pl.pallas_call(
        kernel,
        out_shape=jax.ShapeDtypeStruct((G, 1, H, nW), jnp.float32),
        grid=(G,),
        in_specs=[
            pl.BlockSpec((1, 1, H, nW), lambda g: (g, 0, 0, 0)),
            pl.BlockSpec((1, Hk * Wk, nW), lambda g: (g, 0, 0)),
            pl.BlockSpec((wf_flat.shape[0],), lambda g: (0,), memory_space=smem),
            pl.BlockSpec((9,), lambda g: (0,), memory_space=smem),
            pl.BlockSpec((1,), lambda g: (0,), memory_space=smem),
        ],
        out_specs=pl.BlockSpec((1, 1, H, nW), lambda g: (g, 0, 0, 0)),
        compiler_params=pltpu.CompilerParams(
            dimension_semantics=("parallel",),
            vmem_limit_bytes=vmem_hint),
    )(y_packed, tap_rows, wf_flat, bf, reg_scale)

    # unpack lanes back to the (B, 1, H, W) batch layout
    x = (out.reshape(G, 1, H, n_pack, W)
         .transpose(0, 3, 1, 2, 4)
         .reshape(B_pad, 1, H, W))
    return x[:B]


if __name__ == "__main__":
    key = jax.random.PRNGKey(0)
    k_img, k_psf, k_w, k_b = jax.random.split(key, 4)

    B, C, H, W = 2, 1, 16, 16
    Hk = Wk = 5

    y = jax.random.normal(k_img, (B, C, H, W), jnp.float32)
    psf = jax.random.uniform(k_psf, (B, C, Hk, Wk), jnp.float32) + 0.1
    psf = psf / jnp.sum(psf, axis=(2, 3), keepdims=True)     # blur-like PSF

    # Deterministic surrogate-UNet parameters (see TODO in kernel).
    conv_w = 0.1 * jax.random.normal(k_w, (9, 1, 3, 3), jnp.float32)
    conv_b = 0.01 * jax.random.normal(k_b, (9,), jnp.float32)
    reg_weight = jnp.zeros((1,), jnp.float32)                 # nn.Parameter([0.0])

    x = wiener_filter_unet(y, psf, conv_w, conv_b, reg_weight,
                           maxiter=300, tol=1e-6, restart=50)
    jax.block_until_ready(x)
    assert x.shape == (B, C, H, W)
    assert bool(jnp.all(jnp.isfinite(x)))
    print("KERNEL_OK")
</pallas_src>

<mosaic_0001>
module attributes {stable_mosaic.version = 11 : i64} {
  func.func @_wiener_kernel(%arg0: i32, %arg1: memref<1x1x16x32xf32, #tpu.memory_space<vmem>>, %arg2: memref<1x25x32xf32, #tpu.memory_space<vmem>>, %arg3: memref<81xf32, #tpu.memory_space<smem>>, %arg4: memref<9xf32, #tpu.memory_space<smem>>, %arg5: memref<1xf32, #tpu.memory_space<smem>>, %arg6: memref<1x1x16x32xf32, #tpu.memory_space<vmem>>) attributes {dimension_semantics = [#tpu.dimension_semantics<parallel>], iteration_bounds = array<i64: 1>, scalar_prefetch = 0 : i64, scratch_operands = 0 : i64, tpu.core_type = #tpu.core_type<tc>, window_params = [{transform_indices = @transform_0, window_bounds = array<i64: 1, 1, 16, 32>}, {transform_indices = @transform_1, window_bounds = array<i64: 1, 25, 32>}, {transform_indices = @transform_2, window_bounds = array<i64: 81>}, {transform_indices = @transform_3, window_bounds = array<i64: 9>}, {transform_indices = @transform_4, window_bounds = array<i64: 1>}, {transform_indices = @transform_5, window_bounds = array<i64: 1, 1, 16, 32>}]} {
    %c0 = arith.constant 0 : index
    %c0_0 = arith.constant 0 : index
    %c0_1 = arith.constant 0 : index
    %c0_2 = arith.constant 0 : index
    %0 = vector.load %arg1[%c0, %c0_0, %c0_1, %c0_2] : memref<1x1x16x32xf32, #tpu.memory_space<vmem>>, vector<1x1x16x32xf32>
    %1 = vector.shape_cast %0 : vector<1x1x16x32xf32> to vector<16x32xf32>
    %c0_3 = arith.constant 0 : index
    %2 = memref.load %arg5[%c0_3] : memref<1xf32, #tpu.memory_space<smem>>
    %3 = tpu.iota {dimensions = array<i32: 0>} : vector<16x32xi32>
    %4 = tpu.iota {dimensions = array<i32: 1>} : vector<16x32xi32>
    %c-2_i32 = arith.constant -2 : i32
    %5 = vector.broadcast %c-2_i32 : i32 to vector<16x32xi32>
    %6 = arith.addi %3, %5 : vector<16x32xi32>
    %c0_i32 = arith.constant 0 : i32
    %7 = vector.broadcast %c0_i32 : i32 to vector<16x32xi32>
    %8 = arith.cmpi sge, %6, %7 : vector<16x32xi32>
    %c-2_i32_4 = arith.constant -2 : i32
    %9 = vector.broadcast %c-2_i32_4 : i32 to vector<16x32xi32>
    %10 = arith.addi %3, %9 : vector<16x32xi32>
    %c16_i32 = arith.constant 16 : i32
    %11 = vector.broadcast %c16_i32 : i32 to vector<16x32xi32>
    %12 = arith.cmpi slt, %10, %11 : vector<16x32xi32>
    %13 = arith.andi %8, %12 : vector<16x32xi1>
    %14 = arith.extui %13 : vector<16x32xi1> to vector<16x32xi32>
    %15 = arith.sitofp %14 : vector<16x32xi32> to vector<16x32xf32>
    %c-1_i32 = arith.constant -1 : i32
    %16 = vector.broadcast %c-1_i32 : i32 to vector<16x32xi32>
    %17 = arith.addi %3, %16 : vector<16x32xi32>
    %c0_i32_5 = arith.constant 0 : i32
    %18 = vector.broadcast %c0_i32_5 : i32 to vector<16x32xi32>
    %19 = arith.cmpi sge, %17, %18 : vector<16x32xi32>
    %c-1_i32_6 = arith.constant -1 : i32
    %20 = vector.broadcast %c-1_i32_6 : i32 to vector<16x32xi32>
    %21 = arith.addi %3, %20 : vector<16x32xi32>
    %c16_i32_7 = arith.constant 16 : i32
    %22 = vector.broadcast %c16_i32_7 : i32 to vector<16x32xi32>
    %23 = arith.cmpi slt, %21, %22 : vector<16x32xi32>
    %24 = arith.andi %19, %23 : vector<16x32xi1>
    %25 = arith.extui %24 : vector<16x32xi1> to vector<16x32xi32>
    %26 = arith.sitofp %25 : vector<16x32xi32> to vector<16x32xf32>
    %c1_i32 = arith.constant 1 : i32
    %27 = vector.broadcast %c1_i32 : i32 to vector<16x32xi32>
    %28 = arith.addi %3, %27 : vector<16x32xi32>
    %c0_i32_8 = arith.constant 0 : i32
    %29 = vector.broadcast %c0_i32_8 : i32 to vector<16x32xi32>
    %30 = arith.cmpi sge, %28, %29 : vector<16x32xi32>
    %c1_i32_9 = arith.constant 1 : i32
    %31 = vector.broadcast %c1_i32_9 : i32 to vector<16x32xi32>
    %32 = arith.addi %3, %31 : vector<16x32xi32>
    %c16_i32_10 = arith.constant 16 : i32
    %33 = vector.broadcast %c16_i32_10 : i32 to vector<16x32xi32>
    %34 = arith.cmpi slt, %32, %33 : vector<16x32xi32>
    %35 = arith.andi %30, %34 : vector<16x32xi1>
    %36 = arith.extui %35 : vector<16x32xi1> to vector<16x32xi32>
    %37 = arith.sitofp %36 : vector<16x32xi32> to vector<16x32xf32>
    %c2_i32 = arith.constant 2 : i32
    %38 = vector.broadcast %c2_i32 : i32 to vector<16x32xi32>
    %39 = arith.addi %3, %38 : vector<16x32xi32>
    %c0_i32_11 = arith.constant 0 : i32
    %40 = vector.broadcast %c0_i32_11 : i32 to vector<16x32xi32>
    %41 = arith.cmpi sge, %39, %40 : vector<16x32xi32>
    %c2_i32_12 = arith.constant 2 : i32
    %42 = vector.broadcast %c2_i32_12 : i32 to vector<16x32xi32>
    %43 = arith.addi %3, %42 : vector<16x32xi32>
    %c16_i32_13 = arith.constant 16 : i32
    %44 = vector.broadcast %c16_i32_13 : i32 to vector<16x32xi32>
    %45 = arith.cmpi slt, %43, %44 : vector<16x32xi32>
    %46 = arith.andi %41, %45 : vector<16x32xi1>
    %47 = arith.extui %46 : vector<16x32xi1> to vector<16x32xi32>
    %48 = arith.sitofp %47 : vector<16x32xi32> to vector<16x32xf32>
    %cst = arith.constant 0.000000e+00 : f32
    %49 = vector.broadcast %cst : f32 to vector<16x32xf32>
    %c2_i32_14 = arith.constant 2 : i32
    %50 = vector.broadcast %c2_i32_14 : i32 to vector<16x32xi32>
    %51 = arith.cmpi sge, %4, %50 : vector<16x32xi32>
    %c16_i32_15 = arith.constant 16 : i32
    %52 = vector.broadcast %c16_i32_15 : i32 to vector<16x32xi32>
    %53 = arith.cmpi slt, %4, %52 : vector<16x32xi32>
    %54 = arith.andi %51, %53 : vector<16x32xi1>
    %55 = arith.extui %54 : vector<16x32xi1> to vector<16x32xi32>
    %56 = arith.sitofp %55 : vector<16x32xi32> to vector<16x32xf32>
    %57 = arith.addf %49, %56 : vector<16x32xf32>
    %c18_i32 = arith.constant 18 : i32
    %58 = vector.broadcast %c18_i32 : i32 to vector<16x32xi32>
    %59 = arith.cmpi sge, %4, %58 : vector<16x32xi32>
    %c32_i32 = arith.constant 32 : i32
    %60 = vector.broadcast %c32_i32 : i32 to vector<16x32xi32>
    %61 = arith.cmpi slt, %4, %60 : vector<16x32xi32>
    %62 = arith.andi %59, %61 : vector<16x32xi1>
    %63 = arith.extui %62 : vector<16x32xi1> to vector<16x32xi32>
    %64 = arith.sitofp %63 : vector<16x32xi32> to vector<16x32xf32>
    %65 = arith.addf %57, %64 : vector<16x32xf32>
    %cst_16 = arith.constant 0.000000e+00 : f32
    %66 = vector.broadcast %cst_16 : f32 to vector<16x32xf32>
    %c1_i32_17 = arith.constant 1 : i32
    %67 = vector.broadcast %c1_i32_17 : i32 to vector<16x32xi32>
    %68 = arith.cmpi sge, %4, %67 : vector<16x32xi32>
    %c16_i32_18 = arith.constant 16 : i32
    %69 = vector.broadcast %c16_i32_18 : i32 to vector<16x32xi32>
    %70 = arith.cmpi slt, %4, %69 : vector<16x32xi32>
    %71 = arith.andi %68, %70 : vector<16x32xi1>
    %72 = arith.extui %71 : vector<16x32xi1> to vector<16x32xi32>
    %73 = arith.sitofp %72 : vector<16x32xi32> to vector<16x32xf32>
    %74 = arith.addf %66, %73 : vector<16x32xf32>
    %c17_i32 = arith.constant 17 : i32
    %75 = vector.broadcast %c17_i32 : i32 to vector<16x32xi32>
    %76 = arith.cmpi sge, %4, %75 : vector<16x32xi32>
    %c32_i32_19 = arith.constant 32 : i32
    %77 = vector.broadcast %c32_i32_19 : i32 to vector<16x32xi32>
    %78 = arith.cmpi slt, %4, %77 : vector<16x32xi32>
    %79 = arith.andi %76, %78 : vector<16x32xi1>
    %80 = arith.extui %79 : vector<16x32xi1> to vector<16x32xi32>
    %81 = arith.sitofp %80 : vector<16x32xi32> to vector<16x32xf32>
    %82 = arith.addf %74, %81 : vector<16x32xf32>
    %cst_20 = arith.constant 0.000000e+00 : f32
    %83 = vector.broadcast %cst_20 : f32 to vector<16x32xf32>
    %c0_i32_21 = arith.constant 0 : i32
    %84 = vector.broadcast %c0_i32_21 : i32 to vector<16x32xi32>
    %85 = arith.cmpi sge, %4, %84 : vector<16x32xi32>
    %c15_i32 = arith.constant 15 : i32
    %86 = vector.broadcast %c15_i32 : i32 to vector<16x32xi32>
    %87 = arith.cmpi slt, %4, %86 : vector<16x32xi32>
    %88 = arith.andi %85, %87 : vector<16x32xi1>
    %89 = arith.extui %88 : vector<16x32xi1> to vector<16x32xi32>
    %90 = arith.sitofp %89 : vector<16x32xi32> to vector<16x32xf32>
    %91 = arith.addf %83, %90 : vector<16x32xf32>
    %c16_i32_22 = arith.constant 16 : i32
    %92 = vector.broadcast %c16_i32_22 : i32 to vector<16x32xi32>
    %93 = arith.cmpi sge, %4, %92 : vector<16x32xi32>
    %c31_i32 = arith.constant 31 : i32
    %94 = vector.broadcast %c31_i32 : i32 to vector<16x32xi32>
    %95 = arith.cmpi slt, %4, %94 : vector<16x32xi32>
    %96 = arith.andi %93, %95 : vector<16x32xi1>
    %97 = arith.extui %96 : vector<16x32xi1> to vector<16x32xi32>
    %98 = arith.sitofp %97 : vector<16x32xi32> to vector<16x32xf32>
    %99 = arith.addf %91, %98 : vector<16x32xf32>
    %cst_23 = arith.constant 0.000000e+00 : f32
    %100 = vector.broadcast %cst_23 : f32 to vector<16x32xf32>
    %c0_i32_24 = arith.constant 0 : i32
    %101 = vector.broadcast %c0_i32_24 : i32 to vector<16x32xi32>
    %102 = arith.cmpi sge, %4, %101 : vector<16x32xi32>
    %c14_i32 = arith.constant 14 : i32
    %103 = vector.broadcast %c14_i32 : i32 to vector<16x32xi32>
    %104 = arith.cmpi slt, %4, %103 : vector<16x32xi32>
    %105 = arith.andi %102, %104 : vector<16x32xi1>
    %106 = arith.extui %105 : vector<16x32xi1> to vector<16x32xi32>
    %107 = arith.sitofp %106 : vector<16x32xi32> to vector<16x32xf32>
    %108 = arith.addf %100, %107 : vector<16x32xf32>
    %c16_i32_25 = arith.constant 16 : i32
    %109 = vector.broadcast %c16_i32_25 : i32 to vector<16x32xi32>
    %110 = arith.cmpi sge, %4, %109 : vector<16x32xi32>
    %c30_i32 = arith.constant 30 : i32
    %111 = vector.broadcast %c30_i32 : i32 to vector<16x32xi32>
    %112 = arith.cmpi slt, %4, %111 : vector<16x32xi32>
    %113 = arith.andi %110, %112 : vector<16x32xi1>
    %114 = arith.extui %113 : vector<16x32xi1> to vector<16x32xi32>
    %115 = arith.sitofp %114 : vector<16x32xi32> to vector<16x32xf32>
    %116 = arith.addf %108, %115 : vector<16x32xf32>
    %c0_i32_26 = arith.constant 0 : i32
    %117 = vector.broadcast %c0_i32_26 : i32 to vector<16x32xi32>
    %118 = arith.cmpi eq, %3, %117 : vector<16x32xi32>
    %119 = arith.extui %118 : vector<16x32xi1> to vector<16x32xi32>
    %120 = arith.sitofp %119 : vector<16x32xi32> to vector<16x32xf32>
    %c1_i32_27 = arith.constant 1 : i32
    %121 = vector.broadcast %c1_i32_27 : i32 to vector<16x32xi32>
    %122 = arith.cmpi eq, %3, %121 : vector<16x32xi32>
    %123 = arith.extui %122 : vector<16x32xi1> to vector<16x32xi32>
    %124 = arith.sitofp %123 : vector<16x32xi32> to vector<16x32xf32>
    %c14_i32_28 = arith.constant 14 : i32
    %125 = vector.broadcast %c14_i32_28 : i32 to vector<16x32xi32>
    %126 = arith.cmpi eq, %3, %125 : vector<16x32xi32>
    %127 = arith.extui %126 : vector<16x32xi1> to vector<16x32xi32>
    %128 = arith.sitofp %127 : vector<16x32xi32> to vector<16x32xf32>
    %c15_i32_29 = arith.constant 15 : i32
    %129 = vector.broadcast %c15_i32_29 : i32 to vector<16x32xi32>
    %130 = arith.cmpi eq, %3, %129 : vector<16x32xi32>
    %131 = arith.extui %130 : vector<16x32xi1> to vector<16x32xi32>
    %132 = arith.sitofp %131 : vector<16x32xi32> to vector<16x32xf32>
    %cst_30 = arith.constant 0.000000e+00 : f32
    %133 = vector.broadcast %cst_30 : f32 to vector<16x32xf32>
    %c0_i32_31 = arith.constant 0 : i32
    %134 = vector.broadcast %c0_i32_31 : i32 to vector<16x32xi32>
    %135 = arith.cmpi eq, %4, %134 : vector<16x32xi32>
    %136 = arith.extui %135 : vector<16x32xi1> to vector<16x32xi32>
    %137 = arith.sitofp %136 : vector<16x32xi32> to vector<16x32xf32>
    %138 = arith.addf %133, %137 : vector<16x32xf32>
    %c16_i32_32 = arith.constant 16 : i32
    %139 = vector.broadcast %c16_i32_32 : i32 to vector<16x32xi32>
    %140 = arith.cmpi eq, %4, %139 : vector<16x32xi32>
    %141 = arith.extui %140 : vector<16x32xi1> to vector<16x32xi32>
    %142 = arith.sitofp %141 : vector<16x32xi32> to vector<16x32xf32>
    %143 = arith.addf %138, %142 : vector<16x32xf32>
    %cst_33 = arith.constant 0.000000e+00 : f32
    %144 = vector.broadcast %cst_33 : f32 to vector<16x32xf32>
    %c1_i32_34 = arith.constant 1 : i32
    %145 = vector.broadcast %c1_i32_34 : i32 to vector<16x32xi32>
    %146 = arith.cmpi eq, %4, %145 : vector<16x32xi32>
    %147 = arith.extui %146 : vector<16x32xi1> to vector<16x32xi32>
    %148 = arith.sitofp %147 : vector<16x32xi32> to vector<16x32xf32>
    %149 = arith.addf %144, %148 : vector<16x32xf32>
    %c17_i32_35 = arith.constant 17 : i32
    %150 = vector.broadcast %c17_i32_35 : i32 to vector<16x32xi32>
    %151 = arith.cmpi eq, %4, %150 : vector<16x32xi32>
    %152 = arith.extui %151 : vector<16x32xi1> to vector<16x32xi32>
    %153 = arith.sitofp %152 : vector<16x32xi32> to vector<16x32xf32>
    %154 = arith.addf %149, %153 : vector<16x32xf32>
    %cst_36 = arith.constant 0.000000e+00 : f32
    %155 = vector.broadcast %cst_36 : f32 to vector<16x32xf32>
    %c14_i32_37 = arith.constant 14 : i32
    %156 = vector.broadcast %c14_i32_37 : i32 to vector<16x32xi32>
    %157 = arith.cmpi eq, %4, %156 : vector<16x32xi32>
    %158 = arith.extui %157 : vector<16x32xi1> to vector<16x32xi32>
    %159 = arith.sitofp %158 : vector<16x32xi32> to vector<16x32xf32>
    %160 = arith.addf %155, %159 : vector<16x32xf32>
    %c30_i32_38 = arith.constant 30 : i32
    %161 = vector.broadcast %c30_i32_38 : i32 to vector<16x32xi32>
    %162 = arith.cmpi eq, %4, %161 : vector<16x32xi32>
    %163 = arith.extui %162 : vector<16x32xi1> to vector<16x32xi32>
    %164 = arith.sitofp %163 : vector<16x32xi32> to vector<16x32xf32>
    %165 = arith.addf %160, %164 : vector<16x32xf32>
    %cst_39 = arith.constant 0.000000e+00 : f32
    %166 = vector.broadcast %cst_39 : f32 to vector<16x32xf32>
    %c15_i32_40 = arith.constant 15 : i32
    %167 = vector.broadcast %c15_i32_40 : i32 to vector<16x32xi32>
    %168 = arith.cmpi eq, %4, %167 : vector<16x32xi32>
    %169 = arith.extui %168 : vector<16x32xi1> to vector<16x32xi32>
    %170 = arith.sitofp %169 : vector<16x32xi32> to vector<16x32xf32>
    %171 = arith.addf %166, %170 : vector<16x32xf32>
    %c31_i32_41 = arith.constant 31 : i32
    %172 = vector.broadcast %c31_i32_41 : i32 to vector<16x32xi32>
    %173 = arith.cmpi eq, %4, %172 : vector<16x32xi32>
    %174 = arith.extui %173 : vector<16x32xi1> to vector<16x32xi32>
    %175 = arith.sitofp %174 : vector<16x32xi32> to vector<16x32xf32>
    %176 = arith.addf %171, %175 : vector<16x32xf32>
    %c1_i32_42 = arith.constant 1 : i32
    %177 = tpu.dynamic_rotate %1 by %c1_i32_42 dim 0 : vector<16x32xf32>, i32 -> vector<16x32xf32>
    %178 = arith.mulf %177, %26 : vector<16x32xf32>
    %c1_i32_43 = arith.constant 1 : i32
    %179 = tpu.dynamic_rotate %178 by %c1_i32_43 dim 1 : vector<16x32xf32>, i32 -> vector<16x32xf32>
    %180 = arith.mulf %179, %82 : vector<16x32xf32>
    %c1_i32_44 = arith.constant 1 : i32
    %181 = tpu.dynamic_rotate %1 by %c1_i32_44 dim 0 : vector<16x32xf32>, i32 -> vector<16x32xf32>
    %182 = arith.mulf %181, %26 : vector<16x32xf32>
    %c1_i32_45 = arith.constant 1 : i32
    %183 = tpu.dynamic_rotate %1 by %c1_i32_45 dim 0 : vector<16x32xf32>, i32 -> vector<16x32xf32>
    %184 = arith.mulf %183, %26 : vector<16x32xf32>
    %c31_i32_46 = arith.constant 31 : i32
    %185 = tpu.dynamic_rotate %184 by %c31_i32_46 dim 1 : vector<16x32xf32>, i32 -> vector<16x32xf32>
    %186 = arith.mulf %185, %99 : vector<16x32xf32>
    %c1_i32_47 = arith.constant 1 : i32
    %187 = tpu.dynamic_rotate %1 by %c1_i32_47 dim 1 : vector<16x32xf32>, i32 -> vector<16x32xf32>
    %188 = arith.mulf %187, %82 : vector<16x32xf32>
    %c31_i32_48 = arith.constant 31 : i32
    %189 = tpu.dynamic_rotate %1 by %c31_i32_48 dim 1 : vector<16x32xf32>, i32 -> vector<16x32xf32>
    %190 = arith.mulf %189, %99 : vector<16x32xf32>
    %c15_i32_49 = arith.constant 15 : i32
    %191 = tpu.dynamic_rotate %1 by %c15_i32_49 dim 0 : vector<16x32xf32>, i32 -> vector<16x32xf32>
    %192 = arith.mulf %191, %37 : vector<16x32xf32>
    %c1_i32_50 = arith.constant 1 : i32
    %193 = tpu.dynamic_rotate %192 by %c1_i32_50 dim 1 : vector<16x32xf32>, i32 -> vector<16x32xf32>
    %194 = arith.mulf %193, %82 : vector<16x32xf32>
    %c15_i32_51 = arith.constant 15 : i32
    %195 = tpu.dynamic_rotate %1 by %c15_i32_51 dim 0 : vector<16x32xf32>, i32 -> vector<16x32xf32>
    %196 = arith.mulf %195, %37 : vector<16x32xf32>
    %c15_i32_52 = arith.constant 15 : i32
    %197 = tpu.dynamic_rotate %1 by %c15_i32_52 dim 0 : vector<16x32xf32>, i32 -> vector<16x32xf32>
    %198 = arith.mulf %197, %37 : vector<16x32xf32>
    %c31_i32_53 = arith.constant 31 : i32
    %199 = tpu.dynamic_rotate %198 by %c31_i32_53 dim 1 : vector<16x32xf32>, i32 -> vector<16x32xf32>
    %200 = arith.mulf %199, %99 : vector<16x32xf32>
    %cst_54 = arith.constant 0.000000e+00 : f32
    %201 = vector.broadcast %cst_54 : f32 to vector<16x32xf32>
    %cst_55 = arith.constant 0.000000e+00 : f32
    %202 = vector.broadcast %cst_55 : f32 to vector<16x32xf32>
    %c0_56 = arith.constant 0 : index
    %203 = memref.load %arg3[%c0_56] : memref<81xf32, #tpu.memory_space<smem>>
    %204 = vector.broadcast %203 : f32 to vector<16x32xf32>
    %205 = arith.mulf %204, %180 : vector<16x32xf32>
    %206 = arith.addf %202, %205 : vector<16x32xf32>
    %c1 = arith.constant 1 : index
    %207 = memref.load %arg3[%c1] : memref<81xf32, #tpu.memory_space<smem>>
    %208 = vector.broadcast %207 : f32 to vector<16x32xf32>
    %209 = arith.mulf %208, %182 : vector<16x32xf32>
    %210 = arith.addf %206, %209 : vector<16x32xf32>
    %c2 = arith.constant 2 : index
    %211 = memref.load %arg3[%c2] : memref<81xf32, #tpu.memory_space<smem>>
    %212 = vector.broadcast %211 : f32 to vector<16x32xf32>
    %213 = arith.mulf %212, %186 : vector<16x32xf32>
    %214 = arith.addf %210, %213 : vector<16x32xf32>
    %c3 = arith.constant 3 : index
    %215 = memref.load %arg3[%c3] : memref<81xf32, #tpu.memory_space<smem>>
    %216 = vector.broadcast %215 : f32 to vector<16x32xf32>
    %217 = arith.mulf %216, %188 : vector<16x32xf32>
    %218 = arith.addf %214, %217 : vector<16x32xf32>
    %c4 = arith.constant 4 : index
    %219 = memref.load %arg3[%c4] : memref<81xf32, #tpu.memory_space<smem>>
    %220 = vector.broadcast %219 : f32 to vector<16x32xf32>
    %221 = arith.mulf %220, %1 : vector<16x32xf32>
    %222 = arith.addf %218, %221 : vector<16x32xf32>
    %c5 = arith.constant 5 : index
    %223 = memref.load %arg3[%c5] : memref<81xf32, #tpu.memory_space<smem>>
    %224 = vector.broadcast %223 : f32 to vector<16x32xf32>
    %225 = arith.mulf %224, %190 : vector<16x32xf32>
    %226 = arith.addf %222, %225 : vector<16x32xf32>
    %c6 = arith.constant 6 : index
    %227 = memref.load %arg3[%c6] : memref<81xf32, #tpu.memory_space<smem>>
    %228 = vector.broadcast %227 : f32 to vector<16x32xf32>
    %229 = arith.mulf %228, %194 : vector<16x32xf32>
    %230 = arith.addf %226, %229 : vector<16x32xf32>
    %c7 = arith.constant 7 : index
    %231 = memref.load %arg3[%c7] : memref<81xf32, #tpu.memory_space<smem>>
    %232 = vector.broadcast %231 : f32 to vector<16x32xf32>
    %233 = arith.mulf %232, %196 : vector<16x32xf32>
    %234 = arith.addf %230, %233 : vector<16x32xf32>
    %c8 = arith.constant 8 : index
    %235 = memref.load %arg3[%c8] : memref<81xf32, #tpu.memory_space<smem>>
    %236 = vector.broadcast %235 : f32 to vector<16x32xf32>
    %237 = arith.mulf %236, %200 : vector<16x32xf32>
    %238 = arith.addf %234, %237 : vector<16x32xf32>
    %c0_57 = arith.constant 0 : index
    %239 = memref.load %arg4[%c0_57] : memref<9xf32, #tpu.memory_space<smem>>
    %240 = vector.broadcast %239 : f32 to vector<16x32xf32>
    %241 = arith.addf %238, %240 : vector<16x32xf32>
    %242 = math.absf %241 : vector<16x32xf32>
    %243 = arith.addf %201, %242 : vector<16x32xf32>
    %cst_58 = arith.constant 0.000000e+00 : f32
    %244 = vector.broadcast %cst_58 : f32 to vector<16x32xf32>
    %c9 = arith.constant 9 : index
    %245 = memref.load %arg3[%c9] : memref<81xf32, #tpu.memory_space<smem>>
    %246 = vector.broadcast %245 : f32 to vector<16x32xf32>
    %247 = arith.mulf %246, %180 : vector<16x32xf32>
    %248 = arith.addf %244, %247 : vector<16x32xf32>
    %c10 = arith.constant 10 : index
    %249 = memref.load %arg3[%c10] : memref<81xf32, #tpu.memory_space<smem>>
    %250 = vector.broadcast %249 : f32 to vector<16x32xf32>
    %251 = arith.mulf %250, %182 : vector<16x32xf32>
    %252 = arith.addf %248, %251 : vector<16x32xf32>
    %c11 = arith.constant 11 : index
    %253 = memref.load %arg3[%c11] : memref<81xf32, #tpu.memory_space<smem>>
    %254 = vector.broadcast %253 : f32 to vector<16x32xf32>
    %255 = arith.mulf %254, %186 : vector<16x32xf32>
    %256 = arith.addf %252, %255 : vector<16x32xf32>
    %c12 = arith.constant 12 : index
    %257 = memref.load %arg3[%c12] : memref<81xf32, #tpu.memory_space<smem>>
    %258 = vector.broadcast %257 : f32 to vector<16x32xf32>
    %259 = arith.mulf %258, %188 : vector<16x32xf32>
    %260 = arith.addf %256, %259 : vector<16x32xf32>
    %c13 = arith.constant 13 : index
    %261 = memref.load %arg3[%c13] : memref<81xf32, #tpu.memory_space<smem>>
    %262 = vector.broadcast %261 : f32 to vector<16x32xf32>
    %263 = arith.mulf %262, %1 : vector<16x32xf32>
    %264 = arith.addf %260, %263 : vector<16x32xf32>
    %c14 = arith.constant 14 : index
    %265 = memref.load %arg3[%c14] : memref<81xf32, #tpu.memory_space<smem>>
    %266 = vector.broadcast %265 : f32 to vector<16x32xf32>
    %267 = arith.mulf %266, %190 : vector<16x32xf32>
    %268 = arith.addf %264, %267 : vector<16x32xf32>
    %c15 = arith.constant 15 : index
    %269 = memref.load %arg3[%c15] : memref<81xf32, #tpu.memory_space<smem>>
    %270 = vector.broadcast %269 : f32 to vector<16x32xf32>
    %271 = arith.mulf %270, %194 : vector<16x32xf32>
    %272 = arith.addf %268, %271 : vector<16x32xf32>
    %c16 = arith.constant 16 : index
    %273 = memref.load %arg3[%c16] : memref<81xf32, #tpu.memory_space<smem>>
    %274 = vector.broadcast %273 : f32 to vector<16x32xf32>
    %275 = arith.mulf %274, %196 : vector<16x32xf32>
    %276 = arith.addf %272, %275 : vector<16x32xf32>
    %c17 = arith.constant 17 : index
    %277 = memref.load %arg3[%c17] : memref<81xf32, #tpu.memory_space<smem>>
    %278 = vector.broadcast %277 : f32 to vector<16x32xf32>
    %279 = arith.mulf %278, %200 : vector<16x32xf32>
    %280 = arith.addf %276, %279 : vector<16x32xf32>
    %c1_59 = arith.constant 1 : index
    %281 = memref.load %arg4[%c1_59] : memref<9xf32, #tpu.memory_space<smem>>
    %282 = vector.broadcast %281 : f32 to vector<16x32xf32>
    %283 = arith.addf %280, %282 : vector<16x32xf32>
    %284 = math.absf %283 : vector<16x32xf32>
    %285 = arith.addf %243, %284 : vector<16x32xf32>
    %cst_60 = arith.constant 0.000000e+00 : f32
    %286 = vector.broadcast %cst_60 : f32 to vector<16x32xf32>
    %c18 = arith.constant 18 : index
    %287 = memref.load %arg3[%c18] : memref<81xf32, #tpu.memory_space<smem>>
    %288 = vector.broadcast %287 : f32 to vector<16x32xf32>
    %289 = arith.mulf %288, %180 : vector<16x32xf32>
    %290 = arith.addf %286, %289 : vector<16x32xf32>
    %c19 = arith.constant 19 : index
    %291 = memref.load %arg3[%c19] : memref<81xf32, #tpu.memory_space<smem>>
    %292 = vector.broadcast %291 : f32 to vector<16x32xf32>
    %293 = arith.mulf %292, %182 : vector<16x32xf32>
    %294 = arith.addf %290, %293 : vector<16x32xf32>
    %c20 = arith.constant 20 : index
    %295 = memref.load %arg3[%c20] : memref<81xf32, #tpu.memory_space<smem>>
    %296 = vector.broadcast %295 : f32 to vector<16x32xf32>
    %297 = arith.mulf %296, %186 : vector<16x32xf32>
    %298 = arith.addf %294, %297 : vector<16x32xf32>
    %c21 = arith.constant 21 : index
    %299 = memref.load %arg3[%c21] : memref<81xf32, #tpu.memory_space<smem>>
    %300 = vector.broadcast %299 : f32 to vector<16x32xf32>
    %301 = arith.mulf %300, %188 : vector<16x32xf32>
    %302 = arith.addf %298, %301 : vector<16x32xf32>
    %c22 = arith.constant 22 : index
    %303 = memref.load %arg3[%c22] : memref<81xf32, #tpu.memory_space<smem>>
    %304 = vector.broadcast %303 : f32 to vector<16x32xf32>
    %305 = arith.mulf %304, %1 : vector<16x32xf32>
    %306 = arith.addf %302, %305 : vector<16x32xf32>
    %c23 = arith.constant 23 : index
    %307 = memref.load %arg3[%c23] : memref<81xf32, #tpu.memory_space<smem>>
    %308 = vector.broadcast %307 : f32 to vector<16x32xf32>
    %309 = arith.mulf %308, %190 : vector<16x32xf32>
    %310 = arith.addf %306, %309 : vector<16x32xf32>
    %c24 = arith.constant 24 : index
    %311 = memref.load %arg3[%c24] : memref<81xf32, #tpu.memory_space<smem>>
    %312 = vector.broadcast %311 : f32 to vector<16x32xf32>
    %313 = arith.mulf %312, %194 : vector<16x32xf32>
    %314 = arith.addf %310, %313 : vector<16x32xf32>
    %c25 = arith.constant 25 : index
    %315 = memref.load %arg3[%c25] : memref<81xf32, #tpu.memory_space<smem>>
    %316 = vector.broadcast %315 : f32 to vector<16x32xf32>
    %317 = arith.mulf %316, %196 : vector<16x32xf32>
    %318 = arith.addf %314, %317 : vector<16x32xf32>
    %c26 = arith.constant 26 : index
    %319 = memref.load %arg3[%c26] : memref<81xf32, #tpu.memory_space<smem>>
    %320 = vector.broadcast %319 : f32 to vector<16x32xf32>
    %321 = arith.mulf %320, %200 : vector<16x32xf32>
    %322 = arith.addf %318, %321 : vector<16x32xf32>
    %c2_61 = arith.constant 2 : index
    %323 = memref.load %arg4[%c2_61] : memref<9xf32, #tpu.memory_space<smem>>
    %324 = vector.broadcast %323 : f32 to vector<16x32xf32>
    %325 = arith.addf %322, %324 : vector<16x32xf32>
    %326 = math.absf %325 : vector<16x32xf32>
    %327 = arith.addf %285, %326 : vector<16x32xf32>
    %cst_62 = arith.constant 0.000000e+00 : f32
    %328 = vector.broadcast %cst_62 : f32 to vector<16x32xf32>
    %c27 = arith.constant 27 : index
    %329 = memref.load %arg3[%c27] : memref<81xf32, #tpu.memory_space<smem>>
    %330 = vector.broadcast %329 : f32 to vector<16x32xf32>
    %331 = arith.mulf %330, %180 : vector<16x32xf32>
    %332 = arith.addf %328, %331 : vector<16x32xf32>
    %c28 = arith.constant 28 : index
    %333 = memref.load %arg3[%c28] : memref<81xf32, #tpu.memory_space<smem>>
    %334 = vector.broadcast %333 : f32 to vector<16x32xf32>
    %335 = arith.mulf %334, %182 : vector<16x32xf32>
    %336 = arith.addf %332, %335 : vector<16x32xf32>
    %c29 = arith.constant 29 : index
    %337 = memref.load %arg3[%c29] : memref<81xf32, #tpu.memory_space<smem>>
    %338 = vector.broadcast %337 : f32 to vector<16x32xf32>
    %339 = arith.mulf %338, %186 : vector<16x32xf32>
    %340 = arith.addf %336, %339 : vector<16x32xf32>
    %c30 = arith.constant 30 : index
    %341 = memref.load %arg3[%c30] : memref<81xf32, #tpu.memory_space<smem>>
    %342 = vector.broadcast %341 : f32 to vector<16x32xf32>
    %343 = arith.mulf %342, %188 : vector<16x32xf32>
    %344 = arith.addf %340, %343 : vector<16x32xf32>
    %c31 = arith.constant 31 : index
    %345 = memref.load %arg3[%c31] : memref<81xf32, #tpu.memory_space<smem>>
    %346 = vector.broadcast %345 : f32 to vector<16x32xf32>
    %347 = arith.mulf %346, %1 : vector<16x32xf32>
    %348 = arith.addf %344, %347 : vector<16x32xf32>
    %c32 = arith.constant 32 : index
    %349 = memref.load %arg3[%c32] : memref<81xf32, #tpu.memory_space<smem>>
    %350 = vector.broadcast %349 : f32 to vector<16x32xf32>
    %351 = arith.mulf %350, %190 : vector<16x32xf32>
    %352 = arith.addf %348, %351 : vector<16x32xf32>
    %c33 = arith.constant 33 : index
    %353 = memref.load %arg3[%c33] : memref<81xf32, #tpu.memory_space<smem>>
    %354 = vector.broadcast %353 : f32 to vector<16x32xf32>
    %355 = arith.mulf %354, %194 : vector<16x32xf32>
    %356 = arith.addf %352, %355 : vector<16x32xf32>
    %c34 = arith.constant 34 : index
    %357 = memref.load %arg3[%c34] : memref<81xf32, #tpu.memory_space<smem>>
    %358 = vector.broadcast %357 : f32 to vector<16x32xf32>
    %359 = arith.mulf %358, %196 : vector<16x32xf32>
    %360 = arith.addf %356, %359 : vector<16x32xf32>
    %c35 = arith.constant 35 : index
    %361 = memref.load %arg3[%c35] : memref<81xf32, #tpu.memory_space<smem>>
    %362 = vector.broadcast %361 : f32 to vector<16x32xf32>
    %363 = arith.mulf %362, %200 : vector<16x32xf32>
    %364 = arith.addf %360, %363 : vector<16x32xf32>
    %c3_63 = arith.constant 3 : index
    %365 = memref.load %arg4[%c3_63] : memref<9xf32, #tpu.memory_space<smem>>
    %366 = vector.broadcast %365 : f32 to vector<16x32xf32>
    %367 = arith.addf %364, %366 : vector<16x32xf32>
    %368 = math.absf %367 : vector<16x32xf32>
    %369 = arith.addf %327, %368 : vector<16x32xf32>
    %cst_64 = arith.constant 0.000000e+00 : f32
    %370 = vector.broadcast %cst_64 : f32 to vector<16x32xf32>
    %c36 = arith.constant 36 : index
    %371 = memref.load %arg3[%c36] : memref<81xf32, #tpu.memory_space<smem>>
    %372 = vector.broadcast %371 : f32 to vector<16x32xf32>
    %373 = arith.mulf %372, %180 : vector<16x32xf32>
    %374 = arith.addf %370, %373 : vector<16x32xf32>
    %c37 = arith.constant 37 : index
    %375 = memref.load %arg3[%c37] : memref<81xf32, #tpu.memory_space<smem>>
    %376 = vector.broadcast %375 : f32 to vector<16x32xf32>
    %377 = arith.mulf %376, %182 : vector<16x32xf32>
    %378 = arith.addf %374, %377 : vector<16x32xf32>
    %c38 = arith.constant 38 : index
    %379 = memref.load %arg3[%c38] : memref<81xf32, #tpu.memory_space<smem>>
    %380 = vector.broadcast %379 : f32 to vector<16x32xf32>
    %381 = arith.mulf %380, %186 : vector<16x32xf32>
    %382 = arith.addf %378, %381 : vector<16x32xf32>
    %c39 = arith.constant 39 : index
    %383 = memref.load %arg3[%c39] : memref<81xf32, #tpu.memory_space<smem>>
    %384 = vector.broadcast %383 : f32 to vector<16x32xf32>
    %385 = arith.mulf %384, %188 : vector<16x32xf32>
    %386 = arith.addf %382, %385 : vector<16x32xf32>
    %c40 = arith.constant 40 : index
    %387 = memref.load %arg3[%c40] : memref<81xf32, #tpu.memory_space<smem>>
    %388 = vector.broadcast %387 : f32 to vector<16x32xf32>
    %389 = arith.mulf %388, %1 : vector<16x32xf32>
    %390 = arith.addf %386, %389 : vector<16x32xf32>
    %c41 = arith.constant 41 : index
    %391 = memref.load %arg3[%c41] : memref<81xf32, #tpu.memory_space<smem>>
    %392 = vector.broadcast %391 : f32 to vector<16x32xf32>
    %393 = arith.mulf %392, %190 : vector<16x32xf32>
    %394 = arith.addf %390, %393 : vector<16x32xf32>
    %c42 = arith.constant 42 : index
    %395 = memref.load %arg3[%c42] : memref<81xf32, #tpu.memory_space<smem>>
    %396 = vector.broadcast %395 : f32 to vector<16x32xf32>
    %397 = arith.mulf %396, %194 : vector<16x32xf32>
    %398 = arith.addf %394, %397 : vector<16x32xf32>
    %c43 = arith.constant 43 : index
    %399 = memref.load %arg3[%c43] : memref<81xf32, #tpu.memory_space<smem>>
    %400 = vector.broadcast %399 : f32 to vector<16x32xf32>
    %401 = arith.mulf %400, %196 : vector<16x32xf32>
    %402 = arith.addf %398, %401 : vector<16x32xf32>
    %c44 = arith.constant 44 : index
    %403 = memref.load %arg3[%c44] : memref<81xf32, #tpu.memory_space<smem>>
    %404 = vector.broadcast %403 : f32 to vector<16x32xf32>
    %405 = arith.mulf %404, %200 : vector<16x32xf32>
    %406 = arith.addf %402, %405 : vector<16x32xf32>
    %c4_65 = arith.constant 4 : index
    %407 = memref.load %arg4[%c4_65] : memref<9xf32, #tpu.memory_space<smem>>
    %408 = vector.broadcast %407 : f32 to vector<16x32xf32>
    %409 = arith.addf %406, %408 : vector<16x32xf32>
    %410 = math.absf %409 : vector<16x32xf32>
    %411 = arith.addf %369, %410 : vector<16x32xf32>
    %cst_66 = arith.constant 0.000000e+00 : f32
    %412 = vector.broadcast %cst_66 : f32 to vector<16x32xf32>
    %c45 = arith.constant 45 : index
    %413 = memref.load %arg3[%c45] : memref<81xf32, #tpu.memory_space<smem>>
    %414 = vector.broadcast %413 : f32 to vector<16x32xf32>
    %415 = arith.mulf %414, %180 : vector<16x32xf32>
    %416 = arith.addf %412, %415 : vector<16x32xf32>
    %c46 = arith.constant 46 : index
    %417 = memref.load %arg3[%c46] : memref<81xf32, #tpu.memory_space<smem>>
    %418 = vector.broadcast %417 : f32 to vector<16x32xf32>
    %419 = arith.mulf %418, %182 : vector<16x32xf32>
    %420 = arith.addf %416, %419 : vector<16x32xf32>
    %c47 = arith.constant 47 : index
    %421 = memref.load %arg3[%c47] : memref<81xf32, #tpu.memory_space<smem>>
    %422 = vector.broadcast %421 : f32 to vector<16x32xf32>
    %423 = arith.mulf %422, %186 : vector<16x32xf32>
    %424 = arith.addf %420, %423 : vector<16x32xf32>
    %c48 = arith.constant 48 : index
    %425 = memref.load %arg3[%c48] : memref<81xf32, #tpu.memory_space<smem>>
    %426 = vector.broadcast %425 : f32 to vector<16x32xf32>
    %427 = arith.mulf %426, %188 : vector<16x32xf32>
    %428 = arith.addf %424, %427 : vector<16x32xf32>
    %c49 = arith.constant 49 : index
    %429 = memref.load %arg3[%c49] : memref<81xf32, #tpu.memory_space<smem>>
    %430 = vector.broadcast %429 : f32 to vector<16x32xf32>
    %431 = arith.mulf %430, %1 : vector<16x32xf32>
    %432 = arith.addf %428, %431 : vector<16x32xf32>
    %c50 = arith.constant 50 : index
    %433 = memref.load %arg3[%c50] : memref<81xf32, #tpu.memory_space<smem>>
    %434 = vector.broadcast %433 : f32 to vector<16x32xf32>
    %435 = arith.mulf %434, %190 : vector<16x32xf32>
    %436 = arith.addf %432, %435 : vector<16x32xf32>
    %c51 = arith.constant 51 : index
    %437 = memref.load %arg3[%c51] : memref<81xf32, #tpu.memory_space<smem>>
    %438 = vector.broadcast %437 : f32 to vector<16x32xf32>
    %439 = arith.mulf %438, %194 : vector<16x32xf32>
    %440 = arith.addf %436, %439 : vector<16x32xf32>
    %c52 = arith.constant 52 : index
    %441 = memref.load %arg3[%c52] : memref<81xf32, #tpu.memory_space<smem>>
    %442 = vector.broadcast %441 : f32 to vector<16x32xf32>
    %443 = arith.mulf %442, %196 : vector<16x32xf32>
    %444 = arith.addf %440, %443 : vector<16x32xf32>
    %c53 = arith.constant 53 : index
    %445 = memref.load %arg3[%c53] : memref<81xf32, #tpu.memory_space<smem>>
    %446 = vector.broadcast %445 : f32 to vector<16x32xf32>
    %447 = arith.mulf %446, %200 : vector<16x32xf32>
    %448 = arith.addf %444, %447 : vector<16x32xf32>
    %c5_67 = arith.constant 5 : index
    %449 = memref.load %arg4[%c5_67] : memref<9xf32, #tpu.memory_space<smem>>
    %450 = vector.broadcast %449 : f32 to vector<16x32xf32>
    %451 = arith.addf %448, %450 : vector<16x32xf32>
    %452 = math.absf %451 : vector<16x32xf32>
    %453 = arith.addf %411, %452 : vector<16x32xf32>
    %cst_68 = arith.constant 0.000000e+00 : f32
    %454 = vector.broadcast %cst_68 : f32 to vector<16x32xf32>
    %c54 = arith.constant 54 : index
    %455 = memref.load %arg3[%c54] : memref<81xf32, #tpu.memory_space<smem>>
    %456 = vector.broadcast %455 : f32 to vector<16x32xf32>
    %457 = arith.mulf %456, %180 : vector<16x32xf32>
    %458 = arith.addf %454, %457 : vector<16x32xf32>
    %c55 = arith.constant 55 : index
    %459 = memref.load %arg3[%c55] : memref<81xf32, #tpu.memory_space<smem>>
    %460 = vector.broadcast %459 : f32 to vector<16x32xf32>
    %461 = arith.mulf %460, %182 : vector<16x32xf32>
    %462 = arith.addf %458, %461 : vector<16x32xf32>
    %c56 = arith.constant 56 : index
    %463 = memref.load %arg3[%c56] : memref<81xf32, #tpu.memory_space<smem>>
    %464 = vector.broadcast %463 : f32 to vector<16x32xf32>
    %465 = arith.mulf %464, %186 : vector<16x32xf32>
    %466 = arith.addf %462, %465 : vector<16x32xf32>
    %c57 = arith.constant 57 : index
    %467 = memref.load %arg3[%c57] : memref<81xf32, #tpu.memory_space<smem>>
    %468 = vector.broadcast %467 : f32 to vector<16x32xf32>
    %469 = arith.mulf %468, %188 : vector<16x32xf32>
    %470 = arith.addf %466, %469 : vector<16x32xf32>
    %c58 = arith.constant 58 : index
    %471 = memref.load %arg3[%c58] : memref<81xf32, #tpu.memory_space<smem>>
    %472 = vector.broadcast %471 : f32 to vector<16x32xf32>
    %473 = arith.mulf %472, %1 : vector<16x32xf32>
    %474 = arith.addf %470, %473 : vector<16x32xf32>
    %c59 = arith.constant 59 : index
    %475 = memref.load %arg3[%c59] : memref<81xf32, #tpu.memory_space<smem>>
    %476 = vector.broadcast %475 : f32 to vector<16x32xf32>
    %477 = arith.mulf %476, %190 : vector<16x32xf32>
    %478 = arith.addf %474, %477 : vector<16x32xf32>
    %c60 = arith.constant 60 : index
    %479 = memref.load %arg3[%c60] : memref<81xf32, #tpu.memory_space<smem>>
    %480 = vector.broadcast %479 : f32 to vector<16x32xf32>
    %481 = arith.mulf %480, %194 : vector<16x32xf32>
    %482 = arith.addf %478, %481 : vector<16x32xf32>
    %c61 = arith.constant 61 : index
    %483 = memref.load %arg3[%c61] : memref<81xf32, #tpu.memory_space<smem>>
    %484 = vector.broadcast %483 : f32 to vector<16x32xf32>
    %485 = arith.mulf %484, %196 : vector<16x32xf32>
    %486 = arith.addf %482, %485 : vector<16x32xf32>
    %c62 = arith.constant 62 : index
    %487 = memref.load %arg3[%c62] : memref<81xf32, #tpu.memory_space<smem>>
    %488 = vector.broadcast %487 : f32 to vector<16x32xf32>
    %489 = arith.mulf %488, %200 : vector<16x32xf32>
    %490 = arith.addf %486, %489 : vector<16x32xf32>
    %c6_69 = arith.constant 6 : index
    %491 = memref.load %arg4[%c6_69] : memref<9xf32, #tpu.memory_space<smem>>
    %492 = vector.broadcast %491 : f32 to vector<16x32xf32>
    %493 = arith.addf %490, %492 : vector<16x32xf32>
    %494 = math.absf %493 : vector<16x32xf32>
    %495 = arith.addf %453, %494 : vector<16x32xf32>
    %cst_70 = arith.constant 0.000000e+00 : f32
    %496 = vector.broadcast %cst_70 : f32 to vector<16x32xf32>
    %c63 = arith.constant 63 : index
    %497 = memref.load %arg3[%c63] : memref<81xf32, #tpu.memory_space<smem>>
    %498 = vector.broadcast %497 : f32 to vector<16x32xf32>
    %499 = arith.mulf %498, %180 : vector<16x32xf32>
    %500 = arith.addf %496, %499 : vector<16x32xf32>
    %c64 = arith.constant 64 : index
    %501 = memref.load %arg3[%c64] : memref<81xf32, #tpu.memory_space<smem>>
    %502 = vector.broadcast %501 : f32 to vector<16x32xf32>
    %503 = arith.mulf %502, %182 : vector<16x32xf32>
    %504 = arith.addf %500, %503 : vector<16x32xf32>
    %c65 = arith.constant 65 : index
    %505 = memref.load %arg3[%c65] : memref<81xf32, #tpu.memory_space<smem>>
    %506 = vector.broadcast %505 : f32 to vector<16x32xf32>
    %507 = arith.mulf %506, %186 : vector<16x32xf32>
    %508 = arith.addf %504, %507 : vector<16x32xf32>
    %c66 = arith.constant 66 : index
    %509 = memref.load %arg3[%c66] : memref<81xf32, #tpu.memory_space<smem>>
    %510 = vector.broadcast %509 : f32 to vector<16x32xf32>
    %511 = arith.mulf %510, %188 : vector<16x32xf32>
    %512 = arith.addf %508, %511 : vector<16x32xf32>
    %c67 = arith.constant 67 : index
    %513 = memref.load %arg3[%c67] : memref<81xf32, #tpu.memory_space<smem>>
    %514 = vector.broadcast %513 : f32 to vector<16x32xf32>
    %515 = arith.mulf %514, %1 : vector<16x32xf32>
    %516 = arith.addf %512, %515 : vector<16x32xf32>
    %c68 = arith.constant 68 : index
    %517 = memref.load %arg3[%c68] : memref<81xf32, #tpu.memory_space<smem>>
    %518 = vector.broadcast %517 : f32 to vector<16x32xf32>
    %519 = arith.mulf %518, %190 : vector<16x32xf32>
    %520 = arith.addf %516, %519 : vector<16x32xf32>
    %c69 = arith.constant 69 : index
    %521 = memref.load %arg3[%c69] : memref<81xf32, #tpu.memory_space<smem>>
    %522 = vector.broadcast %521 : f32 to vector<16x32xf32>
    %523 = arith.mulf %522, %194 : vector<16x32xf32>
    %524 = arith.addf %520, %523 : vector<16x32xf32>
    %c70 = arith.constant 70 : index
    %525 = memref.load %arg3[%c70] : memref<81xf32, #tpu.memory_space<smem>>
    %526 = vector.broadcast %525 : f32 to vector<16x32xf32>
    %527 = arith.mulf %526, %196 : vector<16x32xf32>
    %528 = arith.addf %524, %527 : vector<16x32xf32>
    %c71 = arith.constant 71 : index
    %529 = memref.load %arg3[%c71] : memref<81xf32, #tpu.memory_space<smem>>
    %530 = vector.broadcast %529 : f32 to vector<16x32xf32>
    %531 = arith.mulf %530, %200 : vector<16x32xf32>
    %532 = arith.addf %528, %531 : vector<16x32xf32>
    %c7_71 = arith.constant 7 : index
    %533 = memref.load %arg4[%c7_71] : memref<9xf32, #tpu.memory_space<smem>>
    %534 = vector.broadcast %533 : f32 to vector<16x32xf32>
    %535 = arith.addf %532, %534 : vector<16x32xf32>
    %536 = math.absf %535 : vector<16x32xf32>
    %537 = arith.addf %495, %536 : vector<16x32xf32>
    %cst_72 = arith.constant 0.000000e+00 : f32
    %538 = vector.broadcast %cst_72 : f32 to vector<16x32xf32>
    %c72 = arith.constant 72 : index
    %539 = memref.load %arg3[%c72] : memref<81xf32, #tpu.memory_space<smem>>
    %540 = vector.broadcast %539 : f32 to vector<16x32xf32>
    %541 = arith.mulf %540, %180 : vector<16x32xf32>
    %542 = arith.addf %538, %541 : vector<16x32xf32>
    %c73 = arith.constant 73 : index
    %543 = memref.load %arg3[%c73] : memref<81xf32, #tpu.memory_space<smem>>
    %544 = vector.broadcast %543 : f32 to vector<16x32xf32>
    %545 = arith.mulf %544, %182 : vector<16x32xf32>
    %546 = arith.addf %542, %545 : vector<16x32xf32>
    %c74 = arith.constant 74 : index
    %547 = memref.load %arg3[%c74] : memref<81xf32, #tpu.memory_space<smem>>
    %548 = vector.broadcast %547 : f32 to vector<16x32xf32>
    %549 = arith.mulf %548, %186 : vector<16x32xf32>
    %550 = arith.addf %546, %549 : vector<16x32xf32>
    %c75 = arith.constant 75 : index
    %551 = memref.load %arg3[%c75] : memref<81xf32, #tpu.memory_space<smem>>
    %552 = vector.broadcast %551 : f32 to vector<16x32xf32>
    %553 = arith.mulf %552, %188 : vector<16x32xf32>
    %554 = arith.addf %550, %553 : vector<16x32xf32>
    %c76 = arith.constant 76 : index
    %555 = memref.load %arg3[%c76] : memref<81xf32, #tpu.memory_space<smem>>
    %556 = vector.broadcast %555 : f32 to vector<16x32xf32>
    %557 = arith.mulf %556, %1 : vector<16x32xf32>
    %558 = arith.addf %554, %557 : vector<16x32xf32>
    %c77 = arith.constant 77 : index
    %559 = memref.load %arg3[%c77] : memref<81xf32, #tpu.memory_space<smem>>
    %560 = vector.broadcast %559 : f32 to vector<16x32xf32>
    %561 = arith.mulf %560, %190 : vector<16x32xf32>
    %562 = arith.addf %558, %561 : vector<16x32xf32>
    %c78 = arith.constant 78 : index
    %563 = memref.load %arg3[%c78] : memref<81xf32, #tpu.memory_space<smem>>
    %564 = vector.broadcast %563 : f32 to vector<16x32xf32>
    %565 = arith.mulf %564, %194 : vector<16x32xf32>
    %566 = arith.addf %562, %565 : vector<16x32xf32>
    %c79 = arith.constant 79 : index
    %567 = memref.load %arg3[%c79] : memref<81xf32, #tpu.memory_space<smem>>
    %568 = vector.broadcast %567 : f32 to vector<16x32xf32>
    %569 = arith.mulf %568, %196 : vector<16x32xf32>
    %570 = arith.addf %566, %569 : vector<16x32xf32>
    %c80 = arith.constant 80 : index
    %571 = memref.load %arg3[%c80] : memref<81xf32, #tpu.memory_space<smem>>
    %572 = vector.broadcast %571 : f32 to vector<16x32xf32>
    %573 = arith.mulf %572, %200 : vector<16x32xf32>
    %574 = arith.addf %570, %573 : vector<16x32xf32>
    %c8_73 = arith.constant 8 : index
    %575 = memref.load %arg4[%c8_73] : memref<9xf32, #tpu.memory_space<smem>>
    %576 = vector.broadcast %575 : f32 to vector<16x32xf32>
    %577 = arith.addf %574, %576 : vector<16x32xf32>
    %578 = math.absf %577 : vector<16x32xf32>
    %579 = arith.addf %537, %578 : vector<16x32xf32>
    %cst_74 = arith.constant 9.99999996E-13 : f32
    %580 = vector.broadcast %cst_74 : f32 to vector<16x32xf32>
    %581 = arith.maximumf %579, %580 : vector<16x32xf32>
    %582 = tpu.reciprocal %581 {approx = true} : vector<16x32xf32> -> vector<16x32xf32>
    %583 = arith.mulf %241, %582 : vector<16x32xf32>
    %584 = arith.mulf %583, %26 : vector<16x32xf32>
    %585 = arith.mulf %584, %82 : vector<16x32xf32>
    %586 = arith.mulf %283, %582 : vector<16x32xf32>
    %587 = arith.mulf %586, %26 : vector<16x32xf32>
    %588 = arith.mulf %325, %582 : vector<16x32xf32>
    %589 = arith.mulf %588, %26 : vector<16x32xf32>
    %590 = arith.mulf %589, %99 : vector<16x32xf32>
    %591 = arith.mulf %367, %582 : vector<16x32xf32>
    %592 = arith.mulf %591, %82 : vector<16x32xf32>
    %593 = arith.mulf %409, %582 : vector<16x32xf32>
    %594 = arith.mulf %451, %582 : vector<16x32xf32>
    %595 = arith.mulf %594, %99 : vector<16x32xf32>
    %596 = arith.mulf %493, %582 : vector<16x32xf32>
    %597 = arith.mulf %596, %37 : vector<16x32xf32>
    %598 = arith.mulf %597, %82 : vector<16x32xf32>
    %599 = arith.mulf %535, %582 : vector<16x32xf32>
    %600 = arith.mulf %599, %37 : vector<16x32xf32>
    %601 = arith.mulf %577, %582 : vector<16x32xf32>
    %602 = arith.mulf %601, %37 : vector<16x32xf32>
    %603 = arith.mulf %602, %99 : vector<16x32xf32>
    %c0_75 = arith.constant 0 : index
    %c0_76 = arith.constant 0 : index
    %c0_77 = arith.constant 0 : index
    %604 = vector.load %arg2[%c0_75, %c0_76, %c0_77] : memref<1x25x32xf32, #tpu.memory_space<vmem>>, vector<1x25x32xf32>
    %605 = vector.shape_cast %604 : vector<1x25x32xf32> to vector<25x32xf32>
    %606 = vector.extract_strided_slice %605 {offsets = [0, 0], sizes = [1, 32], strides = [1, 1]} : vector<25x32xf32> to vector<1x32xf32>
    %607 = vector.shape_cast %606 : vector<1x32xf32> to vector<1x32xf32>
    %608 = vector.broadcast %607 : vector<1x32xf32> to vector<16x32xf32>
    %609 = vector.extract_strided_slice %605 {offsets = [1, 0], sizes = [1, 32], strides = [1, 1]} : vector<25x32xf32> to vector<1x32xf32>
    %610 = vector.shape_cast %609 : vector<1x32xf32> to vector<1x32xf32>
    %611 = vector.broadcast %610 : vector<1x32xf32> to vector<16x32xf32>
    %612 = vector.extract_strided_slice %605 {offsets = [2, 0], sizes = [1, 32], strides = [1, 1]} : vector<25x32xf32> to vector<1x32xf32>
    %613 = vector.shape_cast %612 : vector<1x32xf32> to vector<1x32xf32>
    %614 = vector.broadcast %613 : vector<1x32xf32> to vector<16x32xf32>
    %615 = vector.extract_strided_slice %605 {offsets = [3, 0], sizes = [1, 32], strides = [1, 1]} : vector<25x32xf32> to vector<1x32xf32>
    %616 = vector.shape_cast %615 : vector<1x32xf32> to vector<1x32xf32>
    %617 = vector.broadcast %616 : vector<1x32xf32> to vector<16x32xf32>
    %618 = vector.extract_strided_slice %605 {offsets = [4, 0], sizes = [1, 32], strides = [1, 1]} : vector<25x32xf32> to vector<1x32xf32>
    %619 = vector.shape_cast %618 : vector<1x32xf32> to vector<1x32xf32>
    %620 = vector.broadcast %619 : vector<1x32xf32> to vector<16x32xf32>
    %621 = vector.extract_strided_slice %605 {offsets = [5, 0], sizes = [1, 32], strides = [1, 1]} : vector<25x32xf32> to vector<1x32xf32>
    %622 = vector.shape_cast %621 : vector<1x32xf32> to vector<1x32xf32>
    %623 = vector.broadcast %622 : vector<1x32xf32> to vector<16x32xf32>
    %624 = vector.extract_strided_slice %605 {offsets = [6, 0], sizes = [1, 32], strides = [1, 1]} : vector<25x32xf32> to vector<1x32xf32>
    %625 = vector.shape_cast %624 : vector<1x32xf32> to vector<1x32xf32>
    %626 = vector.broadcast %625 : vector<1x32xf32> to vector<16x32xf32>
    %627 = vector.extract_strided_slice %605 {offsets = [7, 0], sizes = [1, 32], strides = [1, 1]} : vector<25x32xf32> to vector<1x32xf32>
    %628 = vector.shape_cast %627 : vector<1x32xf32> to vector<1x32xf32>
    %629 = vector.broadcast %628 : vector<1x32xf32> to vector<16x32xf32>
    %630 = vector.extract_strided_slice %605 {offsets = [8, 0], sizes = [1, 32], strides = [1, 1]} : vector<25x32xf32> to vector<1x32xf32>
    %631 = vector.shape_cast %630 : vector<1x32xf32> to vector<1x32xf32>
    %632 = vector.broadcast %631 : vector<1x32xf32> to vector<16x32xf32>
    %633 = vector.extract_strided_slice %605 {offsets = [9, 0], sizes = [1, 32], strides = [1, 1]} : vector<25x32xf32> to vector<1x32xf32>
    %634 = vector.shape_cast %633 : vector<1x32xf32> to vector<1x32xf32>
    %635 = vector.broadcast %634 : vector<1x32xf32> to vector<16x32xf32>
    %636 = vector.extract_strided_slice %605 {offsets = [10, 0], sizes = [1, 32], strides = [1, 1]} : vector<25x32xf32> to vector<1x32xf32>
    %637 = vector.shape_cast %636 : vector<1x32xf32> to vector<1x32xf32>
    %638 = vector.broadcast %637 : vector<1x32xf32> to vector<16x32xf32>
    %639 = vector.extract_strided_slice %605 {offsets = [11, 0], sizes = [1, 32], strides = [1, 1]} : vector<25x32xf32> to vector<1x32xf32>
    %640 = vector.shape_cast %639 : vector<1x32xf32> to vector<1x32xf32>
    %641 = vector.broadcast %640 : vector<1x32xf32> to vector<16x32xf32>
    %642 = vector.extract_strided_slice %605 {offsets = [12, 0], sizes = [1, 32], strides = [1, 1]} : vector<25x32xf32> to vector<1x32xf32>
    %643 = vector.shape_cast %642 : vector<1x32xf32> to vector<1x32xf32>
    %644 = vector.broadcast %643 : vector<1x32xf32> to vector<16x32xf32>
    %645 = vector.extract_strided_slice %605 {offsets = [13, 0], sizes = [1, 32], strides = [1, 1]} : vector<25x32xf32> to vector<1x32xf32>
    %646 = vector.shape_cast %645 : vector<1x32xf32> to vector<1x32xf32>
    %647 = vector.broadcast %646 : vector<1x32xf32> to vector<16x32xf32>
    %648 = vector.extract_strided_slice %605 {offsets = [14, 0], sizes = [1, 32], strides = [1, 1]} : vector<25x32xf32> to vector<1x32xf32>
    %649 = vector.shape_cast %648 : vector<1x32xf32> to vector<1x32xf32>
    %650 = vector.broadcast %649 : vector<1x32xf32> to vector<16x32xf32>
    %651 = vector.extract_strided_slice %605 {offsets = [15, 0], sizes = [1, 32], strides = [1, 1]} : vector<25x32xf32> to vector<1x32xf32>
    %652 = vector.shape_cast %651 : vector<1x32xf32> to vector<1x32xf32>
    %653 = vector.broadcast %652 : vector<1x32xf32> to vector<16x32xf32>
    %654 = vector.extract_strided_slice %605 {offsets = [16, 0], sizes = [1, 32], strides = [1, 1]} : vector<25x32xf32> to vector<1x32xf32>
    %655 = vector.shape_cast %654 : vector<1x32xf32> to vector<1x32xf32>
    %656 = vector.broadcast %655 : vector<1x32xf32> to vector<16x32xf32>
    %657 = vector.extract_strided_slice %605 {offsets = [17, 0], sizes = [1, 32], strides = [1, 1]} : vector<25x32xf32> to vector<1x32xf32>
    %658 = vector.shape_cast %657 : vector<1x32xf32> to vector<1x32xf32>
    %659 = vector.broadcast %658 : vector<1x32xf32> to vector<16x32xf32>
    %660 = vector.extract_strided_slice %605 {offsets = [18, 0], sizes = [1, 32], strides = [1, 1]} : vector<25x32xf32> to vector<1x32xf32>
    %661 = vector.shape_cast %660 : vector<1x32xf32> to vector<1x32xf32>
    %662 = vector.broadcast %661 : vector<1x32xf32> to vector<16x32xf32>
    %663 = vector.extract_strided_slice %605 {offsets = [19, 0], sizes = [1, 32], strides = [1, 1]} : vector<25x32xf32> to vector<1x32xf32>
    %664 = vector.shape_cast %663 : vector<1x32xf32> to vector<1x32xf32>
    %665 = vector.broadcast %664 : vector<1x32xf32> to vector<16x32xf32>
    %666 = vector.extract_strided_slice %605 {offsets = [20, 0], sizes = [1, 32], strides = [1, 1]} : vector<25x32xf32> to vector<1x32xf32>
    %667 = vector.shape_cast %666 : vector<1x32xf32> to vector<1x32xf32>
    %668 = vector.broadcast %667 : vector<1x32xf32> to vector<16x32xf32>
    %669 = vector.extract_strided_slice %605 {offsets = [21, 0], sizes = [1, 32], strides = [1, 1]} : vector<25x32xf32> to vector<1x32xf32>
    %670 = vector.shape_cast %669 : vector<1x32xf32> to vector<1x32xf32>
    %671 = vector.broadcast %670 : vector<1x32xf32> to vector<16x32xf32>
    %672 = vector.extract_strided_slice %605 {offsets = [22, 0], sizes = [1, 32], strides = [1, 1]} : vector<25x32xf32> to vector<1x32xf32>
    %673 = vector.shape_cast %672 : vector<1x32xf32> to vector<1x32xf32>
    %674 = vector.broadcast %673 : vector<1x32xf32> to vector<16x32xf32>
    %675 = vector.extract_strided_slice %605 {offsets = [23, 0], sizes = [1, 32], strides = [1, 1]} : vector<25x32xf32> to vector<1x32xf32>
    %676 = vector.shape_cast %675 : vector<1x32xf32> to vector<1x32xf32>
    %677 = vector.broadcast %676 : vector<1x32xf32> to vector<16x32xf32>
    %678 = vector.extract_strided_slice %605 {offsets = [24, 0], sizes = [1, 32], strides = [1, 1]} : vector<25x32xf32> to vector<1x32xf32>
    %679 = vector.shape_cast %678 : vector<1x32xf32> to vector<1x32xf32>
    %680 = vector.broadcast %679 : vector<1x32xf32> to vector<16x32xf32>
    %681 = arith.mulf %48, %1 : vector<16x32xf32>
    %c2_i32_78 = arith.constant 2 : i32
    %682 = tpu.dynamic_rotate %681 by %c2_i32_78 dim 0 : vector<16x32xf32>, i32 -> vector<16x32xf32>
    %683 = arith.mulf %128, %1 : vector<16x32xf32>
    %c1_i32_79 = arith.constant 1 : i32
    %684 = tpu.dynamic_rotate %683 by %c1_i32_79 dim 0 : vector<16x32xf32>, i32 -> vector<16x32xf32>
    %685 = arith.addf %682, %684 : vector<16x32xf32>
    %686 = arith.mulf %132, %1 : vector<16x32xf32>
    %c15_i32_80 = arith.constant 15 : i32
    %687 = tpu.dynamic_rotate %686 by %c15_i32_80 dim 0 : vector<16x32xf32>, i32 -> vector<16x32xf32>
    %688 = arith.addf %685, %687 : vector<16x32xf32>
    %689 = arith.mulf %37, %1 : vector<16x32xf32>
    %c1_i32_81 = arith.constant 1 : i32
    %690 = tpu.dynamic_rotate %689 by %c1_i32_81 dim 0 : vector<16x32xf32>, i32 -> vector<16x32xf32>
    %691 = arith.mulf %132, %1 : vector<16x32xf32>
    %692 = arith.addf %690, %691 : vector<16x32xf32>
    %693 = arith.mulf %26, %1 : vector<16x32xf32>
    %c15_i32_82 = arith.constant 15 : i32
    %694 = tpu.dynamic_rotate %693 by %c15_i32_82 dim 0 : vector<16x32xf32>, i32 -> vector<16x32xf32>
    %695 = arith.mulf %120, %1 : vector<16x32xf32>
    %696 = arith.addf %694, %695 : vector<16x32xf32>
    %697 = arith.mulf %15, %1 : vector<16x32xf32>
    %c14_i32_83 = arith.constant 14 : i32
    %698 = tpu.dynamic_rotate %697 by %c14_i32_83 dim 0 : vector<16x32xf32>, i32 -> vector<16x32xf32>
    %699 = arith.mulf %120, %1 : vector<16x32xf32>
    %c1_i32_84 = arith.constant 1 : i32
    %700 = tpu.dynamic_rotate %699 by %c1_i32_84 dim 0 : vector<16x32xf32>, i32 -> vector<16x32xf32>
    %701 = arith.addf %698, %700 : vector<16x32xf32>
    %702 = arith.mulf %124, %1 : vector<16x32xf32>
    %c15_i32_85 = arith.constant 15 : i32
    %703 = tpu.dynamic_rotate %702 by %c15_i32_85 dim 0 : vector<16x32xf32>, i32 -> vector<16x32xf32>
    %704 = arith.addf %701, %703 : vector<16x32xf32>
    %cst_86 = arith.constant 0.000000e+00 : f32
    %705 = vector.broadcast %cst_86 : f32 to vector<16x32xf32>
    %cst_87 = arith.constant 0.000000e+00 : f32
    %706 = vector.broadcast %cst_87 : f32 to vector<16x32xf32>
    %707 = arith.mulf %608, %688 : vector<16x32xf32>
    %708 = arith.addf %706, %707 : vector<16x32xf32>
    %709 = arith.mulf %623, %692 : vector<16x32xf32>
    %710 = arith.addf %708, %709 : vector<16x32xf32>
    %711 = arith.mulf %638, %1 : vector<16x32xf32>
    %712 = arith.addf %710, %711 : vector<16x32xf32>
    %713 = arith.mulf %653, %696 : vector<16x32xf32>
    %714 = arith.addf %712, %713 : vector<16x32xf32>
    %715 = arith.mulf %668, %704 : vector<16x32xf32>
    %716 = arith.addf %714, %715 : vector<16x32xf32>
    %717 = arith.mulf %116, %716 : vector<16x32xf32>
    %c2_i32_88 = arith.constant 2 : i32
    %718 = tpu.dynamic_rotate %717 by %c2_i32_88 dim 1 : vector<16x32xf32>, i32 -> vector<16x32xf32>
    %719 = arith.mulf %165, %716 : vector<16x32xf32>
    %c1_i32_89 = arith.constant 1 : i32
    %720 = tpu.dynamic_rotate %719 by %c1_i32_89 dim 1 : vector<16x32xf32>, i32 -> vector<16x32xf32>
    %721 = arith.addf %718, %720 : vector<16x32xf32>
    %722 = arith.mulf %176, %716 : vector<16x32xf32>
    %c31_i32_90 = arith.constant 31 : i32
    %723 = tpu.dynamic_rotate %722 by %c31_i32_90 dim 1 : vector<16x32xf32>, i32 -> vector<16x32xf32>
    %724 = arith.addf %721, %723 : vector<16x32xf32>
    %725 = arith.addf %705, %724 : vector<16x32xf32>
    %cst_91 = arith.constant 0.000000e+00 : f32
    %726 = vector.broadcast %cst_91 : f32 to vector<16x32xf32>
    %727 = arith.mulf %611, %688 : vector<16x32xf32>
    %728 = arith.addf %726, %727 : vector<16x32xf32>
    %729 = arith.mulf %626, %692 : vector<16x32xf32>
    %730 = arith.addf %728, %729 : vector<16x32xf32>
    %731 = arith.mulf %641, %1 : vector<16x32xf32>
    %732 = arith.addf %730, %731 : vector<16x32xf32>
    %733 = arith.mulf %656, %696 : vector<16x32xf32>
    %734 = arith.addf %732, %733 : vector<16x32xf32>
    %735 = arith.mulf %671, %704 : vector<16x32xf32>
    %736 = arith.addf %734, %735 : vector<16x32xf32>
    %737 = arith.mulf %99, %736 : vector<16x32xf32>
    %c1_i32_92 = arith.constant 1 : i32
    %738 = tpu.dynamic_rotate %737 by %c1_i32_92 dim 1 : vector<16x32xf32>, i32 -> vector<16x32xf32>
    %739 = arith.mulf %176, %736 : vector<16x32xf32>
    %740 = arith.addf %738, %739 : vector<16x32xf32>
    %741 = arith.addf %725, %740 : vector<16x32xf32>
    %cst_93 = arith.constant 0.000000e+00 : f32
    %742 = vector.broadcast %cst_93 : f32 to vector<16x32xf32>
    %743 = arith.mulf %614, %688 : vector<16x32xf32>
    %744 = arith.addf %742, %743 : vector<16x32xf32>
    %745 = arith.mulf %629, %692 : vector<16x32xf32>
    %746 = arith.addf %744, %745 : vector<16x32xf32>
    %747 = arith.mulf %644, %1 : vector<16x32xf32>
    %748 = arith.addf %746, %747 : vector<16x32xf32>
    %749 = arith.mulf %659, %696 : vector<16x32xf32>
    %750 = arith.addf %748, %749 : vector<16x32xf32>
    %751 = arith.mulf %674, %704 : vector<16x32xf32>
    %752 = arith.addf %750, %751 : vector<16x32xf32>
    %753 = arith.addf %741, %752 : vector<16x32xf32>
    %cst_94 = arith.constant 0.000000e+00 : f32
    %754 = vector.broadcast %cst_94 : f32 to vector<16x32xf32>
    %755 = arith.mulf %617, %688 : vector<16x32xf32>
    %756 = arith.addf %754, %755 : vector<16x32xf32>
    %757 = arith.mulf %632, %692 : vector<16x32xf32>
    %758 = arith.addf %756, %757 : vector<16x32xf32>
    %759 = arith.mulf %647, %1 : vector<16x32xf32>
    %760 = arith.addf %758, %759 : vector<16x32xf32>
    %761 = arith.mulf %662, %696 : vector<16x32xf32>
    %762 = arith.addf %760, %761 : vector<16x32xf32>
    %763 = arith.mulf %677, %704 : vector<16x32xf32>
    %764 = arith.addf %762, %763 : vector<16x32xf32>
    %765 = arith.mulf %82, %764 : vector<16x32xf32>
    %c31_i32_95 = arith.constant 31 : i32
    %766 = tpu.dynamic_rotate %765 by %c31_i32_95 dim 1 : vector<16x32xf32>, i32 -> vector<16x32xf32>
    %767 = arith.mulf %143, %764 : vector<16x32xf32>
    %768 = arith.addf %766, %767 : vector<16x32xf32>
    %769 = arith.addf %753, %768 : vector<16x32xf32>
    %cst_96 = arith.constant 0.000000e+00 : f32
    %770 = vector.broadcast %cst_96 : f32 to vector<16x32xf32>
    %771 = arith.mulf %620, %688 : vector<16x32xf32>
    %772 = arith.addf %770, %771 : vector<16x32xf32>
    %773 = arith.mulf %635, %692 : vector<16x32xf32>
    %774 = arith.addf %772, %773 : vector<16x32xf32>
    %775 = arith.mulf %650, %1 : vector<16x32xf32>
    %776 = arith.addf %774, %775 : vector<16x32xf32>
    %777 = arith.mulf %665, %696 : vector<16x32xf32>
    %778 = arith.addf %776, %777 : vector<16x32xf32>
    %779 = arith.mulf %680, %704 : vector<16x32xf32>
    %780 = arith.addf %778, %779 : vector<16x32xf32>
    %781 = arith.mulf %65, %780 : vector<16x32xf32>
    %c30_i32_97 = arith.constant 30 : i32
    %782 = tpu.dynamic_rotate %781 by %c30_i32_97 dim 1 : vector<16x32xf32>, i32 -> vector<16x32xf32>
    %783 = arith.mulf %143, %780 : vector<16x32xf32>
    %c1_i32_98 = arith.constant 1 : i32
    %784 = tpu.dynamic_rotate %783 by %c1_i32_98 dim 1 : vector<16x32xf32>, i32 -> vector<16x32xf32>
    %785 = arith.addf %782, %784 : vector<16x32xf32>
    %786 = arith.mulf %154, %780 : vector<16x32xf32>
    %c31_i32_99 = arith.constant 31 : i32
    %787 = tpu.dynamic_rotate %786 by %c31_i32_99 dim 1 : vector<16x32xf32>, i32 -> vector<16x32xf32>
    %788 = arith.addf %785, %787 : vector<16x32xf32>
    %789 = arith.addf %769, %788 : vector<16x32xf32>
    %790 = arith.mulf %789, %789 : vector<16x32xf32>
    %791 = vector.shape_cast %790 : vector<16x32xf32> to vector<1x16x32xf32>
    %cst_100 = arith.constant dense<0.000000e+00> : vector<1xf32>
    %792 = vector.multi_reduction <add>, %791, %cst_100 [1, 2] : vector<1x16x32xf32> to vector<1xf32>
    %793 = vector.shape_cast %792 : vector<1xf32> to vector<1x1x1xf32>
    %794 = vector.extract %793[0, 0, 0] : f32 from vector<1x1x1xf32>
    %cst_101 = arith.constant 9.99999997E-7 : f32
    %cst_102 = arith.constant 9.99999997E-7 : f32
    %795 = arith.mulf %cst_101, %cst_102 : f32
    %796 = arith.mulf %795, %794 : f32
    %cst_103 = arith.constant 0.000000e+00 : f32
    %797 = vector.broadcast %cst_103 : f32 to vector<16x32xf32>
    %c0_i32_104 = arith.constant 0 : i32
    %798:5 = scf.while (%arg7 = %c0_i32_104, %arg8 = %797, %arg9 = %789, %arg10 = %789, %arg11 = %794) : (i32, vector<16x32xf32>, vector<16x32xf32>, vector<16x32xf32>, f32) -> (i32, vector<16x32xf32>, vector<16x32xf32>, vector<16x32xf32>, f32) {
      %c300_i32 = arith.constant 300 : i32
      %802 = arith.cmpi slt, %arg7, %c300_i32 : i32
      %803 = arith.cmpf ogt, %arg11, %796 : f32
      %804 = arith.andi %802, %803 : i1
      scf.condition(%804) %arg7, %arg8, %arg9, %arg10, %arg11 : i32, vector<16x32xf32>, vector<16x32xf32>, vector<16x32xf32>, f32
    } do {
    ^bb0(%arg7: i32, %arg8: vector<16x32xf32>, %arg9: vector<16x32xf32>, %arg10: vector<16x32xf32>, %arg11: f32):
      %c30_i32_109 = arith.constant 30 : i32
      %802 = tpu.dynamic_rotate %arg10 by %c30_i32_109 dim 1 : vector<16x32xf32>, i32 -> vector<16x32xf32>
      %803 = arith.mulf %116, %802 : vector<16x32xf32>
      %c31_i32_110 = arith.constant 31 : i32
      %804 = tpu.dynamic_rotate %arg10 by %c31_i32_110 dim 1 : vector<16x32xf32>, i32 -> vector<16x32xf32>
      %805 = arith.mulf %165, %804 : vector<16x32xf32>
      %806 = arith.addf %803, %805 : vector<16x32xf32>
      %c1_i32_111 = arith.constant 1 : i32
      %807 = tpu.dynamic_rotate %arg10 by %c1_i32_111 dim 1 : vector<16x32xf32>, i32 -> vector<16x32xf32>
      %808 = arith.mulf %176, %807 : vector<16x32xf32>
      %809 = arith.addf %806, %808 : vector<16x32xf32>
      %c31_i32_112 = arith.constant 31 : i32
      %810 = tpu.dynamic_rotate %arg10 by %c31_i32_112 dim 1 : vector<16x32xf32>, i32 -> vector<16x32xf32>
      %811 = arith.mulf %99, %810 : vector<16x32xf32>
      %812 = arith.mulf %176, %arg10 : vector<16x32xf32>
      %813 = arith.addf %811, %812 : vector<16x32xf32>
      %c1_i32_113 = arith.constant 1 : i32
      %814 = tpu.dynamic_rotate %arg10 by %c1_i32_113 dim 1 : vector<16x32xf32>, i32 -> vector<16x32xf32>
      %815 = arith.mulf %82, %814 : vector<16x32xf32>
      %816 = arith.mulf %143, %arg10 : vector<16x32xf32>
      %817 = arith.addf %815, %816 : vector<16x32xf32>
      %c2_i32_114 = arith.constant 2 : i32
      %818 = tpu.dynamic_rotate %arg10 by %c2_i32_114 dim 1 : vector<16x32xf32>, i32 -> vector<16x32xf32>
      %819 = arith.mulf %65, %818 : vector<16x32xf32>
      %c31_i32_115 = arith.constant 31 : i32
      %820 = tpu.dynamic_rotate %arg10 by %c31_i32_115 dim 1 : vector<16x32xf32>, i32 -> vector<16x32xf32>
      %821 = arith.mulf %143, %820 : vector<16x32xf32>
      %822 = arith.addf %819, %821 : vector<16x32xf32>
      %c1_i32_116 = arith.constant 1 : i32
      %823 = tpu.dynamic_rotate %arg10 by %c1_i32_116 dim 1 : vector<16x32xf32>, i32 -> vector<16x32xf32>
      %824 = arith.mulf %154, %823 : vector<16x32xf32>
      %825 = arith.addf %822, %824 : vector<16x32xf32>
      %cst_117 = arith.constant 0.000000e+00 : f32
      %826 = vector.broadcast %cst_117 : f32 to vector<16x32xf32>
      %cst_118 = arith.constant 0.000000e+00 : f32
      %827 = vector.broadcast %cst_118 : f32 to vector<16x32xf32>
      %828 = arith.mulf %608, %809 : vector<16x32xf32>
      %829 = arith.addf %827, %828 : vector<16x32xf32>
      %830 = arith.mulf %611, %813 : vector<16x32xf32>
      %831 = arith.addf %829, %830 : vector<16x32xf32>
      %832 = arith.mulf %614, %arg10 : vector<16x32xf32>
      %833 = arith.addf %831, %832 : vector<16x32xf32>
      %834 = arith.mulf %617, %817 : vector<16x32xf32>
      %835 = arith.addf %833, %834 : vector<16x32xf32>
      %836 = arith.mulf %620, %825 : vector<16x32xf32>
      %837 = arith.addf %835, %836 : vector<16x32xf32>
      %c14_i32_119 = arith.constant 14 : i32
      %838 = tpu.dynamic_rotate %837 by %c14_i32_119 dim 0 : vector<16x32xf32>, i32 -> vector<16x32xf32>
      %839 = arith.mulf %48, %838 : vector<16x32xf32>
      %c15_i32_120 = arith.constant 15 : i32
      %840 = tpu.dynamic_rotate %837 by %c15_i32_120 dim 0 : vector<16x32xf32>, i32 -> vector<16x32xf32>
      %841 = arith.mulf %128, %840 : vector<16x32xf32>
      %842 = arith.addf %839, %841 : vector<16x32xf32>
      %c1_i32_121 = arith.constant 1 : i32
      %843 = tpu.dynamic_rotate %837 by %c1_i32_121 dim 0 : vector<16x32xf32>, i32 -> vector<16x32xf32>
      %844 = arith.mulf %132, %843 : vector<16x32xf32>
      %845 = arith.addf %842, %844 : vector<16x32xf32>
      %846 = arith.addf %826, %845 : vector<16x32xf32>
      %cst_122 = arith.constant 0.000000e+00 : f32
      %847 = vector.broadcast %cst_122 : f32 to vector<16x32xf32>
      %848 = arith.mulf %623, %809 : vector<16x32xf32>
      %849 = arith.addf %847, %848 : vector<16x32xf32>
      %850 = arith.mulf %626, %813 : vector<16x32xf32>
      %851 = arith.addf %849, %850 : vector<16x32xf32>
      %852 = arith.mulf %629, %arg10 : vector<16x32xf32>
      %853 = arith.addf %851, %852 : vector<16x32xf32>
      %854 = arith.mulf %632, %817 : vector<16x32xf32>
      %855 = arith.addf %853, %854 : vector<16x32xf32>
      %856 = arith.mulf %635, %825 : vector<16x32xf32>
      %857 = arith.addf %855, %856 : vector<16x32xf32>
      %c15_i32_123 = arith.constant 15 : i32
      %858 = tpu.dynamic_rotate %857 by %c15_i32_123 dim 0 : vector<16x32xf32>, i32 -> vector<16x32xf32>
      %859 = arith.mulf %37, %858 : vector<16x32xf32>
      %860 = arith.mulf %132, %857 : vector<16x32xf32>
      %861 = arith.addf %859, %860 : vector<16x32xf32>
      %862 = arith.addf %846, %861 : vector<16x32xf32>
      %cst_124 = arith.constant 0.000000e+00 : f32
      %863 = vector.broadcast %cst_124 : f32 to vector<16x32xf32>
      %864 = arith.mulf %638, %809 : vector<16x32xf32>
      %865 = arith.addf %863, %864 : vector<16x32xf32>
      %866 = arith.mulf %641, %813 : vector<16x32xf32>
      %867 = arith.addf %865, %866 : vector<16x32xf32>
      %868 = arith.mulf %644, %arg10 : vector<16x32xf32>
      %869 = arith.addf %867, %868 : vector<16x32xf32>
      %870 = arith.mulf %647, %817 : vector<16x32xf32>
      %871 = arith.addf %869, %870 : vector<16x32xf32>
      %872 = arith.mulf %650, %825 : vector<16x32xf32>
      %873 = arith.addf %871, %872 : vector<16x32xf32>
      %874 = arith.addf %862, %873 : vector<16x32xf32>
      %cst_125 = arith.constant 0.000000e+00 : f32
      %875 = vector.broadcast %cst_125 : f32 to vector<16x32xf32>
      %876 = arith.mulf %653, %809 : vector<16x32xf32>
      %877 = arith.addf %875, %876 : vector<16x32xf32>
      %878 = arith.mulf %656, %813 : vector<16x32xf32>
      %879 = arith.addf %877, %878 : vector<16x32xf32>
      %880 = arith.mulf %659, %arg10 : vector<16x32xf32>
      %881 = arith.addf %879, %880 : vector<16x32xf32>
      %882 = arith.mulf %662, %817 : vector<16x32xf32>
      %883 = arith.addf %881, %882 : vector<16x32xf32>
      %884 = arith.mulf %665, %825 : vector<16x32xf32>
      %885 = arith.addf %883, %884 : vector<16x32xf32>
      %c1_i32_126 = arith.constant 1 : i32
      %886 = tpu.dynamic_rotate %885 by %c1_i32_126 dim 0 : vector<16x32xf32>, i32 -> vector<16x32xf32>
      %887 = arith.mulf %26, %886 : vector<16x32xf32>
      %888 = arith.mulf %120, %885 : vector<16x32xf32>
      %889 = arith.addf %887, %888 : vector<16x32xf32>
      %890 = arith.addf %874, %889 : vector<16x32xf32>
      %cst_127 = arith.constant 0.000000e+00 : f32
      %891 = vector.broadcast %cst_127 : f32 to vector<16x32xf32>
      %892 = arith.mulf %668, %809 : vector<16x32xf32>
      %893 = arith.addf %891, %892 : vector<16x32xf32>
      %894 = arith.mulf %671, %813 : vector<16x32xf32>
      %895 = arith.addf %893, %894 : vector<16x32xf32>
      %896 = arith.mulf %674, %arg10 : vector<16x32xf32>
      %897 = arith.addf %895, %896 : vector<16x32xf32>
      %898 = arith.mulf %677, %817 : vector<16x32xf32>
      %899 = arith.addf %897, %898 : vector<16x32xf32>
      %900 = arith.mulf %680, %825 : vector<16x32xf32>
      %901 = arith.addf %899, %900 : vector<16x32xf32>
      %c2_i32_128 = arith.constant 2 : i32
      %902 = tpu.dynamic_rotate %901 by %c2_i32_128 dim 0 : vector<16x32xf32>, i32 -> vector<16x32xf32>
      %903 = arith.mulf %15, %902 : vector<16x32xf32>
      %c15_i32_129 = arith.constant 15 : i32
      %904 = tpu.dynamic_rotate %901 by %c15_i32_129 dim 0 : vector<16x32xf32>, i32 -> vector<16x32xf32>
      %905 = arith.mulf %120, %904 : vector<16x32xf32>
      %906 = arith.addf %903, %905 : vector<16x32xf32>
      %c1_i32_130 = arith.constant 1 : i32
      %907 = tpu.dynamic_rotate %901 by %c1_i32_130 dim 0 : vector<16x32xf32>, i32 -> vector<16x32xf32>
      %908 = arith.mulf %124, %907 : vector<16x32xf32>
      %909 = arith.addf %906, %908 : vector<16x32xf32>
      %910 = arith.addf %890, %909 : vector<16x32xf32>
      %911 = arith.mulf %48, %910 : vector<16x32xf32>
      %c2_i32_131 = arith.constant 2 : i32
      %912 = tpu.dynamic_rotate %911 by %c2_i32_131 dim 0 : vector<16x32xf32>, i32 -> vector<16x32xf32>
      %913 = arith.mulf %128, %910 : vector<16x32xf32>
      %c1_i32_132 = arith.constant 1 : i32
      %914 = tpu.dynamic_rotate %913 by %c1_i32_132 dim 0 : vector<16x32xf32>, i32 -> vector<16x32xf32>
      %915 = arith.addf %912, %914 : vector<16x32xf32>
      %916 = arith.mulf %132, %910 : vector<16x32xf32>
      %c15_i32_133 = arith.constant 15 : i32
      %917 = tpu.dynamic_rotate %916 by %c15_i32_133 dim 0 : vector<16x32xf32>, i32 -> vector<16x32xf32>
      %918 = arith.addf %915, %917 : vector<16x32xf32>
      %919 = arith.mulf %37, %910 : vector<16x32xf32>
      %c1_i32_134 = arith.constant 1 : i32
      %920 = tpu.dynamic_rotate %919 by %c1_i32_134 dim 0 : vector<16x32xf32>, i32 -> vector<16x32xf32>
      %921 = arith.mulf %132, %910 : vector<16x32xf32>
      %922 = arith.addf %920, %921 : vector<16x32xf32>
      %923 = arith.mulf %26, %910 : vector<16x32xf32>
      %c15_i32_135 = arith.constant 15 : i32
      %924 = tpu.dynamic_rotate %923 by %c15_i32_135 dim 0 : vector<16x32xf32>, i32 -> vector<16x32xf32>
      %925 = arith.mulf %120, %910 : vector<16x32xf32>
      %926 = arith.addf %924, %925 : vector<16x32xf32>
      %927 = arith.mulf %15, %910 : vector<16x32xf32>
      %c14_i32_136 = arith.constant 14 : i32
      %928 = tpu.dynamic_rotate %927 by %c14_i32_136 dim 0 : vector<16x32xf32>, i32 -> vector<16x32xf32>
      %929 = arith.mulf %120, %910 : vector<16x32xf32>
      %c1_i32_137 = arith.constant 1 : i32
      %930 = tpu.dynamic_rotate %929 by %c1_i32_137 dim 0 : vector<16x32xf32>, i32 -> vector<16x32xf32>
      %931 = arith.addf %928, %930 : vector<16x32xf32>
      %932 = arith.mulf %124, %910 : vector<16x32xf32>
      %c15_i32_138 = arith.constant 15 : i32
      %933 = tpu.dynamic_rotate %932 by %c15_i32_138 dim 0 : vector<16x32xf32>, i32 -> vector<16x32xf32>
      %934 = arith.addf %931, %933 : vector<16x32xf32>
      %cst_139 = arith.constant 0.000000e+00 : f32
      %935 = vector.broadcast %cst_139 : f32 to vector<16x32xf32>
      %cst_140 = arith.constant 0.000000e+00 : f32
      %936 = vector.broadcast %cst_140 : f32 to vector<16x32xf32>
      %937 = arith.mulf %608, %918 : vector<16x32xf32>
      %938 = arith.addf %936, %937 : vector<16x32xf32>
      %939 = arith.mulf %623, %922 : vector<16x32xf32>
      %940 = arith.addf %938, %939 : vector<16x32xf32>
      %941 = arith.mulf %638, %910 : vector<16x32xf32>
      %942 = arith.addf %940, %941 : vector<16x32xf32>
      %943 = arith.mulf %653, %926 : vector<16x32xf32>
      %944 = arith.addf %942, %943 : vector<16x32xf32>
      %945 = arith.mulf %668, %934 : vector<16x32xf32>
      %946 = arith.addf %944, %945 : vector<16x32xf32>
      %947 = arith.mulf %116, %946 : vector<16x32xf32>
      %c2_i32_141 = arith.constant 2 : i32
      %948 = tpu.dynamic_rotate %947 by %c2_i32_141 dim 1 : vector<16x32xf32>, i32 -> vector<16x32xf32>
      %949 = arith.mulf %165, %946 : vector<16x32xf32>
      %c1_i32_142 = arith.constant 1 : i32
      %950 = tpu.dynamic_rotate %949 by %c1_i32_142 dim 1 : vector<16x32xf32>, i32 -> vector<16x32xf32>
      %951 = arith.addf %948, %950 : vector<16x32xf32>
      %952 = arith.mulf %176, %946 : vector<16x32xf32>
      %c31_i32_143 = arith.constant 31 : i32
      %953 = tpu.dynamic_rotate %952 by %c31_i32_143 dim 1 : vector<16x32xf32>, i32 -> vector<16x32xf32>
      %954 = arith.addf %951, %953 : vector<16x32xf32>
      %955 = arith.addf %935, %954 : vector<16x32xf32>
      %cst_144 = arith.constant 0.000000e+00 : f32
      %956 = vector.broadcast %cst_144 : f32 to vector<16x32xf32>
      %957 = arith.mulf %611, %918 : vector<16x32xf32>
      %958 = arith.addf %956, %957 : vector<16x32xf32>
      %959 = arith.mulf %626, %922 : vector<16x32xf32>
      %960 = arith.addf %958, %959 : vector<16x32xf32>
      %961 = arith.mulf %641, %910 : vector<16x32xf32>
      %962 = arith.addf %960, %961 : vector<16x32xf32>
      %963 = arith.mulf %656, %926 : vector<16x32xf32>
      %964 = arith.addf %962, %963 : vector<16x32xf32>
      %965 = arith.mulf %671, %934 : vector<16x32xf32>
      %966 = arith.addf %964, %965 : vector<16x32xf32>
      %967 = arith.mulf %99, %966 : vector<16x32xf32>
      %c1_i32_145 = arith.constant 1 : i32
      %968 = tpu.dynamic_rotate %967 by %c1_i32_145 dim 1 : vector<16x32xf32>, i32 -> vector<16x32xf32>
      %969 = arith.mulf %176, %966 : vector<16x32xf32>
      %970 = arith.addf %968, %969 : vector<16x32xf32>
      %971 = arith.addf %955, %970 : vector<16x32xf32>
      %cst_146 = arith.constant 0.000000e+00 : f32
      %972 = vector.broadcast %cst_146 : f32 to vector<16x32xf32>
      %973 = arith.mulf %614, %918 : vector<16x32xf32>
      %974 = arith.addf %972, %973 : vector<16x32xf32>
      %975 = arith.mulf %629, %922 : vector<16x32xf32>
      %976 = arith.addf %974, %975 : vector<16x32xf32>
      %977 = arith.mulf %644, %910 : vector<16x32xf32>
      %978 = arith.addf %976, %977 : vector<16x32xf32>
      %979 = arith.mulf %659, %926 : vector<16x32xf32>
      %980 = arith.addf %978, %979 : vector<16x32xf32>
      %981 = arith.mulf %674, %934 : vector<16x32xf32>
      %982 = arith.addf %980, %981 : vector<16x32xf32>
      %983 = arith.addf %971, %982 : vector<16x32xf32>
      %cst_147 = arith.constant 0.000000e+00 : f32
      %984 = vector.broadcast %cst_147 : f32 to vector<16x32xf32>
      %985 = arith.mulf %617, %918 : vector<16x32xf32>
      %986 = arith.addf %984, %985 : vector<16x32xf32>
      %987 = arith.mulf %632, %922 : vector<16x32xf32>
      %988 = arith.addf %986, %987 : vector<16x32xf32>
      %989 = arith.mulf %647, %910 : vector<16x32xf32>
      %990 = arith.addf %988, %989 : vector<16x32xf32>
      %991 = arith.mulf %662, %926 : vector<16x32xf32>
      %992 = arith.addf %990, %991 : vector<16x32xf32>
      %993 = arith.mulf %677, %934 : vector<16x32xf32>
      %994 = arith.addf %992, %993 : vector<16x32xf32>
      %995 = arith.mulf %82, %994 : vector<16x32xf32>
      %c31_i32_148 = arith.constant 31 : i32
      %996 = tpu.dynamic_rotate %995 by %c31_i32_148 dim 1 : vector<16x32xf32>, i32 -> vector<16x32xf32>
      %997 = arith.mulf %143, %994 : vector<16x32xf32>
      %998 = arith.addf %996, %997 : vector<16x32xf32>
      %999 = arith.addf %983, %998 : vector<16x32xf32>
      %cst_149 = arith.constant 0.000000e+00 : f32
      %1000 = vector.broadcast %cst_149 : f32 to vector<16x32xf32>
      %1001 = arith.mulf %620, %918 : vector<16x32xf32>
      %1002 = arith.addf %1000, %1001 : vector<16x32xf32>
      %1003 = arith.mulf %635, %922 : vector<16x32xf32>
      %1004 = arith.addf %1002, %1003 : vector<16x32xf32>
      %1005 = arith.mulf %650, %910 : vector<16x32xf32>
      %1006 = arith.addf %1004, %1005 : vector<16x32xf32>
      %1007 = arith.mulf %665, %926 : vector<16x32xf32>
      %1008 = arith.addf %1006, %1007 : vector<16x32xf32>
      %1009 = arith.mulf %680, %934 : vector<16x32xf32>
      %1010 = arith.addf %1008, %1009 : vector<16x32xf32>
      %1011 = arith.mulf %65, %1010 : vector<16x32xf32>
      %c30_i32_150 = arith.constant 30 : i32
      %1012 = tpu.dynamic_rotate %1011 by %c30_i32_150 dim 1 : vector<16x32xf32>, i32 -> vector<16x32xf32>
      %1013 = arith.mulf %143, %1010 : vector<16x32xf32>
      %c1_i32_151 = arith.constant 1 : i32
      %1014 = tpu.dynamic_rotate %1013 by %c1_i32_151 dim 1 : vector<16x32xf32>, i32 -> vector<16x32xf32>
      %1015 = arith.addf %1012, %1014 : vector<16x32xf32>
      %1016 = arith.mulf %154, %1010 : vector<16x32xf32>
      %c31_i32_152 = arith.constant 31 : i32
      %1017 = tpu.dynamic_rotate %1016 by %c31_i32_152 dim 1 : vector<16x32xf32>, i32 -> vector<16x32xf32>
      %1018 = arith.addf %1015, %1017 : vector<16x32xf32>
      %1019 = arith.addf %999, %1018 : vector<16x32xf32>
      %c1_i32_153 = arith.constant 1 : i32
      %1020 = tpu.dynamic_rotate %arg10 by %c1_i32_153 dim 0 : vector<16x32xf32>, i32 -> vector<16x32xf32>
      %c15_i32_154 = arith.constant 15 : i32
      %1021 = tpu.dynamic_rotate %arg10 by %c15_i32_154 dim 0 : vector<16x32xf32>, i32 -> vector<16x32xf32>
      %cst_155 = arith.constant 0.000000e+00 : f32
      %1022 = vector.broadcast %cst_155 : f32 to vector<16x32xf32>
      %c1_i32_156 = arith.constant 1 : i32
      %1023 = tpu.dynamic_rotate %1020 by %c1_i32_156 dim 1 : vector<16x32xf32>, i32 -> vector<16x32xf32>
      %1024 = arith.mulf %585, %1023 : vector<16x32xf32>
      %1025 = arith.addf %1022, %1024 : vector<16x32xf32>
      %1026 = arith.mulf %587, %1020 : vector<16x32xf32>
      %1027 = arith.addf %1025, %1026 : vector<16x32xf32>
      %c31_i32_157 = arith.constant 31 : i32
      %1028 = tpu.dynamic_rotate %1020 by %c31_i32_157 dim 1 : vector<16x32xf32>, i32 -> vector<16x32xf32>
      %1029 = arith.mulf %590, %1028 : vector<16x32xf32>
      %1030 = arith.addf %1027, %1029 : vector<16x32xf32>
      %c1_i32_158 = arith.constant 1 : i32
      %1031 = tpu.dynamic_rotate %arg10 by %c1_i32_158 dim 1 : vector<16x32xf32>, i32 -> vector<16x32xf32>
      %1032 = arith.mulf %592, %1031 : vector<16x32xf32>
      %1033 = arith.addf %1030, %1032 : vector<16x32xf32>
      %1034 = arith.mulf %593, %arg10 : vector<16x32xf32>
      %1035 = arith.addf %1033, %1034 : vector<16x32xf32>
      %c31_i32_159 = arith.constant 31 : i32
      %1036 = tpu.dynamic_rotate %arg10 by %c31_i32_159 dim 1 : vector<16x32xf32>, i32 -> vector<16x32xf32>
      %1037 = arith.mulf %595, %1036 : vector<16x32xf32>
      %1038 = arith.addf %1035, %1037 : vector<16x32xf32>
      %c1_i32_160 = arith.constant 1 : i32
      %1039 = tpu.dynamic_rotate %1021 by %c1_i32_160 dim 1 : vector<16x32xf32>, i32 -> vector<16x32xf32>
      %1040 = arith.mulf %598, %1039 : vector<16x32xf32>
      %1041 = arith.addf %1038, %1040 : vector<16x32xf32>
      %1042 = arith.mulf %600, %1021 : vector<16x32xf32>
      %1043 = arith.addf %1041, %1042 : vector<16x32xf32>
      %c31_i32_161 = arith.constant 31 : i32
      %1044 = tpu.dynamic_rotate %1021 by %c31_i32_161 dim 1 : vector<16x32xf32>, i32 -> vector<16x32xf32>
      %1045 = arith.mulf %603, %1044 : vector<16x32xf32>
      %1046 = arith.addf %1043, %1045 : vector<16x32xf32>
      %cst_162 = arith.constant 0.000000e+00 : f32
      %1047 = vector.broadcast %cst_162 : f32 to vector<16x32xf32>
      %cst_163 = arith.constant 0.000000e+00 : f32
      %1048 = vector.broadcast %cst_163 : f32 to vector<16x32xf32>
      %1049 = arith.mulf %585, %1046 : vector<16x32xf32>
      %c31_i32_164 = arith.constant 31 : i32
      %1050 = tpu.dynamic_rotate %1049 by %c31_i32_164 dim 1 : vector<16x32xf32>, i32 -> vector<16x32xf32>
      %1051 = arith.addf %1048, %1050 : vector<16x32xf32>
      %1052 = arith.mulf %587, %1046 : vector<16x32xf32>
      %1053 = arith.addf %1051, %1052 : vector<16x32xf32>
      %1054 = arith.mulf %590, %1046 : vector<16x32xf32>
      %c1_i32_165 = arith.constant 1 : i32
      %1055 = tpu.dynamic_rotate %1054 by %c1_i32_165 dim 1 : vector<16x32xf32>, i32 -> vector<16x32xf32>
      %1056 = arith.addf %1053, %1055 : vector<16x32xf32>
      %c15_i32_166 = arith.constant 15 : i32
      %1057 = tpu.dynamic_rotate %1056 by %c15_i32_166 dim 0 : vector<16x32xf32>, i32 -> vector<16x32xf32>
      %1058 = arith.addf %1047, %1057 : vector<16x32xf32>
      %cst_167 = arith.constant 0.000000e+00 : f32
      %1059 = vector.broadcast %cst_167 : f32 to vector<16x32xf32>
      %1060 = arith.mulf %592, %1046 : vector<16x32xf32>
      %c31_i32_168 = arith.constant 31 : i32
      %1061 = tpu.dynamic_rotate %1060 by %c31_i32_168 dim 1 : vector<16x32xf32>, i32 -> vector<16x32xf32>
      %1062 = arith.addf %1059, %1061 : vector<16x32xf32>
      %1063 = arith.mulf %593, %1046 : vector<16x32xf32>
      %1064 = arith.addf %1062, %1063 : vector<16x32xf32>
      %1065 = arith.mulf %595, %1046 : vector<16x32xf32>
      %c1_i32_169 = arith.constant 1 : i32
      %1066 = tpu.dynamic_rotate %1065 by %c1_i32_169 dim 1 : vector<16x32xf32>, i32 -> vector<16x32xf32>
      %1067 = arith.addf %1064, %1066 : vector<16x32xf32>
      %1068 = arith.addf %1058, %1067 : vector<16x32xf32>
      %cst_170 = arith.constant 0.000000e+00 : f32
      %1069 = vector.broadcast %cst_170 : f32 to vector<16x32xf32>
      %1070 = arith.mulf %598, %1046 : vector<16x32xf32>
      %c31_i32_171 = arith.constant 31 : i32
      %1071 = tpu.dynamic_rotate %1070 by %c31_i32_171 dim 1 : vector<16x32xf32>, i32 -> vector<16x32xf32>
      %1072 = arith.addf %1069, %1071 : vector<16x32xf32>
      %1073 = arith.mulf %600, %1046 : vector<16x32xf32>
      %1074 = arith.addf %1072, %1073 : vector<16x32xf32>
      %1075 = arith.mulf %603, %1046 : vector<16x32xf32>
      %c1_i32_172 = arith.constant 1 : i32
      %1076 = tpu.dynamic_rotate %1075 by %c1_i32_172 dim 1 : vector<16x32xf32>, i32 -> vector<16x32xf32>
      %1077 = arith.addf %1074, %1076 : vector<16x32xf32>
      %c1_i32_173 = arith.constant 1 : i32
      %1078 = tpu.dynamic_rotate %1077 by %c1_i32_173 dim 0 : vector<16x32xf32>, i32 -> vector<16x32xf32>
      %1079 = arith.addf %1068, %1078 : vector<16x32xf32>
      %1080 = vector.broadcast %2 : f32 to vector<16x32xf32>
      %1081 = arith.mulf %1080, %1079 : vector<16x32xf32>
      %1082 = arith.addf %1019, %1081 : vector<16x32xf32>
      %1083 = arith.mulf %arg10, %1082 : vector<16x32xf32>
      %1084 = vector.shape_cast %1083 : vector<16x32xf32> to vector<1x16x32xf32>
      %cst_174 = arith.constant dense<0.000000e+00> : vector<1xf32>
      %1085 = vector.multi_reduction <add>, %1084, %cst_174 [1, 2] : vector<1x16x32xf32> to vector<1xf32>
      %1086 = vector.shape_cast %1085 : vector<1xf32> to vector<1x1x1xf32>
      %1087 = vector.extract %1086[0, 0, 0] : f32 from vector<1x1x1xf32>
      %cst_175 = arith.constant 1.000000e-30 : f32
      %1088 = arith.cmpf ogt, %1087, %cst_175 : f32
      %cst_176 = arith.constant 1.000000e+00 : f32
      %1089 = arith.select %1088, %1087, %cst_176 : f32
      %1090 = arith.divf %arg11, %1089 : f32
      %cst_177 = arith.constant 0.000000e+00 : f32
      %1091 = arith.select %1088, %1090, %cst_177 : f32
      %1092 = vector.broadcast %1091 : f32 to vector<16x32xf32>
      %1093 = arith.mulf %1092, %arg10 : vector<16x32xf32>
      %1094 = arith.addf %arg8, %1093 : vector<16x32xf32>
      %1095 = vector.broadcast %1091 : f32 to vector<16x32xf32>
      %1096 = arith.mulf %1095, %1082 : vector<16x32xf32>
      %1097 = arith.subf %arg9, %1096 : vector<16x32xf32>
      %1098 = arith.mulf %1097, %1097 : vector<16x32xf32>
      %1099 = vector.shape_cast %1098 : vector<16x32xf32> to vector<1x16x32xf32>
      %cst_178 = arith.constant dense<0.000000e+00> : vector<1xf32>
      %1100 = vector.multi_reduction <add>, %1099, %cst_178 [1, 2] : vector<1x16x32xf32> to vector<1xf32>
      %1101 = vector.shape_cast %1100 : vector<1xf32> to vector<1x1x1xf32>
      %1102 = vector.extract %1101[0, 0, 0] : f32 from vector<1x1x1xf32>
      %cst_179 = arith.constant 0.000000e+00 : f32
      %1103 = arith.select %1088, %1102, %cst_179 : f32
      %cst_180 = arith.constant 0.000000e+00 : f32
      %1104 = arith.cmpf ogt, %arg11, %cst_180 : f32
      %cst_181 = arith.constant 1.000000e+00 : f32
      %1105 = arith.select %1104, %arg11, %cst_181 : f32
      %1106 = arith.divf %1103, %1105 : f32
      %c1_i32_182 = arith.constant 1 : i32
      %1107 = arith.addi %arg7, %c1_i32_182 : i32
      %c50_i32 = arith.constant 50 : i32
      %c0_i32_183 = arith.constant 0 : i32
      %1108 = arith.cmpi eq, %c50_i32, %c0_i32_183 : i32
      %c1_i32_184 = arith.constant 1 : i32
      %1109 = arith.select %1108, %c1_i32_184, %c50_i32 : i32
      %1110 = arith.remsi %1107, %1109 : i32
      %c0_i32_185 = arith.constant 0 : i32
      %1111 = arith.cmpi ne, %1110, %c0_i32_185 : i32
      %c0_i32_186 = arith.constant 0 : i32
      %1112 = arith.cmpi slt, %1110, %c0_i32_186 : i32
      %c0_i32_187 = arith.constant 0 : i32
      %1113 = arith.cmpi slt, %1109, %c0_i32_187 : i32
      %1114 = arith.xori %1112, %1113 : i1
      %1115 = arith.andi %1114, %1111 : i1
      %1116 = arith.addi %1110, %1109 : i32
      %1117 = arith.select %1115, %1116, %1110 : i32
      %c0_i32_188 = arith.constant 0 : i32
      %1118 = arith.cmpi eq, %1117, %c0_i32_188 : i32
      %1119 = vector.broadcast %1106 : f32 to vector<16x32xf32>
      %1120 = arith.mulf %1119, %arg10 : vector<16x32xf32>
      %1121 = arith.addf %1097, %1120 : vector<16x32xf32>
      %1122 = arith.select %1118, %1097, %1121 : vector<16x32xf32>
      %c1_i32_189 = arith.constant 1 : i32
      %1123 = arith.addi %arg7, %c1_i32_189 : i32
      scf.yield %1123, %1094, %1097, %1122, %1103 : i32, vector<16x32xf32>, vector<16x32xf32>, vector<16x32xf32>, f32
    }
    %c0_105 = arith.constant 0 : index
    %c0_106 = arith.constant 0 : index
    %c0_107 = arith.constant 0 : index
    %c0_108 = arith.constant 0 : index
    %799 = vector.load %arg6[%c0_105, %c0_106, %c0_107, %c0_108] : memref<1x1x16x32xf32, #tpu.memory_space<vmem>>, vector<1x1x16x32xf32>
    %800 = vector.shape_cast %799 : vector<1x1x16x32xf32> to vector<16x32xf32>
    %801 = vector.shape_cast %798#1 : vector<16x32xf32> to vector<1x1x16x32xf32>
    tpu.vector_store %arg6[%c0_105, %c0_106, %c0_107, %c0_108], %801 {strides = array<i32>} : memref<1x1x16x32xf32, #tpu.memory_space<vmem>>, vector<1x1x16x32xf32>,
    return
  }
  func.func @transform_0(%arg0: i32) -> (i32, i32, i32, i32) {
    %c0_i32 = arith.constant 0 : i32
    %c0_i32_0 = arith.constant 0 : i32
    %c0_i32_1 = arith.constant 0 : i32
    %c0_i32_2 = arith.constant 0 : i32
    return %arg0, %c0_i32, %c0_i32_0, %c0_i32_1 : i32, i32, i32, i32
  }
  func.func @transform_1(%arg0: i32) -> (i32, i32, i32) {
    %c0_i32 = arith.constant 0 : i32
    %c0_i32_0 = arith.constant 0 : i32
    %c0_i32_1 = arith.constant 0 : i32
    return %arg0, %c0_i32, %c0_i32_0 : i32, i32, i32
  }
  func.func @transform_2(%arg0: i32) -> i32 {
    %c0_i32 = arith.constant 0 : i32
    %c0_i32_0 = arith.constant 0 : i32
    return %c0_i32 : i32
  }
  func.func @transform_3(%arg0: i32) -> i32 {
    %c0_i32 = arith.constant 0 : i32
    %c0_i32_0 = arith.constant 0 : i32
    return %c0_i32 : i32
  }
  func.func @transform_4(%arg0: i32) -> i32 {
    %c0_i32 = arith.constant 0 : i32
    %c0_i32_0 = arith.constant 0 : i32
    return %c0_i32 : i32
  }
  func.func @transform_5(%arg0: i32) -> (i32, i32, i32, i32) {
    %c0_i32 = arith.constant 0 : i32
    %c0_i32_0 = arith.constant 0 : i32
    %c0_i32_1 = arith.constant 0 : i32
    %c0_i32_2 = arith.constant 0 : i32
    return %arg0, %c0_i32, %c0_i32_0, %c0_i32_1 : i32, i32, i32, i32
  }
}

</mosaic_0001>

<bundles_post_ra>
// kernel: tpu_custom_call.1
= control target key start
LH: loop header
LB: loop body
LE: loop exit
PB: predicated region body
PF: predicated region fallthrough
CT: control target
= control target key end

     0   :  { %11 = vsyncpa [#allocation5], 0  ;;  %s5981_s0 = inlined_call_operand.vmem [shape: f32[1,1,16,32], index: 0, kind: input, shape index: {}]   ;;  %s5982_s1 = inlined_call_operand.vmem [shape: f32[1,25,32], index: 1, kind: input, shape index: {}]   ;;  %s5983_s2 = inlined_call_operand.vmem [shape: f32[81], index: 2, kind: input, shape index: {}]   ;;  %s5984_s3 = inlined_call_operand.vmem [shape: f32[9], index: 3, kind: input, shape index: {}]   ;;  %s5985_s4 = inlined_call_operand.<no memory space> [shape: f32[1], index: 4, kind: input, shape index: {}]   ;;  %s5986_s5 = inlined_call_operand.hbm [shape: f32[1,1,16,32], index: 5, kind: output, shape index: {}]  }
   0x1   :  { %12 = vsyncpa [#allocation7], 0 }
   0x2   :  { %13 = vsyncpa [#allocation4], 0  ;;  %s24_s20 = sshll.u32 %s5983_s2, 4  ;;  %s34_s23 = sshll.u32 %s5984_s3, 4  ;;  %s25_s20 = int_to_ptr.vmem [resolvable:$true] %s24_s20  ;;  %s35_s23 = int_to_ptr.vmem [resolvable:$true] %s34_s23 }
   0x3   :  { %s3227_s24 = scalar_lea.vmem %s25_s20, 16  ;;  %p3232_p1 = scmp.lt.s32.totalorder %s25_s20, %s25_s20 }
   0x4   :  { %p3228_p0 = scmp.ne.s32.totalorder %s25_s20, %s3227_s24  ;;  %p3233_p2 = scmp.lt.s32.totalorder %s3227_s24, %s3227_s24 }
   0x6   :  { %p3234_p3 = por %p3233_p2, %p3232_p1 }
   0x8   :  { %p3235_p4 = pnand %p3234_p3, %p3228_p0 }
   0xa   :  { %3238 = shalt.err (!%p3235_p4)
}
   0xb   :  { %s3359_s25 = smov [#allocation3]   ;;  %s3239_s26 = scalar_lea.vmem %s35_s23, 16 }
   0xc   :  { %27 = dma.vmem_to_smem %s25_s20, 16, %s3359_s25, [#allocation5]  }
   0xd   :  { %p3240_p5 = scmp.ne.s32.totalorder %s35_s23, %s3239_s26  ;;  %p3244_p6 = scmp.lt.s32.totalorder %s35_s23, %s35_s23 }
   0xe   :  { %p3245_p7 = scmp.lt.s32.totalorder %s3239_s26, %s3239_s26 }
  0x10   :  { %p3246_p8 = por %p3245_p7, %p3244_p6 }
  0x12   :  { %p3247_p9 = pnand %p3246_p8, %p3240_p5 }
  0x14   :  { %3250 = shalt.err (!%p3247_p9)
}
  0x15   :  { %s3360_s2 = smov [#allocation6]  }
  0x16   :  { %37 = dma.vmem_to_smem %s35_s23, 16, %s3360_s2, [#allocation7]  }
  0x17   :  { %3313 = dma.done.wait [#allocation5], 16  }
  0x18   :  { %3314 = vsyncadd [#allocation5], 4294967280 }
  0x19   :  { %3315 = dma.done.wait [#allocation7], 16  }
  0x1a   :  { %3316 = vsyncadd [#allocation7], 4294967280 }
  0x1b   :  { %46 = sfence }
  0x1c   :  { %v3424_v0 = vld [vmem:[%s5981_s0] sm:$0xff]  ;;  %v3429_v1 = vld [vmem:[%s5981_s0 + $0x8] sm:$0xff]  ;;  %v50_v2 = vlaneseq  ;;  %s3361_s30 = smov 32   ;;  %v6007_v19 = vmov 0.0   ;;  %v3506_v30 = vld [vmem:[%s5982_s1 + $0x10] sm:$0xff]  ;;  %s3364_s14 = smov 1  }
  0x1d   :  { %v204_v3 = vrot.slane %v3429_v1, 7  ;;  %v3435_v5 = vrot.slane %v3424_v0, 7  ;;  %v3438_v6 = vrot.slane %v3429_v1, 1  ;;  %v1419_v7 = vrot.slane %v3424_v0, 6  ;;  %v3501_v29 = vld [vmem:[%s5982_s1 + $0x8] sm:$0xff]  ;;  %v3513_v33 = vld [vmem:[%s5982_s1] sm:$0xff] }
  0x1e   :  { %v3432_v4 = vshrl.u32 %v50_v2, 7  ;;  %v3441_v8 = vand.u32 127, %v50_v2  ;;  %v3444_v9 = vmul.f32 0.0, %v3424_v0  ;;  %v3447_v10 = vmul.f32 0.0, %v3429_v1  ;;  %s4012_s15 = sld [smem:[#allocation3 + $0x1]]  ;;  %s3365_s16 = smov 30  }
  0x1f   :  { %v1461_v11 = vrot.slane %v3429_v1, 2  ;;  %s3008_s17 = sld [smem:[#allocation3 + $0x4]]  ;;  %s3011_s18 = sld [smem:[#allocation3 + $0x7]] }
  0x20   :  { %6140 = vst [vmem:[#allocation12_spill] sm:$0xff] %v3432_v4  ;;  %v67_v12 = vadd.s32 4294967295, %v3432_v4  ;;  %vm205_vm0 = vcmp.lt.s32.totalorder %v3432_v4, 1  ;;  %v52_v13 = vadd.s32 8, %v3432_v4  ;;  %v55_v14 = vadd.s32 4294967294, %v3432_v4  ;;  %s3014_s19 = sld [smem:[#allocation3 + $0xa]] }
  0x21   :  { %v207_v15 = vsel %vm205_vm0, %v204_v3, %v3435_v5  ;;  %v3460_v16 = vsel %vm205_vm0, %v3435_v5, %v204_v3  ;;  %vm147_vm1 = vcmp.eq.s32.totalorder %v3432_v4, 0  ;;  %vm153_vm2 = vcmp.eq.s32.totalorder %v3432_v4, 1  ;;  %s3009_s20 = sld [smem:[#allocation3 + $0x5]]  ;;  %s4166_s21 = sld [smem:[#allocation3 + $0x8]] }
  0x22   :  { %vm69_vm3 = vcmp.ge.s32.totalorder %v67_v12, 0  ;;  %214 = vrot.lane.b32.xlu1 %v3460_v16, %s3361_s30  ;;  %vm57_vm4 = vcmp.ge.s32.totalorder %v55_v14, 0  ;;  %v80_v17 = vadd.s32 1, %v52_v13  ;;  %v92_v18 = vadd.s32 2, %v52_v13  ;;  %s4168_s22 = sld [smem:[#allocation3 + $0x2]]  ;;  %s3015_s23 = sld [smem:[#allocation3 + $0xb]] }
  0x23   :  { %v3467_v20 = vsel %vm69_vm3, 1.0, %v6007_v19  ;;  %v3470_v21 = vsel %vm57_vm4, 1.0, %v6007_v19  ;;  %v3473_v22 = vsel %vm147_vm1, 1.0, %v6007_v19  ;;  %v3476_v23 = vsel %vm153_vm2, 1.0, %v6007_v19  ;;  %s3017_s24 = sld [smem:[#allocation3 + $0xd]]  ;;  %s3366_s25 = smov 99  }
  0x24   :  { %6141 = vst [vmem:[#allocation13_spill] sm:$0xff] %v3467_v20  ;;  %6142 = vst [vmem:[#allocation14_spill] sm:$0xff] %v3470_v21  ;;  %v3479_v24 = vmul.f32 %v3467_v20, %v207_v15  ;;  %vm84_vm5 = vcmp.lt.s32.totalorder %v80_v17, 16  ;;  %vm96_vm6 = vcmp.lt.s32.totalorder %v92_v18, 16  ;;  %vm160_vm7 = vcmp.eq.s32.totalorder %v52_v13, 14  ;;  %s3018_s26 = sld [smem:[#allocation3 + $0xe]] }
  0x25   :  { %6143 = vst [vmem:[#allocation15_spill] sm:$0xff] %v3473_v22  ;;  %6144 = vst [vmem:[#allocation16_spill] sm:$0xff] %v3476_v23  ;;  %v3482_v25 = vsel %vm84_vm5, 1.0, %v6007_v19  ;;  %v3485_v26 = vsel %vm96_vm6, 1.0, %v6007_v19  ;;  %v3488_v27 = vsel %vm160_vm7, 1.0, %v6007_v19  ;;  %vm166_vm8 = vcmp.eq.s32.totalorder %v52_v13, 15 }
  0x26   :  { %6145 = vst [vmem:[#allocation17_spill] sm:$0xff] %v3485_v26  ;;  %6146 = vst [vmem:[#allocation18_spill] sm:$0xff] %v3488_v27  ;;  %211 = vrot.lane.b32.xlu0 %v3479_v24, %s3361_s30  ;;  %v3493_v28 = vsel %vm166_vm8, 1.0, %v6007_v19  ;;  %vm171_vm9 = vcmp.eq.s32.totalorder %v3441_v8, 0  ;;  %vm175_vm10 = vcmp.eq.s32.totalorder %v3441_v8, 16  ;;  %vm253_vm11 = vcmp.lt.s32.totalorder %v3432_v4, 7 }
  0x27   :  { %6147 = vst [vmem:[#allocation19_spill] sm:$0xff] %v3493_v28  ;;  %v2997_v31 = vsel %vm171_vm9, 1.0, %v6007_v19  ;;  %v2998_v32 = vsel %vm175_vm10, 1.0, %v6007_v19  ;;  %v3516_v34 = vsub.s32 1, %v3432_v4  ;;  %v3519_v35 = vsub.s32 3, %v3432_v4  ;;  %s3020_s2 = sld [smem:[#allocation3 + $0x10]] }
  0x28   :  { %v3521_v36 = vadd.f32 %v2998_v32, %v2997_v31  ;;  %v3524_v37 = vsub.s32 4, %v3432_v4  ;;  %v3527_v38 = vsub.s32 6, %v3432_v4  ;;  %v1418_v39 = vmul.f32 %v3485_v26, %v3429_v1  ;;  %s3021_s3 = sld [smem:[#allocation3 + $0x11]]  ;;  %s3024_s27 = sld [smem:[#allocation3 + $0x13]] }
  0x29   :  { %v3533_v40 = vrot.slane %v3501_v29, %v3516_v34  ;;  %v3537_v41 = vrot.slane %v3506_v30, %v3519_v35  ;;  %vm1421_vm12 = vcmp.lt.s32.totalorder %v3432_v4, 2  ;;  %v1425_v42 = vmul.f32 %v3488_v27, %v3429_v1  ;;  %s3025_s28 = sld [smem:[#allocation3 + $0x14]]  ;;  %s3027_s29 = sld [smem:[#allocation3 + $0x16]] }
  0x2a   :  { %v3544_v43 = vrot.slane %v3513_v33, %v3524_v37  ;;  %v3548_v44 = vrot.slane %v3501_v29, %v3527_v38  ;;  %v1420_v45 = vrot.slane %v1418_v39, 6  ;;  %v1426_v46 = vrot.slane %v3444_v9, 7  ;;  %s3030_s6 = sld [smem:[#allocation3 + $0x19]]  ;;  %s3368_s11 = smov 29  }
  0x2b   :  { %6148 = vst [vmem:[#allocation20_spill] sm:$0xff] %v3533_v40  ;;  %6149 = vst [vmem:[#allocation21_spill] sm:$0xff] %v3537_v41  ;;  %v1427_v47 = vrot.slane %v1425_v42, 7  ;;  %v1433_v48 = vmul.f32 %v3493_v28, %v3429_v1  ;;  %v1434_v49 = vrot.slane %v3444_v9, 1  ;;  %v1441_v50 = vmul.f32 %v3482_v25, %v3429_v1  ;;  %s274_s12 = sld [smem:[#allocation3]]  ;;  %s3007_s13 = sld [smem:[#allocation3 + $0x3]] }
  0x2c   :  { %6150 = vst [vmem:[#allocation22_spill] sm:$0xff] %v3544_v43  ;;  %6151 = vst [vmem:[#allocation23_spill] sm:$0xff] %v3548_v44  ;;  %v1423_v51 = vsel %vm1421_vm12, %v1420_v45, %v1419_v7  ;;  %v1448_v52 = vmul.f32 %v3467_v20, %v3424_v0  ;;  %v1454_v53 = vmul.f32 %v3473_v22, %v3424_v0  ;;  %vm1462_vm13 = vcmp.lt.s32.totalorder %v3432_v4, 6  ;;  %s4481_s7 = sld [smem:[#allocation3 + $0x28]]  ;;  %s3054_s8 = sld [smem:[#allocation3 + $0x2e]] }
  0x2d   :  { %v1458_v54 = vmul.f32 %v3470_v21, %v3424_v0  ;;  %v1429_v55 = vsel %vm205_vm0, %v1427_v47, %v1426_v46  ;;  %v1435_v56 = vrot.slane %v1433_v48, 1  ;;  %v1443_v57 = vrot.slane %v1441_v50, 7  ;;  %s3055_s9 = sld [smem:[#allocation3 + $0x2f]] }
  0x2e   :  { %v1430_v58 = vadd.f32 %v1429_v55, %v1423_v51  ;;  %v1450_v59 = vrot.slane %v1448_v52, 1  ;;  %v1465_v61 = vrot.slane %v1454_v53, 7  ;;  %v1466_v2 = vrot.slane %v3447_v10, 7  ;;  %v3603_v51 = vld [vmem:[%s5982_s1 + $0x18] ss:$0 sm:$0xff]  ;;  %s3363_s1 = smov 31  }
  0x2f   :  { %v1460_v60 = vrot.slane %v1458_v54, 2  ;;  %v1436_v62 = vsel %vm253_vm11, %v1434_v49, %v1435_v56  ;;  %v1445_v63 = vsel %vm205_vm0, %v1443_v57, %v3435_v5  ;;  %v1471_v3 = vmul.f32 %v3476_v23, %v3424_v0  ;;  %6152 = vst [vmem:[#allocation24_spill] sm:$0xff] %v3603_v51  ;;  %s4514_s10 = sld [smem:[#allocation3 + $0x37]] }
  0x30   :  { %v3577_v12 = vadd.f32 %v1436_v62, %v1430_v58  ;;  %v3580_v13 = vadd.f32 %v1445_v63, %v3444_v9  ;;  %v1452_v14 = vsel %vm253_vm11, %v1450_v59, %v3438_v6  ;;  %v1468_v18 = vsel %vm205_vm0, %v1466_v2, %v1465_v61 }
  0x31   :  { %v1463_v15 = vsel %vm1462_vm13, %v1460_v60, %v1461_v11  ;;  %v3589_v17 = vadd.f32 %v1454_v53, %v1452_v14  ;;  %v1473_v31 = vrot.slane %v1471_v3, 1  ;;  %v1474_v32 = vrot.slane %v3447_v10, 1 }
  0x32   :  { %v1469_v39 = vadd.f32 %v1468_v18, %v1463_v15  ;;  %v1705_v9 = vmul.f32 %v3577_v12, %v3544_v43  ;;  %v1709_v42 = vmul.f32 %v3580_v13, %v3533_v40  ;;  %v1713_v50 = vmul.f32 %v3548_v44, %v3424_v0 }
  0x33   :  { %v1475_v52 = vsel %vm253_vm11, %v1473_v31, %v1474_v32  ;;  %v1717_v53 = vmul.f32 %v3589_v17, %v3537_v41  ;;  %vm179_vm14 = vcmp.eq.s32.totalorder %v3441_v8, 1  ;;  %vm183_vm15 = vcmp.eq.s32.totalorder %v3441_v8, 17 }
  0x34   :  { %v3611_v54 = vadd.f32 %v1475_v52, %v1469_v39  ;;  %v1711_v55 = vadd.f32 %v1709_v42, %v1705_v9  ;;  %v2999_v58 = vsel %vm179_vm14, 1.0, %v6007_v19  ;;  %v3000_v62 = vsel %vm183_vm15, 1.0, %v6007_v19 }
  0x35   :  { %v3615_v63 = vadd.f32 %v3000_v62, %v2999_v58  ;;  %v1422_v3 = vsel %vm1421_vm12, %v1419_v7, %v1420_v45  ;;  %v1428_v14 = vsel %vm205_vm0, %v1426_v46, %v1427_v47  ;;  %v1437_v15 = vsel %vm253_vm11, %v1435_v56, %v1434_v49 }
  0x36   :  { %v1715_v18 = vadd.f32 %v1713_v50, %v1711_v55  ;;  %v1721_v39 = vmul.f32 %v3603_v51, %v3611_v54  ;;  %v1431_v9 = vadd.f32 %v1428_v14, %v1422_v3  ;;  %v1444_v42 = vsel %vm205_vm0, %v3435_v5, %v1443_v57 }
  0x37   :  { %6153 = vst [vmem:[#allocation25_spill] sm:$0xff] %v3615_v63  ;;  %v3630_v52 = vadd.f32 %v1444_v42, %v1433_v48  ;;  %v1453_v7 = vsel %vm253_vm11, %v3438_v6, %v1450_v59  ;;  %v1464_v45 = vsel %vm1462_vm13, %v1461_v11, %v1460_v60  ;;  %v1467_v46 = vsel %vm205_vm0, %v1465_v61, %v1466_v2 }
  0x38   :  { %v1719_v47 = vadd.f32 %v1717_v53, %v1715_v18  ;;  %v3641_v49 = vadd.f32 %v1437_v15, %v1431_v9  ;;  %v3644_v56 = vadd.f32 %v3447_v10, %v1453_v7  ;;  %v1470_v5 = vadd.f32 %v1467_v46, %v1464_v45 }
  0x39   :  { %v1476_v48 = vsel %vm253_vm11, %v1474_v32, %v1473_v31  ;;  %v1710_v57 = vmul.f32 %v3630_v52, %v3533_v40  ;;  %v1714_v59 = vmul.f32 %v3548_v44, %v3429_v1  ;;  %vm187_vm1 = vcmp.eq.s32.totalorder %v3441_v8, 14 }
  0x3a   :  { %v3653_v11 = vadd.f32 %v1721_v39, %v1719_v47  ;;  %v3655_v60 = vadd.f32 %v1476_v48, %v1470_v5  ;;  %v1706_v10 = vmul.f32 %v3641_v49, %v3544_v43  ;;  %v1718_v61 = vmul.f32 %v3644_v56, %v3537_v41 }
  0x3b   :  { %v3001_v2 = vsel %vm187_vm1, 1.0, %v6007_v19  ;;  %vm191_vm2 = vcmp.eq.s32.totalorder %v3441_v8, 30  ;;  %v3664_v31 = vsub.s32 0, %v3432_v4  ;;  %v3667_v32 = vsub.s32 2, %v3432_v4 }
  0x3c   :  { %v3671_v50 = vmul.f32 %v3653_v11, %v3521_v36  ;;  %v3675_v53 = vmul.f32 %v3653_v11, %v3615_v63  ;;  %v1712_v55 = vadd.f32 %v1710_v57, %v1706_v10  ;;  %v1722_v58 = vmul.f32 %v3603_v51, %v3655_v60 }
  0x3d   :  { %v3002_v62 = vsel %vm191_vm2, 1.0, %v6007_v19  ;;  %v3682_v3 = vrot.slane %v3513_v33, %v3664_v31  ;;  %v3685_v14 = vsub.s32 5, %v3432_v4  ;;  %v3688_v15 = vsub.s32 7, %v3432_v4 }
  0x3e   :  { %1741 = vrot.lane.b32.xlu0 %v3671_v50, %s3361_s30  ;;  %1765 = vrot.lane.b32.xlu1 %v3675_v53, %s3361_s30  ;;  %v1716_v18 = vadd.f32 %v1714_v59, %v1712_v55  ;;  %v3694_v39 = vadd.f32 %v3002_v62, %v3001_v2  ;;  %v3698_v9 = vrot.slane %v3501_v29, %v3667_v32  ;;  %vm195_vm3 = vcmp.eq.s32.totalorder %v3441_v8, 15 }
  0x3f   :  { %6154 = vst [vmem:[#allocation26_spill] sm:$0xff] %v3682_v3  ;;  %v3703_v42 = vrot.slane %v3513_v33, %v3685_v14  ;;  %v3707_v7 = vrot.slane %v3501_v29, %v3688_v15  ;;  %v3711_v45 = vrot.slane %v3506_v30, %v3524_v37  ;;  %v1479_v46 = vmul.f32 %v3577_v12, %v3682_v3 }
  0x40   :  { %6155 = vst [vmem:[#allocation27_spill] sm:$0xff] %v3694_v39  ;;  %6156 = vst [vmem:[#allocation28_spill] sm:$0xff] %v3698_v9  ;;  %v1720_v47 = vadd.f32 %v1718_v61, %v1716_v18  ;;  %v1487_v5 = vmul.f32 %v3698_v9, %v3424_v0  ;;  %v1480_v48 = vmul.f32 %v3641_v49, %v3682_v3  ;;  %v3003_v23 = vsel %vm195_vm3, 1.0, %v6007_v19 }
  0x41   :  { %6157 = vst [vmem:[#allocation29_spill] sm:$0xff] %v3703_v42  ;;  %6158 = vst [vmem:[#allocation30_spill] sm:$0xff] %v3707_v7  ;;  %v1488_v57 = vmul.f32 %v3698_v9, %v3429_v1  ;;  %v1483_v59 = vmul.f32 %v3580_v13, %v3703_v42  ;;  %v1491_v10 = vmul.f32 %v3589_v17, %v3707_v7  ;;  %vm199_vm4 = vcmp.eq.s32.totalorder %v3441_v8, 31 }
  0x42   :  { %6159 = vst [vmem:[#allocation31_spill] sm:$0xff] %v3711_v45  ;;  %v1495_v2 = vmul.f32 %v3611_v54, %v3711_v45  ;;  %v1484_v61 = vmul.f32 %v3630_v52, %v3703_v42  ;;  %v3729_v55 = vadd.f32 %v1722_v58, %v1720_v47  ;;  %v1492_v62 = vmul.f32 %v3644_v56, %v3707_v7 }
  0x43   :  { %v1496_v18 = vmul.f32 %v3655_v60, %v3711_v45  ;;  %v1485_v21 = vadd.f32 %v1483_v59, %v1479_v46  ;;  %vm126_vm5 = vcmp.lt.s32.totalorder %v3441_v8, 15  ;;  %v3004_v26 = vsel %vm199_vm4, 1.0, %v6007_v19 }
  0x44   :  { %v1486_v27 = vadd.f32 %v1484_v61, %v1480_v48  ;;  %v3742_v58 = vmul.f32 %v3729_v55, %v3521_v36  ;;  %v3746_v47 = vmul.f32 %v3729_v55, %v3615_v63  ;;  %v2989_v28 = vsel %vm126_vm5, 1.0, %v6007_v19 }
  0x45   :  { %v1489_v22 = vadd.f32 %v1487_v5, %v1485_v21  ;;  %v3750_v46 = vadd.f32 %v3004_v26, %v3003_v23  ;;  %vm131_vm6 = vcmp.ge.s32.totalorder %v3441_v8, 16  ;;  %vm132_vm7 = vcmp.lt.s32.totalorder %v3441_v8, 31 }
  0x46   :  { %v1490_v51 = vadd.f32 %v1488_v57, %v1486_v27  ;;  %1744 = vrot.lane.b32.xlu0 %v3742_v58, %s3361_s30  ;;  %1768 = vrot.lane.b32.xlu1 %v3746_v47, %s3361_s30  ;;  %v3760_v48 = vrot.slane %v3513_v33, %v3516_v34  ;;  %v3764_v21 = vrot.slane %v3513_v33, %v3527_v38  ;;  %vm133_vm8 = vmand %vm131_vm6, %vm132_vm7  ;;  %vm104_vm9 = vcmp.lt.s32.totalorder %v3441_v8, 16 }
  0x47   :  { %6160 = vst [vmem:[#allocation32_spill] sm:$0xff] %v3750_v46  ;;  %v3768_v23 = vrot.slane %v3501_v29, %v3519_v35  ;;  %v1493_v26 = vadd.f32 %v1491_v10, %v1489_v22  ;;  %v3774_v5 = vrot.slane %v3506_v30, %v3664_v31  ;;  %v3778_v57 = vrot.slane %v3506_v30, %v3685_v14 }
  0x48   :  { %6161 = vst [vmem:[#allocation33_spill] sm:$0xff] %v3760_v48  ;;  %6162 = vst [vmem:[#allocation34_spill] sm:$0xff] %v3764_v21  ;;  %v1494_v27 = vadd.f32 %v1492_v62, %v1490_v51  ;;  %v2990_v59 = vsel %vm133_vm8, 1.0, %v6007_v19  ;;  %v1563_v61 = vmul.f32 %v3577_v12, %v3760_v48  ;;  %v1567_v22 = vmul.f32 %v3580_v13, %v3764_v21 }
  0x49   :  { %6163 = vst [vmem:[#allocation35_spill] sm:$0xff] %v3768_v23  ;;  %6164 = vst [vmem:[#allocation36_spill] sm:$0xff] %v3774_v5  ;;  %v1571_v51 = vmul.f32 %v3768_v23, %v3424_v0  ;;  %v3787_v10 = vadd.f32 %v1495_v2, %v1493_v26  ;;  %v3791_v44 = vadd.f32 %v2990_v59, %v2989_v28  ;;  %vm110_vm10 = vcmp.lt.s32.totalorder %v3441_v8, 32 }
  0x4a   :  { %6165 = vst [vmem:[#allocation37_spill] sm:$0xff] %v3778_v57  ;;  %v3789_v62 = vadd.f32 %v1496_v18, %v1494_v27  ;;  %v1575_v41 = vmul.f32 %v3589_v17, %v3774_v5  ;;  %v1569_v40 = vadd.f32 %v1567_v22, %v1563_v61  ;;  %v1579_v19 = vmul.f32 %v3611_v54, %v3778_v57 }
  0x4b   :  { %6166 = vst [vmem:[#allocation38_spill] sm:$0xff] %v3791_v44  ;;  %v1564_v43 = vmul.f32 %v3641_v49, %v3760_v48  ;;  %v1568_v9 = vmul.f32 %v3630_v52, %v3764_v21  ;;  %v3803_v2 = vmul.f32 %v3787_v10, %v3694_v39  ;;  %v3811_v18 = vmul.f32 %v3787_v10, %v3750_v46 }
  0x4c   :  { %v3807_v28 = vmul.f32 %v3789_v62, %v3694_v39  ;;  %v3815_v26 = vmul.f32 %v3789_v62, %v3750_v46  ;;  %v1573_v27 = vadd.f32 %v1571_v51, %v1569_v40  ;;  %v1572_v61 = vmul.f32 %v3768_v23, %v3429_v1 }
  0x4d   :  { %v1570_v59 = vadd.f32 %v1568_v9, %v1564_v43  ;;  %v1576_v22 = vmul.f32 %v3644_v56, %v3774_v5  ;;  %1515 = vrot.lane.b32.xlu0 %v3803_v2, %s3361_s30  ;;  %v1580_v45 = vmul.f32 %v3655_v60, %v3778_v57  ;;  %vm115_vm14 = vcmp.ge.s32.totalorder %v3441_v8, 1 }
  0x4e   :  { %1518 = vrot.lane.b32.xlu1 %v3807_v28, %s3361_s30  ;;  %v1577_v40 = vadd.f32 %v1575_v41, %v1573_v27  ;;  %vm116_vm15 = vmand %vm115_vm14, %vm104_vm9  ;;  %vm120_vm1 = vcmp.ge.s32.totalorder %v3441_v8, 17  ;;  %v3835_v9 = vrot.slane %v3513_v33, %v3519_v35  ;;  %v3841_v51 = vrot.slane %v3501_v29, %v3664_v31 }
  0x4f   :  { %v1574_v43 = vadd.f32 %v1572_v61, %v1570_v59  ;;  %vm121_vm2 = vmand %vm120_vm1, %vm110_vm10  ;;  %v3845_v41 = vrot.slane %v3501_v29, %v3685_v14  ;;  %v3849_v27 = vrot.slane %v3506_v30, %v3667_v32  ;;  %v3855_v35 = vrot.slane %v3506_v30, %v3688_v15 }
  0x50   :  { %6167 = vst [vmem:[#allocation39_spill] sm:$0xff] %v3835_v9  ;;  %6168 = vst [vmem:[#allocation40_spill] sm:$0xff] %v3841_v51  ;;  %v3851_v59 = vadd.f32 %v1579_v19, %v1577_v40  ;;  %v6172_v31 = vmov 0.0   ;;  %v1649_v7 = vmul.f32 %v3577_v12, %v3835_v9  ;;  %v1653_v19 = vmul.f32 %v3580_v13, %v3841_v51 }
  0x51   :  { %6169 = vst [vmem:[#allocation41_spill] sm:$0xff] %v3845_v41  ;;  %6170 = vst [vmem:[#allocation42_spill] sm:$0xff] %v3849_v27  ;;  %v1578_v61 = vadd.f32 %v1576_v22, %v1574_v43  ;;  %1539 = vrot.lane.b32.xlu0 %v3811_v18, %s3361_s30  ;;  %v2987_v14 = vsel %vm116_vm15, 1.0, %v6172_v31  ;;  %vm103_vm3 = vcmp.ge.s32.totalorder %v3441_v8, 2  ;;  %v2988_v43 = vsel %vm121_vm2, 1.0, %v6172_v31 }
  0x52   :  { %6171 = vst [vmem:[#allocation43_spill] sm:$0xff] %v3855_v35  ;;  %1542 = vrot.lane.b32.xlu1 %v3815_v26, %s3361_s30  ;;  %v3869_v22 = vmul.f32 %v3851_v59, %v3791_v44  ;;  %v1657_v63 = vmul.f32 %v3845_v41, %v3424_v0  ;;  %v1655_v42 = vadd.f32 %v1653_v19, %v1649_v7  ;;  %vm105_vm4 = vmand %vm103_vm3, %vm104_vm9  ;;  %v251_v19 = vrot.slane %v3424_v0, 1 }
  0x53   :  { %v3871_v40 = vadd.f32 %v1580_v45, %v1578_v61  ;;  %v1661_v3 = vmul.f32 %v3589_v17, %v3849_v27  ;;  %v1650_v57 = vmul.f32 %v3641_v49, %v3835_v9  ;;  %v1654_v5 = vmul.f32 %v3630_v52, %v3841_v51 }
  0x54   :  { %v1665_v61 = vmul.f32 %v3611_v54, %v3855_v35  ;;  %v1658_v7 = vmul.f32 %v3845_v41, %v3429_v1  ;;  %v1659_v9 = vadd.f32 %v1657_v63, %v1655_v42  ;;  %v1662_v23 = vmul.f32 %v3644_v56, %v3849_v27 }
  0x55   :  { %v3886_v45 = vmul.f32 %v3871_v40, %v3791_v44  ;;  %1585 = vrot.lane.b32.xlu0 %v3869_v22, %s3361_s30  ;;  %v1656_v51 = vadd.f32 %v1654_v5, %v1650_v57  ;;  %vm109_vm5 = vcmp.ge.s32.totalorder %v3441_v8, 18  ;;  %v3900_v21 = vadd.f32 %v2988_v43, %v2987_v14 }
  0x56   :  { %v2985_v48 = vsel %vm105_vm4, 1.0, %v6172_v31  ;;  %vm111_vm7 = vmand %vm109_vm5, %vm110_vm10  ;;  %vm137_vm8 = vcmp.lt.s32.totalorder %v3441_v8, 14  ;;  %vm142_vm9 = vcmp.lt.s32.totalorder %v3441_v8, 30  ;;  %v1663_v63 = vadd.f32 %v1661_v3, %v1659_v9 }
  0x57   :  { %1588 = vrot.lane.b32.xlu1 %v3886_v45, %s3361_s30  ;;  %6173 = vst [vmem:[#allocation44_spill] sm:$0xff] %v3900_v21  ;;  %v1660_v42 = vadd.f32 %v1658_v7, %v1656_v51  ;;  %v1666_v5 = vmul.f32 %v3655_v60, %v3855_v35  ;;  %v2986_v57 = vsel %vm111_vm7, 1.0, %v6172_v31  ;;  %vm143_vm14 = vmand %vm131_vm6, %vm142_vm9  ;;  %v2991_v14 = vsel %vm137_vm8, 1.0, %v6172_v31 }
  0x58   :  { %v3916_v43 = vsel %vm253_vm11, %v251_v19, %v3438_v6  ;;  %v255_v3 = vsel %vm253_vm11, %v3438_v6, %v251_v19  ;;  %v1667_v9 = vadd.f32 %v1665_v61, %v1663_v63  ;;  %v3921_v7 = vadd.f32 %v2986_v57, %v2985_v48 }
  0x59   :  { %v1664_v51 = vadd.f32 %v1662_v23, %v1660_v42  ;;  %v2992_v35 = vsel %vm143_vm14, 1.0, %v6172_v31  ;;  %v3926_v8 = vrot.slane %v3513_v33, %v3667_v32  ;;  %v3930_v27 = vrot.slane %v3513_v33, %v3688_v15 }
  0x5a   :  { %6174 = vst [vmem:[#allocation45_spill] sm:$0xff] %v3921_v7  ;;  %v3933_v41 = vmul.f32 %v1667_v9, %v3900_v21  ;;  %v3935_v4 = vadd.f32 %v2992_v35, %v2991_v14  ;;  %v3939_v6 = vrot.slane %v3501_v29, %v3524_v37  ;;  %v3943_v48 = vrot.slane %v3506_v30, %v3516_v34 }
  0x5b   :  { %6175 = vst [vmem:[#allocation46_spill] sm:$0xff] %v3926_v8  ;;  %6176 = vst [vmem:[#allocation47_spill] sm:$0xff] %v3930_v27  ;;  %v1668_v39 = vadd.f32 %v1666_v5, %v1664_v51  ;;  %v1620_v32 = vmul.f32 %v3641_v49, %v3926_v8  ;;  %v3954_v15 = vmul.f32 %v3653_v11, %v3921_v7  ;;  %vm210_vm6 = vcmask 1047808  }
  0x5c   :  { %6177 = vst [vmem:[#allocation48_spill] sm:$0xff] %v3935_v4  ;;  %6178 = vst [vmem:[#allocation49_spill] sm:$0xff] %v3939_v6  ;;  %1671 = vrot.lane.b32.xlu0 %v3933_v41, %s3361_s30  ;;  %v3958_v29 = vrot.slane %v3506_v30, %v3527_v38  ;;  %v1624_v34 = vmul.f32 %v3630_v52, %v3930_v27  ;;  %v1628_v37 = vmul.f32 %v3939_v6, %v3429_v1  ;;  %vm1807_vm10 = vcmask 261120  }
  0x5d   :  { %6179 = vst [vmem:[#allocation50_spill] sm:$0xff] %v3943_v48  ;;  %v3950_v33 = vmul.f32 %v1668_v39, %v3900_v21  ;;  %v1619_v49 = vmul.f32 %v3577_v12, %v3926_v8  ;;  %v1623_v23 = vmul.f32 %v3580_v13, %v3930_v27  ;;  %v3972_v11 = vmul.f32 %v3729_v55, %v3921_v7 }
  0x5e   :  { %6180 = vst [vmem:[#allocation51_spill] sm:$0xff] %v3958_v29  ;;  %v1626_v30 = vadd.f32 %v1624_v34, %v1620_v32  ;;  %v1632_v38 = vmul.f32 %v3644_v56, %v3943_v48  ;;  %v1627_v52 = vmul.f32 %v3939_v6, %v3424_v0  ;;  %v3982_v12 = vmul.f32 %v3787_v10, %v3935_v4 }
  0x5f   :  { %1674 = vrot.lane.b32.xlu1 %v3950_v33, %s3361_s30  ;;  %v1625_v35 = vadd.f32 %v1623_v23, %v1619_v49  ;;  %v1636_v55 = vmul.f32 %v3655_v60, %v3958_v29  ;;  %v1631_v31 = vmul.f32 %v3589_v17, %v3943_v48  ;;  %v3992_v56 = vmul.f32 %v3789_v62, %v3935_v4 }
  0x60   :  { %1727 = vrot.lane.b32.xlu0 %v3954_v15, %s3361_s30  ;;  %v1630_v13 = vadd.f32 %v1628_v37, %v1626_v30  ;;  %v1635_v10 = vmul.f32 %v3611_v54, %v3958_v29  ;;  %v1597_v60 = vmul.f32 %v3851_v59, %v3750_v46  ;;  %v1598_v62 = vmul.f32 %v3871_v40, %v3750_v46 }
  0x61   :  { %v1629_v61 = vadd.f32 %v1627_v52, %v1625_v35  ;;  %v1683_v54 = vmul.f32 %v1667_v9, %v3521_v36  ;;  %v1684_v5 = vmul.f32 %v1668_v39, %v3521_v36  ;;  %v4021_v39 = vmul.f32 %v3482_v25, %v255_v3 }
  0x62   :  { %v1634_v19 = vadd.f32 %v1632_v38, %v1630_v13  ;;  %v281_v59 = vstv %s4012_s15  ;;  %s4353_s15 = sld [smem:[#allocation3 + $0x9]] }
  0x63   :  { %1730 = vrot.lane.b32.xlu1 %v3972_v11, %s3361_s30  ;;  %v1633_v63 = vadd.f32 %v1631_v31, %v1629_v61  ;;  %v282_v40 = vmul.f32 %v281_v59, %v3479_v24 }
  0x64   :  { %1501 = vrot.lane.b32.xlu0 %v3982_v12, %s3361_s30  ;;  %v1638_v17 = vadd.f32 %v1636_v55, %v1634_v19 }
  0x65   :  { %v1637_v42 = vadd.f32 %v1635_v10, %v1633_v63 }
  0x67   :  { %1504 = vrot.lane.b32.xlu1 %v3992_v56, %s3361_s30 }
  0x68   :  { %1601 = vrot.lane.b32.xlu0 %v1597_v60, %s3363_s1 }
  0x6b   :  { %1603 = vrot.lane.b32.xlu1 %v1598_v62, %s3363_s1 }
  0x6c   :  { %1687 = vrot.lane.b32.xlu0 %v1683_v54, %s3364_s14 }
  0x6f   :  { %1689 = vrot.lane.b32.xlu1 %v1684_v5, %s3364_s14 }
  0x70   :  { %224 = vrot.lane.b32.xlu0 %v3900_v21, %s3363_s1 }
  0x73   :  { %230 = vrot.lane.b32.xlu1 %v3791_v44, %s3364_s14 }
  0x74   :  { %235 = vrot.lane.b32.xlu0 %v3424_v0, %s3361_s30 }
  0x77   :  { %238 = vrot.lane.b32.xlu1 %v3429_v1, %s3361_s30 }
  0x78   :  { %258 = vrot.lane.b32.xlu0 %v3916_v43, %s3361_s30 }
  0x7b   :  { %261 = vrot.lane.b32.xlu1 %v4021_v39, %s3361_s30 }
  0x7c   :  { %1643 = vrot.lane.b32.xlu0 %v1638_v17, %s3365_s16 }
  0x7f   :  { %1641 = vrot.lane.b32.xlu1 %v1637_v42, %s3365_s16 }
  0x80   :  { %286 = vrot.lane.b32.xlu0 %v282_v40, %s3363_s1 }
  0x94   :  { %v215_v14 = vpop.permute.xlu1 %214 }
  0x95   :  { %v216_v48 = vsel %vm210_vm6, %v215_v14, %v3460_v16 }
  0x98   :  { %v212_v57 = vpop.permute.xlu0 %211 }
  0xb0   :  { %v1742_v3 = vpop.permute.xlu0 %1741  ;;  %v1766_v9 = vpop.permute.xlu1 %1765 }
  0xb8   :  { %v1745_v51 = vpop.permute.xlu0 %1744  ;;  %v1769_v32 = vpop.permute.xlu1 %1768 }
  0xb9   :  { %v1770_v14 = vsel %vm210_vm6, %v1769_v32, %v3746_v47 }
  0xbf   :  { %v4032_v34 = vpop.permute.xlu0 %1515 }
  0xc0   :  { %v4034_v37 = vpop.permute.xlu1 %1518 }
  0xc3   :  { %v4036_v49 = vpop.permute.xlu0 %1539 }
  0xc4   :  { %v4038_v23 = vpop.permute.xlu1 %1542 }
  0xc7   :  { %v4040_v30 = vpop.permute.xlu0 %1585 }
  0xc9   :  { %v4042_v38 = vpop.permute.xlu1 %1588 }
  0xce   :  { %v4044_v52 = vpop.permute.xlu0 %1671 }
  0xd1   :  { %v4046_v35 = vpop.permute.xlu1 %1674 }
  0xd2   :  { %v4048_v13 = vpop.permute.xlu0 %1727 }
  0xd5   :  { %v4050_v55 = vpop.permute.xlu1 %1730 }
  0xd6   :  { %v4052_v31 = vpop.permute.xlu0 %1501 }
  0xd9   :  { %v4054_v61 = vpop.permute.xlu1 %1504 }
  0xda   :  { %v4056_v19 = vpop.permute.xlu0 %1601 }
  0xdd   :  { %v4058_v10 = vpop.permute.xlu1 %1603 }
  0xde   :  { %v4060_v63 = vpop.permute.xlu0 %1687 }
  0xe1   :  { %v4062_v60 = vpop.permute.xlu1 %1689 }
  0xe2   :  { %v4064_v17 = vpop.permute.xlu0 %224 }
  0xe5   :  { %v4066_v42 = vpop.permute.xlu1 %230 }
  0xe6   :  { %v236_v62 = vpop.permute.xlu0 %235 }
  0xe7   :  { %v237_v54 = vsel %vm210_vm6, %v236_v62, %v3424_v0  ;;  %v213_v62 = vsel %vm210_vm6, %v212_v57, %v3479_v24 }
  0xe8   :  { %241 = vrot.lane.b32.xlu0 %v237_v54, %s3361_s30 }
  0xe9   :  { %v239_v5 = vpop.permute.xlu1 %238 }
  0xea   :  { %v240_v40 = vsel %vm210_vm6, %v239_v5, %v3429_v1  ;;  %v259_v7 = vpop.permute.xlu0 %258  ;;  %v283_v5 = vmul.f32 %v281_v59, %v3460_v16 }
  0xeb   :  { %243 = vrot.lane.b32.xlu1 %v240_v40, %s3361_s30  ;;  %v260_v21 = vsel %vm210_vm6, %v259_v7, %v3916_v43  ;;  %v1746_v7 = vsel %vm210_vm6, %v1745_v51, %v3742_v58  ;;  %v391_v40 = vstv %s3014_s19  ;;  %s4371_s19 = sld [smem:[#allocation3 + $0x1c]] }
  0xec   :  { %264 = vrot.lane.b32.xlu0 %v260_v21, %s3361_s30  ;;  %v1743_v21 = vsel %vm210_vm6, %v1742_v3, %v3671_v50  ;;  %v349_v3 = vstv %s3011_s18  ;;  %v393_v59 = vmul.f32 %v391_v40, %v3460_v16  ;;  %s4369_s18 = sld [smem:[#allocation3 + $0x1a]] }
  0xed   :  { %v262_v29 = vpop.permute.xlu1 %261  ;;  %v350_v51 = vmul.f32 %v349_v3, %v3916_v43  ;;  %v351_v32 = vmul.f32 %v349_v3, %v4021_v39 }
  0xee   :  { %v263_v54 = vsel %vm210_vm6, %v262_v29, %v4021_v39  ;;  %v1767_v29 = vsel %vm210_vm6, %v1766_v9, %v3675_v53 }
  0xef   :  { %219 = vrot.lane.b32.xlu1 %v216_v48, %s3361_s30  ;;  %v315_v48 = vstv %s3008_s17  ;;  %s4362_s17 = sld [smem:[#allocation3 + $0xc]] }
  0xf0   :  { %217 = vrot.lane.b32.xlu0 %v213_v62, %s3361_s30  ;;  %v316_v57 = vmul.f32 %v315_v48, %v3424_v0  ;;  %v317_v9 = vmul.f32 %v315_v48, %v3429_v1  ;;  %v392_v62 = vmul.f32 %v391_v40, %v3479_v24  ;;  %v1544_v48 = vsel %vm210_vm6, %v4038_v23, %v3815_v26 }
  0xf1   :  { %v1676_v23 = vsel %vm210_vm6, %v4046_v35, %v3950_v33  ;;  %v4160_v35 = vpop.permute.xlu0 %1643 }
  0xf3   :  { %266 = vrot.lane.b32.xlu1 %v263_v54, %s3361_s30  ;;  %v1517_v54 = vsel %vm210_vm6, %v4032_v34, %v3803_v2  ;;  %v1587_v34 = vsel %vm210_vm6, %v4040_v30, %v3869_v22  ;;  %v1729_v30 = vsel %vm210_vm6, %v4048_v13, %v3954_v15  ;;  %v1503_v13 = vsel %vm210_vm6, %v4052_v31, %v3982_v12 }
  0xf4   :  { %1747 = vrot.lane.b32.xlu0 %v1743_v21, %s3361_s30  ;;  %v1541_v21 = vsel %vm210_vm6, %v4036_v49, %v3811_v18  ;;  %v1673_v49 = vsel %vm210_vm6, %v4044_v52, %v3933_v41  ;;  %v1506_v52 = vsel %vm210_vm6, %v4054_v61, %v3992_v56  ;;  %v4164_v61 = vpop.permute.xlu1 %1641  ;;  %v329_v31 = vstv %s3009_s20  ;;  %s4382_s20 = sld [smem:[#allocation3 + $0xf]] }
  0xf7   :  { %1749 = vrot.lane.b32.xlu1 %v1746_v7, %s3361_s30  ;;  %v1520_v7 = vsel %vm210_vm6, %v4034_v37, %v3807_v28  ;;  %v1590_v37 = vsel %vm210_vm6, %v4042_v38, %v3886_v45  ;;  %v1732_v38 = vsel %vm210_vm6, %v4050_v55, %v3972_v11 }
  0xf8   :  { %1771 = vrot.lane.b32.xlu0 %v1767_v29, %s3361_s30  ;;  %v4162_v29 = vpop.permute.xlu0 %286 }
  0xfb   :  { %1773 = vrot.lane.b32.xlu1 %v1770_v14, %s3361_s30 }
  0xfc   :  { %320 = vrot.lane.b32.xlu0 %v316_v57, %s3363_s1 }
  0xff   :  { %288 = vrot.lane.b32.xlu1 %v283_v5, %s3363_s1 }
 0x100   :  { %354 = vrot.lane.b32.xlu0 %v350_v51, %s3363_s1 }
 0x103   :  { %322 = vrot.lane.b32.xlu1 %v317_v9, %s3363_s1 }
 0x104   :  { %396 = vrot.lane.b32.xlu0 %v392_v62, %s3363_s1 }
 0x107   :  { %356 = vrot.lane.b32.xlu1 %v351_v32, %s3363_s1  ;;  %v363_v32 = vstv %s4166_s21  ;;  %s4385_s21 = sld [smem:[#allocation3 + $0x1d]] }
 0x108   :  { %1521 = vrot.lane.b32.xlu0 %v1517_v54, %s3361_s30 }
 0x10b   :  { %398 = vrot.lane.b32.xlu1 %v393_v59, %s3363_s1 }
 0x10c   :  { %1545 = vrot.lane.b32.xlu0 %v1541_v21, %s3361_s30 }
 0x10f   :  { %1523 = vrot.lane.b32.xlu1 %v1520_v7, %s3361_s30 }
 0x110   :  { %1591 = vrot.lane.b32.xlu0 %v1587_v34, %s3361_s30  ;;  %v295_v34 = vstv %s4168_s22  ;;  %s3369_s22 = smov 28  }
 0x113   :  { %1547 = vrot.lane.b32.xlu1 %v1544_v48, %s3361_s30 }
 0x114   :  { %1677 = vrot.lane.b32.xlu0 %v1673_v49, %s3361_s30 }
 0x117   :  { %1593 = vrot.lane.b32.xlu1 %v1590_v37, %s3361_s30 }
 0x118   :  { %1733 = vrot.lane.b32.xlu0 %v1729_v30, %s3361_s30 }
 0x11b   :  { %1679 = vrot.lane.b32.xlu1 %v1676_v23, %s3361_s30 }
 0x11c   :  { %1509 = vrot.lane.b32.xlu0 %v1506_v52, %s3361_s30 }
 0x11f   :  { %1735 = vrot.lane.b32.xlu1 %v1732_v38, %s3361_s30 }
 0x123   :  { %1507 = vrot.lane.b32.xlu1 %v1503_v13, %s3361_s30  ;;  %s3028_s30 = sld [smem:[#allocation3 + $0x17]] }
 0x15a   :  { %v242_v55 = vpop.permute.xlu0 %241 }
 0x15b   :  { %v4172_v57 = vsel %vm210_vm6, %v242_v55, %v3424_v0 }
 0x15c   :  { %v4176_v14 = vmul.f32 %v4172_v57, %v4066_v42 }
 0x15d   :  { %v244_v3 = vpop.permute.xlu1 %243 }
 0x15e   :  { %v4180_v5 = vsel %vm210_vm6, %v244_v3, %v3429_v1  ;;  %v265_v40 = vpop.permute.xlu0 %264  ;;  %v330_v9 = vmul.f32 %v329_v31, %v4176_v14 }
 0x15f   :  { %v4184_v51 = vmul.f32 %v4180_v5, %v4066_v42  ;;  %v4189_v62 = vsel %vm210_vm6, %v265_v40, %v3916_v43 }
 0x160   :  { %v4194_v59 = vmul.f32 %v4189_v62, %v4066_v42  ;;  %334 = vrot.lane.b32.xlu0 %v330_v9, %s3365_s16 }
 0x161   :  { %v220_v54 = vpop.permute.xlu1 %219  ;;  %v331_v21 = vmul.f32 %v329_v31, %v4184_v51 }
 0x162   :  { %v4200_v7 = vsel %vm210_vm6, %v220_v54, %v3460_v16  ;;  %v218_v49 = vpop.permute.xlu0 %217  ;;  %v364_v37 = vmul.f32 %v363_v32, %v4194_v59 }
 0x163   :  { %v4205_v48 = vmul.f32 %v4066_v42, %v4200_v7  ;;  %336 = vrot.lane.b32.xlu1 %v331_v21, %s3365_s16  ;;  %v4211_v30 = vsel %vm210_vm6, %v218_v49, %v3479_v24 }
 0x164   :  { %v4215_v23 = vmul.f32 %v4066_v42, %v4211_v30  ;;  %368 = vrot.lane.b32.xlu0 %v364_v37, %s3365_s16  ;;  %v405_v37 = vstv %s3015_s23  ;;  %s4391_s23 = sld [smem:[#allocation3 + $0x1f]] }
 0x165   :  { %v267_v52 = vpop.permute.xlu1 %266  ;;  %v297_v38 = vmul.f32 %v295_v34, %v4205_v48 }
 0x166   :  { %v4221_v13 = vsel %vm210_vm6, %v267_v52, %v4021_v39  ;;  %v1748_v31 = vpop.permute.xlu0 %1747  ;;  %v296_v3 = vmul.f32 %v295_v34, %v4215_v23  ;;  %v425_v52 = vstv %s3017_s24  ;;  %s4404_s24 = sld [smem:[#allocation3 + $0x20]] }
 0x167   :  { %v4225_v55 = vmul.f32 %v4221_v13, %v4066_v42  ;;  %302 = vrot.lane.b32.xlu1 %v297_v38, %s3365_s16  ;;  %v1751_v54 = vsel %vm210_vm6, %v1748_v31, %v3671_v50  ;;  %v406_v50 = vmul.f32 %v405_v37, %v4215_v23  ;;  %v426_v38 = vmul.f32 %v425_v52, %v3424_v0 }
 0x168   :  { %300 = vrot.lane.b32.xlu0 %v296_v3, %s3365_s16  ;;  %v427_v31 = vmul.f32 %v425_v52, %v3429_v1  ;;  %v459_v3 = vstv %s3020_s2  ;;  %s4413_s2 = sld [smem:[#allocation6 + $0x1]] }
 0x169   :  { %v1750_v40 = vpop.permute.xlu1 %1749  ;;  %v365_v9 = vmul.f32 %v363_v32, %v4225_v55  ;;  %v461_v1 = vmul.f32 %v459_v3, %v4021_v39 }
 0x16a   :  { %v1772_v21 = vpop.permute.xlu0 %1771  ;;  %v1752_v42 = vsel %vm210_vm6, %v1750_v40, %v3742_v58  ;;  %v407_v58 = vmul.f32 %v405_v37, %v4205_v48 }
 0x16b   :  { %370 = vrot.lane.b32.xlu1 %v365_v9, %s3365_s16  ;;  %v1775_v34 = vsel %vm210_vm6, %v1772_v21, %v3675_v53 }
 0x16c   :  { %1755 = vrot.lane.b32.xlu0 %v1751_v54, %s3366_s25  ;;  %v460_v54 = vmul.f32 %v459_v3, %v3916_v43 }
 0x16d   :  { %v1774_v49 = vpop.permute.xlu1 %1773 }
 0x16e   :  { %v1776_v32 = vsel %vm210_vm6, %v1774_v49, %v3746_v47  ;;  %v439_v47 = vstv %s3018_s26  ;;  %v4258_v21 = vpop.permute.xlu0 %320  ;;  %v501_v49 = vstv %s3024_s27  ;;  %s4409_s26 = sld [smem:[#allocation3 + $0x12]]  ;;  %s4429_s27 = sld [smem:[#allocation3 + $0x23]] }
 0x16f   :  { %1757 = vrot.lane.b32.xlu1 %v1752_v42, %s3366_s25  ;;  %v440_v40 = vmul.f32 %v439_v47, %v4176_v14  ;;  %v441_v0 = vmul.f32 %v439_v47, %v4184_v51  ;;  %v473_v42 = vstv %s3021_s3  ;;  %v535_v47 = vstv %s3027_s29  ;;  %s4406_s25 = sld [smem:[#allocation6]]  ;;  %s4415_s3 = sld [smem:[#allocation3 + $0x22]] }
 0x170   :  { %1779 = vrot.lane.b32.xlu0 %v1775_v34, %s3364_s14  ;;  %v475_v52 = vmul.f32 %v473_v42, %v4225_v55  ;;  %s4439_s29 = sld [smem:[#allocation3 + $0x25]] }
 0x171   :  { %v4246_v53 = vpop.permute.xlu1 %288 }
 0x172   :  { %v4267_v37 = vpop.permute.xlu0 %354 }
 0x173   :  { %1781 = vrot.lane.b32.xlu1 %v1776_v32, %s3364_s14  ;;  %v474_v32 = vmul.f32 %v473_v42, %v4194_v59  ;;  %s3010_s14 = sld [smem:[#allocation3 + $0x6]] }
 0x174   :  { %410 = vrot.lane.b32.xlu0 %v406_v50, %s3365_s16  ;;  %v502_v50 = vmul.f32 %v501_v49, %v3479_v24 }
 0x175   :  { %v4253_v9 = vpop.permute.xlu1 %322 }
 0x176   :  { %v4277_v3 = vpop.permute.xlu0 %396 }
 0x177   :  { %412 = vrot.lane.b32.xlu1 %v407_v58, %s3365_s16  ;;  %v503_v58 = vmul.f32 %v501_v49, %v3460_v16  ;;  %v4293_v49 = vld [vmem:[%s5981_s0 + $0x8] sm:$0xff] }
 0x178   :  { %430 = vrot.lane.b32.xlu0 %v426_v38, %s3363_s1 }
 0x179   :  { %v4263_v34 = vpop.permute.xlu1 %356 }
 0x17b   :  { %432 = vrot.lane.b32.xlu1 %v427_v31, %s3363_s1  ;;  %v515_v31 = vstv %s3025_s28  ;;  %s4431_s28 = sld [smem:[#allocation3 + $0x15]] }
 0x17c   :  { %444 = vrot.lane.b32.xlu0 %v440_v40, %s3365_s16  ;;  %v516_v40 = vmul.f32 %v515_v31, %v4215_v23 }
 0x17d   :  { %v4274_v38 = vpop.permute.xlu1 %398 }
 0x17f   :  { %446 = vrot.lane.b32.xlu1 %v441_v0, %s3365_s16  ;;  %v517_v0 = vmul.f32 %v515_v31, %v4205_v48 }
 0x180   :  { %464 = vrot.lane.b32.xlu0 %v460_v54, %s3363_s1  ;;  %v4286_v54 = vld [vmem:[%s5981_s0] sm:$0xff]  ;;  %s3367_s0 = smov 127  }
 0x181   :  { %v1524_v42 = vpop.permute.xlu1 %1523 }
 0x183   :  { %466 = vrot.lane.b32.xlu1 %v461_v1, %s3363_s1  ;;  %v536_v1 = vmul.f32 %v4286_v54, %v535_v47 }
 0x184   :  { %478 = vrot.lane.b32.xlu0 %v474_v32, %s3365_s16  ;;  %v537_v32 = vmul.f32 %v4293_v49, %v535_v47 }
 0x187   :  { %480 = vrot.lane.b32.xlu1 %v475_v52, %s3365_s16  ;;  %v549_v52 = vstv %s3028_s30  ;;  %s4461_s30 = sld [smem:[#allocation3 + $0x18]] }
 0x188   :  { %506 = vrot.lane.b32.xlu0 %v502_v50, %s3363_s1  ;;  %v1522_v50 = vpop.permute.xlu0 %1521  ;;  %v550_v31 = vmul.f32 %v549_v52, %v4176_v14 }
 0x18b   :  { %508 = vrot.lane.b32.xlu1 %v503_v58, %s3363_s1  ;;  %v569_v58 = vstv %s3030_s6  ;;  %s4471_s6 = sld [smem:[#allocation3 + $0x26]] }
 0x18c   :  { %520 = vrot.lane.b32.xlu0 %v516_v40, %s3365_s16  ;;  %v1548_v40 = vpop.permute.xlu1 %1547  ;;  %v570_v6 = vmul.f32 %v569_v58, %v3916_v43  ;;  %v1546_v27 = vpop.permute.xlu0 %1545  ;;  %v571_v47 = vmul.f32 %v569_v58, %v4021_v39 }
 0x18d   :  { %v1550_v58 = vsel %vm210_vm6, %v1548_v40, %v3815_v26  ;;  %v4340_v40 = vmul.f32 %v4180_v5, %v4064_v17 }
 0x18f   :  { %522 = vrot.lane.b32.xlu1 %v517_v0, %s3365_s16  ;;  %v551_v0 = vmul.f32 %v549_v52, %v4184_v51  ;;  %v1525_v52 = vsel %vm210_vm6, %v1522_v50, %v3803_v2 }
 0x190   :  { %540 = vrot.lane.b32.xlu0 %v536_v1, %s3363_s1  ;;  %v1594_v1 = vpop.permute.xlu1 %1593  ;;  %v1592_v8 = vpop.permute.xlu0 %1591 }
 0x193   :  { %542 = vrot.lane.b32.xlu1 %v537_v32, %s3363_s1  ;;  %v1526_v32 = vsel %vm210_vm6, %v1524_v42, %v3807_v28  ;;  %v1549_v28 = vsel %vm210_vm6, %v1546_v27, %v3811_v18 }
 0x194   :  { %554 = vrot.lane.b32.xlu0 %v550_v31, %s3365_s16  ;;  %v1596_v31 = vsel %vm210_vm6, %v1594_v1, %v3886_v45  ;;  %v1678_v42 = vpop.permute.xlu0 %1677 }
 0x195   :  { %v1681_v26 = vsel %vm210_vm6, %v1678_v42, %v3933_v41  ;;  %v4336_v41 = vmul.f32 %v4064_v17, %v4211_v30  ;;  %v4357_v42 = vmul.f32 %v4221_v13, %v4064_v17 }
 0x197   :  { %556 = vrot.lane.b32.xlu1 %v551_v0, %s3365_s16  ;;  %v1595_v0 = vsel %vm210_vm6, %v1592_v8, %v3869_v22  ;;  %v1693_v22 = vadd.f32 %v4060_v63, %v1681_v26 }
 0x198   :  { %574 = vrot.lane.b32.xlu0 %v570_v6, %s3363_s1  ;;  %v1680_v6 = vpop.permute.xlu1 %1679  ;;  %v1607_v45 = vadd.f32 %v4056_v19, %v1595_v0  ;;  %v1734_v18 = vpop.permute.xlu0 %1733  ;;  %v4332_v19 = vmul.f32 %v4064_v17, %v4200_v7  ;;  %v4348_v7 = vmul.f32 %v4172_v57, %v4064_v17 }
 0x199   :  { %v1682_v2 = vsel %vm210_vm6, %v1680_v6, %v3950_v33 }
 0x19a   :  { %v1694_v50 = vadd.f32 %v4062_v60, %v1682_v2 }
 0x19b   :  { %576 = vrot.lane.b32.xlu1 %v571_v47, %s3363_s1  ;;  %v1608_v47 = vadd.f32 %v4058_v10, %v1596_v31  ;;  %v275_v10 = vstv %s274_s12  ;;  %v309_v31 = vstv %s3007_s13  ;;  %s4522_s12 = sld [smem:[#allocation3 + $0x29]]  ;;  %s4526_s13 = sld [smem:[#allocation3 + $0x1e]] }
 0x19c   :  { %1531 = vrot.lane.b32.xlu0 %v1526_v32, %s3367_s0  ;;  %v1736_v27 = vpop.permute.xlu1 %1735  ;;  %v4326_v8 = vpop.permute.xlu0 %1509  ;;  %v277_v1 = vmul.f32 %v275_v10, %v4332_v19  ;;  %v276_v32 = vmul.f32 %v275_v10, %v4336_v41  ;;  %v311_v6 = vmul.f32 %v309_v31, %v4340_v40  ;;  %v310_v2 = vmul.f32 %v309_v31, %v4348_v7 }
 0x19e   :  { %v293_v30 = vadd.f32 %v4246_v53, %v277_v1  ;;  %v292_v5 = vadd.f32 %v4162_v29, %v276_v32  ;;  %v4366_v53 = vmul.f32 %v4189_v62, %v4064_v17  ;;  %v1737_v62 = vsel %vm210_vm6, %v1734_v18, %v3954_v15 }
 0x19f   :  { %1529 = vrot.lane.b32.xlu1 %v1525_v52, %s3367_s0  ;;  %v419_v18 = vstv %s4362_s17  ;;  %s4547_s17 = sld [smem:[#allocation3 + $0x38]] }
 0x1a0   :  { %1555 = vrot.lane.b32.xlu0 %v1550_v58, %s3368_s11  ;;  %v4328_v33 = vpop.permute.xlu1 %1507 }
 0x1a3   :  { %1553 = vrot.lane.b32.xlu1 %v1549_v28, %s3368_s11 }
 0x1a4   :  { %1613 = vrot.lane.b32.xlu0 %v1608_v47, %s3367_s0 }
 0x1a7   :  { %1611 = vrot.lane.b32.xlu1 %v1607_v45, %s3367_s0  ;;  %s4517_s0 = sld [smem:[#allocation6 + $0x2]] }
 0x1a8   :  { %1699 = vrot.lane.b32.xlu0 %v1694_v50, %s3368_s11  ;;  %v343_v50 = vstv %s3010_s14  ;;  %s4529_s14 = sld [smem:[#allocation3 + $0x31]] }
 0x1a9   :  { %v345_v1 = vmul.f32 %v343_v50, %v4357_v42 }
 0x1ab   :  { %1697 = vrot.lane.b32.xlu1 %v1693_v22, %s3368_s11  ;;  %s4519_s11 = sld [smem:[#allocation3 + $0x1b]] }
 0x1d2   :  { %v335_v63 = vpop.permute.xlu0 %334 }
 0x1d5   :  { %v337_v60 = vpop.permute.xlu1 %336 }
 0x1d6   :  { %v4344_v52 = vpop.permute.xlu0 %368 }
 0x1d9   :  { %v303_v58 = vpop.permute.xlu1 %302 }
 0x1da   :  { %v307_v0 = vadd.f32 %v303_v58, %v293_v30  ;;  %v301_v28 = vpop.permute.xlu0 %300 }
 0x1db   :  { %v306_v57 = vadd.f32 %v301_v28, %v292_v5 }
 0x1dc   :  { %v313_v47 = vadd.f32 %v311_v6, %v307_v0  ;;  %v385_v6 = vstv %s4353_s15  ;;  %v1738_v0 = vsel %vm210_vm6, %v1736_v27, %v3972_v11  ;;  %v583_v27 = vstv %s4369_s18  ;;  %s3370_s15 = smov 98   ;;  %s4549_s18 = sld [smem:[#allocation3 + $0x41]] }
 0x1dd   :  { %v4360_v45 = vpop.permute.xlu1 %370  ;;  %v312_v26 = vadd.f32 %v310_v2, %v306_v57  ;;  %v387_v2 = vmul.f32 %v385_v6, %v4332_v19 }
 0x1de   :  { %v327_v29 = vadd.f32 %v4253_v9, %v313_v47  ;;  %v1756_v22 = vpop.permute.xlu0 %1755  ;;  %v344_v9 = vmul.f32 %v343_v50, %v4366_v53 }
 0x1df   :  { %v326_v13 = vadd.f32 %v4258_v21, %v312_v26  ;;  %v1761_v58 = vadd.f32 %v1756_v22, %v1737_v62  ;;  %v386_v21 = vmul.f32 %v385_v6, %v4336_v41  ;;  %v403_v26 = vadd.f32 %v4274_v38, %v387_v2 }
 0x1e0   :  { %v341_v10 = vadd.f32 %v337_v60, %v327_v29  ;;  %v611_v29 = vstv %s4371_s19  ;;  %v585_v22 = vmul.f32 %v583_v27, %v4225_v55  ;;  %v584_v62 = vmul.f32 %v583_v27, %v4194_v59  ;;  %s4561_s19 = sld [smem:[#allocation3 + $0x49]] }
 0x1e1   :  { %v1758_v32 = vpop.permute.xlu1 %1757  ;;  %v340_v31 = vadd.f32 %v335_v63, %v326_v13  ;;  %v402_v63 = vadd.f32 %v4277_v3, %v386_v21  ;;  %v420_v3 = vmul.f32 %v419_v18, %v4348_v7  ;;  %v613_v38 = vmul.f32 %v611_v29, %v3460_v16 }
 0x1e2   :  { %v347_v30 = vadd.f32 %v345_v1, %v341_v10  ;;  %v1780_v5 = vpop.permute.xlu0 %1779  ;;  %v1762_v28 = vadd.f32 %v1758_v32, %v1738_v0  ;;  %v421_v10 = vmul.f32 %v419_v18, %v4340_v40  ;;  %v612_v6 = vmul.f32 %v611_v29, %v3479_v24 }
 0x1e3   :  { %v346_v60 = vadd.f32 %v344_v9, %v340_v31  ;;  %v1785_v47 = vadd.f32 %v1780_v5, %v1761_v58  ;;  %v453_v0 = vstv %s4382_s20  ;;  %v625_v21 = vstv %s4385_s21  ;;  %s4571_s20 = sld [smem:[#allocation3 + $0x21]]  ;;  %s4573_s21 = sld [smem:[#allocation3 + $0x40]] }
 0x1e4   :  { %v626_v27 = vmul.f32 %v625_v21, %v4215_v23  ;;  %v455_v29 = vmul.f32 %v453_v0, %v4357_v42 }
 0x1e5   :  { %v1782_v15 = vpop.permute.xlu1 %1781  ;;  %1789 = vrot.lane.b32.xlu1 %v1785_v47, %s3369_s22  ;;  %v454_v47 = vmul.f32 %v453_v0, %v4366_v53  ;;  %v360_v18 = vadd.f32 %v4267_v37, %v346_v60 }
 0x1e6   :  { %v1786_v57 = vadd.f32 %v1782_v15, %v1762_v28  ;;  %v411_v11 = vpop.permute.xlu0 %410  ;;  %v645_v15 = vstv %s4391_s23  ;;  %s4592_s23 = sld [smem:[#allocation3 + $0x3a]] }
 0x1e7   :  { %v416_v50 = vadd.f32 %v411_v11, %v402_v63  ;;  %v647_v60 = vmul.f32 %v4293_v49, %v645_v15 }
 0x1e8   :  { %1791 = vrot.lane.b32.xlu0 %v1786_v57, %s3369_s22  ;;  %v627_v57 = vmul.f32 %v625_v21, %v4205_v48  ;;  %s4587_s22 = sld [smem:[#allocation3 + $0x32]] }
 0x1e9   :  { %v413_v13 = vpop.permute.xlu1 %412  ;;  %590 = vrot.lane.b32.xlu1 %v585_v22, %s3365_s16  ;;  %v422_v32 = vadd.f32 %v420_v3, %v416_v50  ;;  %v374_v3 = vadd.f32 %v4344_v52, %v360_v18  ;;  %v495_v52 = vstv %s4409_s26  ;;  %s4613_s26 = sld [smem:[#allocation3 + $0x4a]] }
 0x1ea   :  { %v417_v1 = vadd.f32 %v413_v13, %v403_v26  ;;  %v431_v31 = vpop.permute.xlu0 %430  ;;  %v361_v26 = vadd.f32 %v4263_v34, %v347_v30  ;;  %v659_v30 = vstv %s4404_s24  ;;  %s4600_s24 = sld [smem:[#allocation6 + $0x3]] }
 0x1eb   :  { %v436_v9 = vadd.f32 %v431_v31, %v422_v32  ;;  %v377_v32 = vstv %s4406_s25  ;;  %s4602_s25 = sld [smem:[#allocation3 + $0x24]] }
 0x1ec   :  { %588 = vrot.lane.b32.xlu0 %v584_v62, %s3365_s16  ;;  %v423_v58 = vadd.f32 %v421_v10, %v417_v1  ;;  %v646_v1 = vmul.f32 %v4286_v54, %v645_v15  ;;  %v375_v62 = vadd.f32 %v4360_v45, %v361_v26  ;;  %v660_v45 = vmul.f32 %v659_v30, %v4176_v14 }
 0x1ed   :  { %v433_v5 = vpop.permute.xlu1 %432  ;;  %618 = vrot.lane.b32.xlu1 %v613_v38, %s3363_s1  ;;  %v487_v38 = vstv %s4413_s2  ;;  %s4618_s2 = sld [smem:[#allocation3 + $0x2b]] }
 0x1ee   :  { %v445_v28 = vpop.permute.xlu0 %444  ;;  %v437_v63 = vadd.f32 %v433_v5, %v423_v58  ;;  %v4441_v58 = vadd.f32 %v377_v32, %v374_v3  ;;  %v661_v5 = vmul.f32 %v659_v30, %v4184_v51  ;;  %v721_v30 = vstv %s4439_s29  ;;  %s4671_s29 = sld [smem:[#allocation3 + $0x2d]] }
 0x1ef   :  { %v450_v2 = vadd.f32 %v445_v28, %v436_v9  ;;  %v679_v9 = vstv %s4415_s3  ;;  %v496_v28 = vmul.f32 %v495_v52, %v4336_v41  ;;  %s4620_s3 = sld [smem:[#allocation3 + $0x27]] }
 0x1f0   :  { %616 = vrot.lane.b32.xlu0 %v612_v6, %s3363_s1 }
 0x1f1   :  { %v447_v11 = vpop.permute.xlu1 %446  ;;  %632 = vrot.lane.b32.xlu1 %v627_v57, %s3365_s16  ;;  %v456_v37 = vadd.f32 %v454_v47, %v450_v2  ;;  %v4447_v47 = vadd.f32 %v377_v32, %v375_v62  ;;  %v680_v57 = vmul.f32 %v679_v9, %v3916_v43 }
 0x1f2   :  { %v451_v50 = vadd.f32 %v447_v11, %v437_v63  ;;  %v465_v22 = vpop.permute.xlu0 %464  ;;  %v681_v63 = vmul.f32 %v679_v9, %v4021_v39  ;;  %v380_v11 = vand.u32 2147483647, %v4441_v58 }
 0x1f3   :  { %v470_v13 = vadd.f32 %v465_v22, %v456_v37  ;;  %v693_v37 = vstv %s4429_s27  ;;  %v381_v22 = vand.u32 2147483647, %v4447_v47  ;;  %s4639_s27 = sld [smem:[#allocation3 + $0x3b]] }
 0x1f4   :  { %630 = vrot.lane.b32.xlu0 %v626_v27, %s3365_s16  ;;  %v457_v10 = vadd.f32 %v455_v29, %v451_v50 }
 0x1f5   :  { %v467_v34 = vpop.permute.xlu1 %466  ;;  %652 = vrot.lane.b32.xlu1 %v647_v60, %s3363_s1  ;;  %v529_v60 = vstv %s4431_s28  ;;  %s4653_s28 = sld [smem:[#allocation3 + $0x43]] }
 0x1f6   :  { %v479_v31 = vpop.permute.xlu0 %478  ;;  %v471_v6 = vadd.f32 %v467_v34, %v457_v10  ;;  %v497_v10 = vmul.f32 %v495_v52, %v4332_v19  ;;  %v695_v34 = vmul.f32 %v693_v37, %v4225_v55  ;;  %v694_v52 = vmul.f32 %v693_v37, %v4194_v59 }
 0x1f7   :  { %v484_v0 = vadd.f32 %v479_v31, %v470_v13  ;;  %v530_v31 = vmul.f32 %v529_v60, %v4348_v7 }
 0x1f8   :  { %650 = vrot.lane.b32.xlu0 %v646_v1, %s3363_s1 }
 0x1f9   :  { %v481_v21 = vpop.permute.xlu1 %480  ;;  %v4449_v15 = vadd.f32 %v487_v38, %v484_v0  ;;  %666 = vrot.lane.b32.xlu1 %v661_v5, %s3365_s16  ;;  %v531_v5 = vmul.f32 %v529_v60, %v4340_v40 }
 0x1fa   :  { %v485_v18 = vadd.f32 %v481_v21, %v471_v6  ;;  %v507_v2 = vpop.permute.xlu0 %506  ;;  %v723_v21 = vmul.f32 %v721_v30, %v3460_v16 }
 0x1fb   :  { %v490_v27 = vand.u32 2147483647, %v4449_v15  ;;  %v512_v26 = vadd.f32 %v507_v2, %v496_v28 }
 0x1fc   :  { %v4456_v29 = vadd.f32 %v487_v38, %v485_v18  ;;  %664 = vrot.lane.b32.xlu0 %v660_v45, %s3365_s16 }
 0x1fd   :  { %v509_v50 = vpop.permute.xlu1 %508  ;;  %v4464_v3 = vadd.f32 %v490_v27, %v380_v11  ;;  %686 = vrot.lane.b32.xlu1 %v681_v63, %s3363_s1  ;;  %v722_v63 = vmul.f32 %v721_v30, %v3479_v24  ;;  %v735_v27 = vstv %s4471_s6  ;;  %v755_v30 = vstv %s4481_s7  ;;  %s4683_s6 = sld [smem:[#allocation3 + $0x34]]  ;;  %s4697_s7 = sld [smem:[#allocation3 + $0x30]] }
 0x1fe   :  { %v491_v13 = vand.u32 2147483647, %v4456_v29  ;;  %v521_v1 = vpop.permute.xlu0 %520  ;;  %v513_v32 = vadd.f32 %v509_v50, %v497_v10  ;;  %v736_v37 = vmul.f32 %v735_v27, %v4215_v23 }
 0x1ff   :  { %v526_v38 = vadd.f32 %v521_v1, %v512_v26 }
 0x200   :  { %v4473_v62 = vadd.f32 %v491_v13, %v381_v22  ;;  %684 = vrot.lane.b32.xlu0 %v680_v57, %s3363_s1  ;;  %v563_v57 = vstv %s4461_s30  ;;  %s4681_s30 = sld [smem:[#allocation3 + $0x2c]] }
 0x201   :  { %v523_v9 = vpop.permute.xlu1 %522  ;;  %700 = vrot.lane.b32.xlu1 %v695_v34, %s3365_s16  ;;  %v532_v0 = vadd.f32 %v530_v31, %v526_v38  ;;  %v564_v60 = vmul.f32 %v563_v57, %v4366_v53  ;;  %v565_v1 = vmul.f32 %v563_v57, %v4357_v42  ;;  %v737_v31 = vmul.f32 %v735_v27, %v4205_v48 }
 0x202   :  { %v527_v6 = vadd.f32 %v523_v9, %v513_v32  ;;  %v541_v45 = vpop.permute.xlu0 %540  ;;  %v756_v9 = vmul.f32 %v4286_v54, %v755_v30 }
 0x203   :  { %v546_v28 = vadd.f32 %v541_v45, %v532_v0 }
 0x204   :  { %698 = vrot.lane.b32.xlu0 %v694_v52, %s3365_s16  ;;  %v533_v18 = vadd.f32 %v531_v5, %v527_v6  ;;  %v831_v52 = vstv %s3054_s8  ;;  %v845_v5 = vstv %s3055_s9  ;;  %s4701_s8 = sld [smem:[#allocation3 + $0x44]] }
 0x205   :  { %v543_v2 = vpop.permute.xlu1 %542  ;;  %728 = vrot.lane.b32.xlu1 %v723_v21, %s3363_s1  ;;  %v832_v6 = vmul.f32 %v831_v52, %v3479_v24  ;;  %v833_v0 = vmul.f32 %v831_v52, %v3460_v16  ;;  %v846_v21 = vmul.f32 %v845_v5, %v4215_v23  ;;  %v847_v45 = vmul.f32 %v845_v5, %v4205_v48  ;;  %s4709_s9 = sld [smem:[#allocation3 + $0x4c]] }
 0x206   :  { %v555_v11 = vpop.permute.xlu0 %554  ;;  %v547_v26 = vadd.f32 %v543_v2, %v533_v18 }
 0x207   :  { %v560_v50 = vadd.f32 %v555_v11, %v546_v28  ;;  %v1511_v11 = vsel %vm210_vm6, %v4328_v33, %v3982_v12 }
 0x208   :  { %726 = vrot.lane.b32.xlu0 %v722_v63, %s3363_s1 }
 0x209   :  { %v557_v22 = vpop.permute.xlu1 %556  ;;  %740 = vrot.lane.b32.xlu1 %v736_v37, %s3365_s16  ;;  %v566_v10 = vadd.f32 %v564_v60, %v560_v50 }
 0x20a   :  { %v561_v13 = vadd.f32 %v557_v22, %v547_v26  ;;  %v575_v34 = vpop.permute.xlu0 %574  ;;  %v1512_v26 = vsel %vm210_vm6, %v4326_v8, %v3992_v56 }
 0x20b   :  { %v580_v32 = vadd.f32 %v575_v34, %v566_v10 }
 0x20c   :  { %v567_v38 = vadd.f32 %v565_v1, %v561_v13 }
 0x20d   :  { %742 = vrot.lane.b32.xlu1 %v737_v31, %s3365_s16  ;;  %v577_v28 = vpop.permute.xlu1 %576 }
 0x20e   :  { %v1532_v63 = vpop.permute.xlu0 %1531 }
 0x20f   :  { %v1536_v37 = vadd.f32 %v1532_v63, %v1512_v26 }
 0x211   :  { %760 = vrot.lane.b32.xlu1 %v756_v9, %s3363_s1  ;;  %v1530_v18 = vpop.permute.xlu1 %1529 }
 0x212   :  { %v1556_v57 = vpop.permute.xlu0 %1555  ;;  %v1535_v27 = vadd.f32 %v1530_v18, %v1511_v11  ;;  %v605_v18 = vstv %s4519_s11  ;;  %s4763_s11 = sld [smem:[#allocation3 + $0x4d]] }
 0x213   :  { %v1560_v13 = vadd.f32 %v1556_v57, %v1536_v37  ;;  %v607_v26 = vmul.f32 %v605_v18, %v4332_v19 }
 0x215   :  { %836 = vrot.lane.b32.xlu1 %v832_v6, %s3363_s1  ;;  %v1554_v2 = vpop.permute.xlu1 %1553  ;;  %v941_v6 = vstv %s4514_s10  ;;  %s4728_s10 = sld [smem:[#allocation3 + $0x35]] }
 0x216   :  { %v1559_v60 = vadd.f32 %v1554_v2, %v1535_v27  ;;  %v1614_v22 = vpop.permute.xlu0 %1613  ;;  %v943_v57 = vmul.f32 %v941_v6, %v3460_v16 }
 0x217   :  { %v1618_v1 = vadd.f32 %v1614_v22, %v1560_v13 }
 0x219   :  { %838 = vrot.lane.b32.xlu1 %v833_v0, %s3363_s1  ;;  %v1612_v50 = vpop.permute.xlu1 %1611  ;;  %v1648_v12 = vadd.f32 %v4160_v35, %v1618_v1  ;;  %v581_v0 = vadd.f32 %v577_v28, %v567_v38  ;;  %v769_v38 = vstv %s4522_s12  ;;  %s4767_s12 = sld [smem:[#allocation3 + $0x3e]] }
 0x21a   :  { %v1617_v10 = vadd.f32 %v1612_v50, %v1559_v60  ;;  %v1700_v56 = vpop.permute.xlu0 %1699  ;;  %v942_v50 = vmul.f32 %v941_v6, %v3479_v24  ;;  %v771_v1 = vmul.f32 %v769_v38, %v4184_v51 }
 0x21b   :  { %v1704_v9 = vadd.f32 %v1700_v56, %v1648_v12 }
 0x21c   :  { %v1647_v34 = vadd.f32 %v4164_v61, %v1617_v10 }
 0x21d   :  { %850 = vrot.lane.b32.xlu1 %v846_v21, %s3365_s16  ;;  %v1698_v31 = vpop.permute.xlu1 %1697  ;;  %v597_v21 = vstv %s4517_s0  ;;  %s4730_s0 = sld [smem:[#allocation3 + $0x3d]] }
 0x21e   :  { %v1703_v8 = vadd.f32 %v1698_v31, %v1647_v34  ;;  %v639_v34 = vstv %s4526_s13  ;;  %v865_v31 = vstv %s4529_s14  ;;  %s4771_s13 = sld [smem:[#allocation3 + $0x46]]  ;;  %s4779_s14 = sld [smem:[#allocation3 + $0x47]] }
 0x221   :  { %852 = vrot.lane.b32.xlu1 %v847_v45, %s3365_s16 }
 0x257   :  { %v1790_v33 = vpop.permute.xlu1 %1789 }
 0x258   :  { %v4524_v52 = vadd.f32 %v1790_v33, %v1703_v8   ;;  %v757_v33 = vmul.f32 %v4293_v49, %v755_v30 }
 0x25a   :  { %v1792_v61 = vpop.permute.xlu0 %1791  ;;  %v1797_v35 = vmul.f32 %v4524_v52, %v4524_v52 }
 0x25b   :  { %v4531_v5 = vadd.f32 %v1792_v61, %v1704_v9   ;;  %v591_v45 = vpop.permute.xlu1 %590 }
 0x25c   :  { %v595_v2 = vadd.f32 %v591_v45, %v581_v0  ;;  %1801 = vrot.lane.b32.xlu0 %v1797_v35, %s3370_s15  ;;  %v867_v0 = vmul.f32 %v4293_v49, %v865_v31 }
 0x25d   :  { %v1798_v63 = vmul.f32 %v4531_v5, %v4531_v5 }
 0x25e   :  { %v589_v11 = vpop.permute.xlu0 %588  ;;  %v4542_v27 = vadd.f32 %v597_v21, %v595_v2 }
 0x25f   :  { %v594_v28 = vadd.f32 %v589_v11, %v580_v32  ;;  %1803 = vrot.lane.b32.xlu1 %v1798_v63, %s3370_s15  ;;  %v619_v37 = vpop.permute.xlu1 %618  ;;  %v606_v32 = vmul.f32 %v605_v18, %v4336_v41  ;;  %v955_v18 = vstv %s4547_s17  ;;  %v1065_v63 = vstv %s4549_s18  ;;  %s4783_s17 = sld [smem:[#allocation3 + $0x4f]]  ;;  %s4793_s18 = sld [smem:[#allocation3 + $0x50]] }
 0x260   :  { %v601_v22 = vand.u32 2147483647, %v4542_v27  ;;  %v623_v13 = vadd.f32 %v619_v37, %v607_v26  ;;  %948 = vrot.lane.b32.xlu0 %v943_v57, %s3363_s1  ;;  %v956_v11 = vmul.f32 %v955_v18, %v4215_v23  ;;  %v1161_v26 = vstv %s4561_s19  ;;  %s3063_s19 = sld [smem:[#allocation3 + $0x36]] }
 0x261   :  { %v4551_v60 = vadd.f32 %v597_v21, %v594_v28  ;;  %v640_v21 = vmul.f32 %v639_v34, %v4348_v7  ;;  %v1067_v37 = vmul.f32 %v1065_v63, %v4205_v48 }
 0x262   :  { %v617_v10 = vpop.permute.xlu0 %616  ;;  %v4565_v56 = vadd.f32 %v601_v22, %v4473_v62  ;;  %v641_v62 = vmul.f32 %v639_v34, %v4340_v40 }
 0x263   :  { %v600_v12 = vand.u32 2147483647, %v4551_v60  ;;  %v622_v8 = vadd.f32 %v617_v10, %v606_v32  ;;  %946 = vrot.lane.b32.xlu1 %v942_v50, %s3363_s1  ;;  %v633_v9 = vpop.permute.xlu1 %632  ;;  %v673_v32 = vstv %s4571_s20  ;;  %s3066_s20 = sld [smem:[#allocation3 + $0x39]] }
 0x264   :  { %v637_v6 = vadd.f32 %v633_v9, %v623_v13  ;;  %776 = vrot.lane.b32.xlu0 %v771_v1, %s3365_s16  ;;  %v1051_v13 = vstv %s4573_s21  ;;  %v957_v1 = vmul.f32 %v955_v18, %v4205_v48  ;;  %v675_v34 = vmul.f32 %v673_v32, %v4357_v42  ;;  %s4815_s21 = sld [smem:[#allocation3 + $0x2a]] }
 0x265   :  { %v4576_v61 = vadd.f32 %v600_v12, %v4464_v3  ;;  %v1163_v12 = vmul.f32 %v1161_v26, %v3460_v16  ;;  %v674_v9 = vmul.f32 %v673_v32, %v4366_v53 }
 0x266   :  { %v631_v35 = vpop.permute.xlu0 %630  ;;  %v643_v45 = vadd.f32 %v641_v62, %v637_v6  ;;  %v1052_v62 = vmul.f32 %v1051_v13, %v3479_v24 }
 0x267   :  { %v636_v30 = vadd.f32 %v631_v35, %v622_v8  ;;  %762 = vrot.lane.b32.xlu1 %v757_v33, %s3363_s1  ;;  %v653_v3 = vpop.permute.xlu1 %652  ;;  %v879_v35 = vstv %s4587_s22  ;;  %s4818_s22 = sld [smem:[#allocation3 + $0x48]] }
 0x268   :  { %v657_v57 = vadd.f32 %v653_v3, %v643_v45  ;;  %872 = vrot.lane.b32.xlu0 %v867_v0, %s3363_s1  ;;  %v975_v3 = vstv %s4592_s23  ;;  %s3073_s23 = sld [smem:[#allocation3 + $0x3f]] }
 0x269   :  { %v642_v2 = vadd.f32 %v640_v21, %v636_v30 }
 0x26a   :  { %v651_v28 = vpop.permute.xlu0 %650 }
 0x26b   :  { %v656_v50 = vadd.f32 %v651_v28, %v642_v2  ;;  %960 = vrot.lane.b32.xlu1 %v956_v11, %s3365_s16  ;;  %v667_v22 = vpop.permute.xlu1 %666  ;;  %v1053_v2 = vmul.f32 %v1051_v13, %v3460_v16  ;;  %v707_v11 = vstv %s4600_s24  ;;  %v1175_v13 = vstv %s4613_s26  ;;  %s4828_s24 = sld [smem:[#allocation3 + $0x33]] }
 0x26c   :  { %v671_v10 = vadd.f32 %v667_v22, %v657_v57  ;;  %1072 = vrot.lane.b32.xlu0 %v1067_v37, %s3365_s16  ;;  %v881_v57 = vmul.f32 %v879_v35, %v4184_v51  ;;  %v977_v22 = vmul.f32 %v4293_v49, %v975_v3  ;;  %s4839_s26 = sld [smem:[#allocation3 + $0x4b]] }
 0x26e   :  { %v665_v8 = vpop.permute.xlu0 %664  ;;  %v677_v6 = vadd.f32 %v675_v34, %v671_v10 }
 0x26f   :  { %v670_v33 = vadd.f32 %v665_v8, %v656_v50  ;;  %962 = vrot.lane.b32.xlu1 %v957_v1, %s3365_s16  ;;  %v687_v0 = vpop.permute.xlu1 %686  ;;  %v715_v50 = vstv %s4602_s25  ;;  %s4832_s25 = sld [smem:[#allocation3 + $0x42]] }
 0x270   :  { %v691_v21 = vadd.f32 %v687_v0, %v677_v6  ;;  %1168 = vrot.lane.b32.xlu0 %v1163_v12, %s3363_s1  ;;  %v717_v16 = vmul.f32 %v715_v50, %v4332_v19  ;;  %v716_v34 = vmul.f32 %v715_v50, %v4336_v41  ;;  %v770_v6 = vmul.f32 %v769_v38, %v4176_v14 }
 0x271   :  { %v676_v30 = vadd.f32 %v674_v9, %v670_v33  ;;  %v1177_v0 = vmul.f32 %v1175_v13, %v4205_v48  ;;  %v866_v38 = vmul.f32 %v4286_v54, %v865_v31 }
 0x272   :  { %v685_v45 = vpop.permute.xlu0 %684 }
 0x273   :  { %v690_v18 = vadd.f32 %v685_v45, %v676_v30  ;;  %1056 = vrot.lane.b32.xlu1 %v1052_v62, %s3363_s1  ;;  %v701_v28 = vpop.permute.xlu1 %700  ;;  %v789_v30 = vstv %s4618_s2  ;;  %s4862_s2 = sld [smem:[#allocation3 + $0x3c]] }
 0x274   :  { %v705_v37 = vadd.f32 %v701_v28, %v691_v21  ;;  %886 = vrot.lane.b32.xlu0 %v881_v57, %s3365_s16  ;;  %v749_v21 = vstv %s4620_s3  ;;  %s4879_s3 = sld [smem:[#allocation6 + $0x4]] }
 0x275   :  { %v750_v28 = vmul.f32 %v749_v21, %v4348_v7 }
 0x276   :  { %v699_v32 = vpop.permute.xlu0 %698  ;;  %v4633_v1 = vadd.f32 %v707_v11, %v705_v37  ;;  %v989_v37 = vstv %s4639_s27  ;;  %s4893_s27 = sld [smem:[#allocation3 + $0x45]] }
 0x277   :  { %v704_v10 = vadd.f32 %v699_v32, %v690_v18  ;;  %1058 = vrot.lane.b32.xlu1 %v1053_v2, %s3363_s1  ;;  %v729_v12 = vpop.permute.xlu1 %728  ;;  %v751_v32 = vmul.f32 %v749_v21, %v4340_v40  ;;  %v803_v21 = vstv %s4681_s30  ;;  %s4933_s30 = sld [smem:[#allocation6 + $0x8]] }
 0x278   :  { %v711_v33 = vand.u32 2147483647, %v4633_v1  ;;  %v733_v9 = vadd.f32 %v729_v12, %v717_v16  ;;  %982 = vrot.lane.b32.xlu0 %v977_v22, %s3363_s1  ;;  %v1162_v16 = vmul.f32 %v1161_v26, %v3479_v24 }
 0x279   :  { %v4641_v8 = vadd.f32 %v707_v11, %v704_v10  ;;  %v1085_v10 = vstv %s4653_s28  ;;  %s4925_s28 = sld [smem:[#allocation6 + $0x6]] }
 0x27a   :  { %v727_v62 = vpop.permute.xlu0 %726  ;;  %v4657_v18 = vadd.f32 %v711_v33, %v4565_v56  ;;  %v791_v56 = vmul.f32 %v789_v30, %v4021_v39 }
 0x27b   :  { %v710_v45 = vand.u32 2147483647, %v4641_v8  ;;  %v732_v2 = vadd.f32 %v727_v62, %v716_v34  ;;  %774 = vrot.lane.b32.xlu1 %v770_v6, %s3365_s16  ;;  %v741_v57 = vpop.permute.xlu1 %740  ;;  %v991_v34 = vmul.f32 %v989_v37, %v4184_v51  ;;  %v825_v6 = vstv %s4671_s29  ;;  %s4930_s29 = sld [smem:[#allocation6 + $0x7]] }
 0x27c   :  { %1182 = vrot.lane.b32.xlu0 %v1177_v0, %s3365_s16  ;;  %v826_v24 = vmul.f32 %v825_v6, %v4336_v41  ;;  %v880_v0 = vmul.f32 %v879_v35, %v4176_v14 }
 0x27d   :  { %v4664_v48 = vadd.f32 %v710_v45, %v4576_v61  ;;  %v746_v11 = vadd.f32 %v741_v57, %v732_v2  ;;  %v1066_v61 = vmul.f32 %v1065_v63, %v4215_v23  ;;  %v899_v45 = vstv %s4683_s6 }
 0x27e   :  { %v827_v2 = vmul.f32 %v825_v6, %v4332_v19  ;;  %v805_v57 = vmul.f32 %v803_v21, %v4225_v55 }
 0x27f   :  { %870 = vrot.lane.b32.xlu1 %v866_v38, %s3363_s1  ;;  %v752_v50 = vadd.f32 %v750_v28, %v746_v11  ;;  %v743_v31 = vpop.permute.xlu1 %742  ;;  %v976_v38 = vmul.f32 %v4286_v54, %v975_v3  ;;  %v859_v28 = vstv %s4697_s7 }
 0x280   :  { %v747_v22 = vadd.f32 %v743_v31, %v733_v9  ;;  %796 = vrot.lane.b32.xlu0 %v791_v56, %s3363_s1  ;;  %v1087_v9 = vmul.f32 %v4293_v49, %v1085_v10  ;;  %v901_v56 = vmul.f32 %v899_v45, %v4021_v39  ;;  %v1099_v31 = vstv %s4701_s8 }
 0x281   :  { %v860_v3 = vmul.f32 %v859_v28, %v4348_v7  ;;  %v861_v6 = vmul.f32 %v859_v28, %v4340_v40 }
 0x282   :  { %v4690_v63 = vadd.f32 %v751_v32, %v747_v22  ;;  %v1195_v32 = vstv %s4709_s9 }
 0x283   :  { %1070 = vrot.lane.b32.xlu1 %v1066_v61, %s3365_s16  ;;  %v761_v12 = vpop.permute.xlu1 %760  ;;  %v1176_v61 = vmul.f32 %v1175_v13, %v4215_v23 }
 0x284   :  { %v4692_v33 = vadd.f32 %v761_v12, %v752_v50  ;;  %996 = vrot.lane.b32.xlu0 %v991_v34, %s3365_s16  ;;  %v1101_v34 = vmul.f32 %v1099_v31, %v4184_v51 }
 0x287   :  { %1166 = vrot.lane.b32.xlu1 %v1162_v16, %s3363_s1  ;;  %v837_v26 = vpop.permute.xlu1 %836  ;;  %v790_v16 = vmul.f32 %v789_v30, %v3916_v43  ;;  %v913_v30 = vstv %s4728_s10 }
 0x288   :  { %v842_v62 = vadd.f32 %v837_v26, %v826_v24  ;;  %1092 = vrot.lane.b32.xlu0 %v1087_v9, %s3363_s1  ;;  %v1197_v9 = vmul.f32 %v4293_v49, %v1195_v32  ;;  %v990_v26 = vmul.f32 %v989_v37, %v4176_v14  ;;  %v900_v37 = vmul.f32 %v899_v45, %v3916_v43 }
 0x28b   :  { %884 = vrot.lane.b32.xlu1 %v880_v0, %s3365_s16  ;;  %v839_v11 = vpop.permute.xlu1 %838  ;;  %v1086_v0 = vmul.f32 %v4286_v54, %v1085_v10  ;;  %v1100_v10 = vmul.f32 %v1099_v31, %v4176_v14  ;;  %v1229_v31 = vstv %s4783_s17 }
 0x28c   :  { %v843_v35 = vadd.f32 %v839_v11, %v827_v2  ;;  %810 = vrot.lane.b32.xlu0 %v805_v57, %s3365_s16  ;;  %v915_v2 = vmul.f32 %v913_v30, %v4225_v55  ;;  %v1196_v57 = vmul.f32 %v4286_v54, %v1195_v32  ;;  %v1209_v54 = vstv %s4763_s11 }
 0x28d   :  { %v1210_v11 = vmul.f32 %v1209_v54, %v4176_v14 }
 0x28f   :  { %980 = vrot.lane.b32.xlu1 %v976_v38, %s3363_s1  ;;  %v851_v50 = vpop.permute.xlu1 %850  ;;  %v804_v38 = vmul.f32 %v803_v21, %v4194_v59  ;;  %v914_v21 = vmul.f32 %v913_v30, %v4194_v59 }
 0x290   :  { %v856_v22 = vadd.f32 %v851_v50, %v842_v62  ;;  %906 = vrot.lane.b32.xlu0 %v901_v56, %s3363_s1  ;;  %v1009_v62 = vstv %s4730_s0  ;;  %v1119_v56 = vstv %s4771_s13  ;;  %v1133_v50 = vstv %s4779_s14 }
 0x291   :  { %v1011_v49 = vmul.f32 %v1009_v62, %v4021_v39  ;;  %v1010_v45 = vmul.f32 %v1009_v62, %v3916_v43  ;;  %v1120_v14 = vmul.f32 %v1119_v56, %v3916_v43 }
 0x292   :  { %v4737_v12 = vadd.f32 %v860_v3, %v856_v22  ;;  %v1134_v22 = vmul.f32 %v1133_v50, %v4194_v59  ;;  %v1243_v3 = vstv %s4793_s18 }
 0x293   :  { %1180 = vrot.lane.b32.xlu1 %v1176_v61, %s3365_s16  ;;  %v853_v23 = vpop.permute.xlu1 %852  ;;  %v1230_v61 = vmul.f32 %v1229_v31, %v3916_v43  ;;  %v1244_v32 = vmul.f32 %v1243_v3, %v4194_v59 }
 0x294   :  { %v857_v13 = vadd.f32 %v853_v23, %v843_v35  ;;  %1106 = vrot.lane.b32.xlu0 %v1101_v34, %s3365_s16  ;;  %v1023_v35 = vstv %s4767_s12  ;;  %v935_v34 = vstv %s3063_s19 }
 0x295   :  { %v1024_v28 = vmul.f32 %v1023_v35, %v4194_v59  ;;  %v936_v30 = vmul.f32 %v935_v34, %v4336_v41 }
 0x296   :  { %v4743_v24 = vadd.f32 %v861_v6, %v857_v13  ;;  %v937_v6 = vmul.f32 %v935_v34, %v4332_v19 }
 0x297   :  { %794 = vrot.lane.b32.xlu1 %v790_v16, %s3363_s1 }
 0x298   :  { %1202 = vrot.lane.b32.xlu0 %v1197_v9, %s3363_s1 }
 0x29b   :  { %994 = vrot.lane.b32.xlu1 %v990_v26, %s3365_s16 }
 0x29c   :  { %920 = vrot.lane.b32.xlu0 %v915_v2, %s3365_s16 }
 0x29f   :  { %1090 = vrot.lane.b32.xlu1 %v1086_v0, %s3363_s1 }
 0x2a0   :  { %1016 = vrot.lane.b32.xlu0 %v1011_v49, %s3363_s1 }
 0x2a3   :  { %808 = vrot.lane.b32.xlu1 %v804_v38, %s3365_s16 }
 0x2a7   :  { %904 = vrot.lane.b32.xlu1 %v900_v37, %s3363_s1 }
 0x2ab   :  { %1104 = vrot.lane.b32.xlu1 %v1100_v10, %s3365_s16  ;;  %v969_v10 = vstv %s3066_s20 }
 0x2af   :  { %1200 = vrot.lane.b32.xlu1 %v1196_v57, %s3363_s1  ;;  %v783_v57 = vstv %s4815_s21 }
 0x2b3   :  { %918 = vrot.lane.b32.xlu1 %v914_v21, %s3365_s16 }
 0x2b7   :  { %1014 = vrot.lane.b32.xlu1 %v1010_v45, %s3363_s1 }
 0x2bb   :  { %1214 = vrot.lane.b32.xlu1 %v1210_v11, %s3365_s16  ;;  %v785_v11 = vmul.f32 %v783_v57, %v4357_v42 }
 0x2bf   :  { %1028 = vrot.lane.b32.xlu1 %v1024_v28, %s3365_s16 }
 0x2c3   :  { %1124 = vrot.lane.b32.xlu1 %v1120_v14, %s3363_s1 }
 0x2c7   :  { %1138 = vrot.lane.b32.xlu1 %v1134_v22, %s3365_s16 }
 0x2cb   :  { %1234 = vrot.lane.b32.xlu1 %v1230_v61, %s3363_s1  ;;  %v970_v61 = vmul.f32 %v969_v10, %v4348_v7 }
 0x2ce   :  { %v1802_v16 = vpop.permute.xlu0 %1801 }
 0x2cf   :  { %1248 = vrot.lane.b32.xlu1 %v1244_v32, %s3365_s16  ;;  %v1808_v23 = vsel %vm1807_vm10, %v1802_v16, 0.0  ;;  %v1155_v16 = vstv %s4818_s22 }
 0x2d1   :  { %v1804_v13 = vpop.permute.xlu1 %1803 }
 0x2d2   :  { %v1809_v9 = vsel %vm1807_vm10, %v1804_v13, 0.0  ;;  %v949_v26 = vpop.permute.xlu0 %948  ;;  %v971_v13 = vmul.f32 %v969_v10, %v4340_v40 }
 0x2d3   :  { %v1810_v43 = vadd.f32 %v1809_v9, %v1808_v23  ;;  %1282 = vrot.lane.b32.xlu1 %v3791_v44, %s3363_s1  ;;  %v953_v59 = vadd.f32 %v949_v26, %v937_v6  ;;  %v1045_v6 = vstv %s3073_s23 }
 0x2d4   :  { %v1046_v26 = vmul.f32 %v1045_v6, %v4336_v41 }
 0x2d5   :  { %1811 = vadd.xlane.f32.xlu0 %v1810_v43  ;;  %v947_v62 = vpop.permute.xlu1 %946 }
 0x2d6   :  { %v952_v0 = vadd.f32 %v947_v62, %v936_v30  ;;  %v777_v2 = vpop.permute.xlu0 %776 }
 0x2d9   :  { %v763_v49 = vpop.permute.xlu1 %762 }
 0x2da   :  { %v767_v38 = vadd.f32 %v763_v49, %v4690_v63  ;;  %v873_v37 = vpop.permute.xlu0 %872 }
 0x2db   :  { %v877_v45 = vadd.f32 %v873_v37, %v4743_v24  ;;  %v1157_v24 = vmul.f32 %v1155_v16, %v4332_v19 }
 0x2dc   :  { %v781_v21 = vadd.f32 %v777_v2, %v767_v38  ;;  %v1047_v38 = vmul.f32 %v1045_v6, %v4332_v19  ;;  %v1025_v19 = vmul.f32 %v1023_v35, %v4225_v55 }
 0x2dd   :  { %v961_v28 = vpop.permute.xlu1 %960 }
 0x2de   :  { %v966_v14 = vadd.f32 %v961_v28, %v952_v0  ;;  %v4824_v22 = vadd.f32 %v785_v11, %v781_v21  ;;  %v1073_v32 = vpop.permute.xlu0 %1072  ;;  %v1211_v21 = vmul.f32 %v1209_v54, %v4184_v51  ;;  %v1079_v11 = vstv %s4832_s25 }
 0x2df   :  { %v784_v54 = vmul.f32 %v783_v57, %v4366_v53 }
 0x2e0   :  { %v4830_v63 = vadd.f32 %v970_v61, %v966_v14 }
 0x2e1   :  { %v963_v34 = vpop.permute.xlu1 %962 }
 0x2e2   :  { %v967_v23 = vadd.f32 %v963_v34, %v953_v59  ;;  %v1169_v9 = vpop.permute.xlu0 %1168  ;;  %v893_v59 = vstv %s4828_s24 }
 0x2e3   :  { %v1173_v43 = vadd.f32 %v1169_v9, %v1157_v24  ;;  %v895_v37 = vmul.f32 %v893_v59, %v4357_v42 }
 0x2e4   :  { %v973_v30 = vadd.f32 %v971_v13, %v967_v23  ;;  %v1189_v13 = vstv %s4839_s26 }
 0x2e5   :  { %v1057_v62 = vpop.permute.xlu1 %1056  ;;  %v1191_v35 = vmul.f32 %v1189_v13, %v4340_v40 }
 0x2e6   :  { %v1062_v0 = vadd.f32 %v1057_v62, %v1046_v26  ;;  %v887_v2 = vpop.permute.xlu0 %886 }
 0x2e7   :  { %v891_v49 = vadd.f32 %v887_v2, %v877_v45  ;;  %v1081_v45 = vmul.f32 %v1079_v11, %v4340_v40  ;;  %v1231_v40 = vmul.f32 %v1229_v31, %v4021_v39 }
 0x2e9   :  { %v1059_v10 = vpop.permute.xlu1 %1058  ;;  %v4848_v14 = vadd.f32 %v895_v37, %v891_v49 }
 0x2ea   :  { %v1063_v28 = vadd.f32 %v1059_v10, %v1047_v38  ;;  %v983_v61 = vpop.permute.xlu0 %982 }
 0x2eb   :  { %1216 = vrot.lane.b32.xlu0 %v1211_v21, %s3365_s16  ;;  %v987_v23 = vadd.f32 %v983_v61, %v973_v30 }
 0x2ec   :  { %v1077_v34 = vadd.f32 %v1073_v32, %v1063_v28  ;;  %v1121_v32 = vmul.f32 %v1119_v56, %v4021_v39  ;;  %v1135_v56 = vmul.f32 %v1133_v50, %v4225_v55 }
 0x2ed   :  { %v775_v24 = vpop.permute.xlu1 %774 }
 0x2ee   :  { %v780_v9 = vadd.f32 %v775_v24, %v4692_v33  ;;  %v1083_v51 = vadd.f32 %v1081_v45, %v1077_v34  ;;  %v1183_v6 = vpop.permute.xlu0 %1182  ;;  %v1245_v34 = vmul.f32 %v1243_v3, %v4225_v55  ;;  %v894_v45 = vmul.f32 %v893_v59, %v4366_v53 }
 0x2ef   :  { %1030 = vrot.lane.b32.xlu0 %v1025_v19, %s3365_s16  ;;  %v1187_v26 = vadd.f32 %v1183_v6, %v1173_v43  ;;  %v1080_v43 = vmul.f32 %v1079_v11, %v4348_v7  ;;  %v1156_v6 = vmul.f32 %v1155_v16, %v4336_v41 }
 0x2f0   :  { %v4864_v30 = vadd.f32 %v784_v54, %v780_v9 }
 0x2f1   :  { %v871_v33 = vpop.permute.xlu1 %870  ;;  %v4868_v2 = vadd.f32 %v1191_v35, %v1187_v26 }
 0x2f2   :  { %v876_v62 = vadd.f32 %v871_v33, %v4737_v12  ;;  %v797_v57 = vpop.permute.xlu0 %796  ;;  %v1003_v12 = vstv %s4862_s2 }
 0x2f3   :  { %1126 = vrot.lane.b32.xlu0 %v1121_v32, %s3363_s1  ;;  %v1005_v28 = vmul.f32 %v1003_v12, %v4357_v42  ;;  %v801_v39 = vadd.f32 %v797_v57, %v4824_v22 }
 0x2f5   :  { %v1071_v49 = vpop.permute.xlu1 %1070 }
 0x2f6   :  { %v1076_v38 = vadd.f32 %v1071_v49, %v1062_v0  ;;  %v997_v37 = vpop.permute.xlu0 %996  ;;  %v1113_v49 = vstv %s4893_s27 }
 0x2f7   :  { %1140 = vrot.lane.b32.xlu0 %v1135_v56, %s3365_s16  ;;  %v1001_v10 = vadd.f32 %v997_v37, %v987_v23  ;;  %v817_v23 = vstv %s4879_s3  ;;  %v1115_v16 = vmul.f32 %v1113_v49, %v4357_v42 }
 0x2f8   :  { %v1082_v21 = vadd.f32 %v1080_v43, %v1076_v38 }
 0x2f9   :  { %v1167_v61 = vpop.permute.xlu1 %1166  ;;  %v4883_v50 = vadd.f32 %v1005_v28, %v1001_v10 }
 0x2fa   :  { %v1093_v0 = vpop.permute.xlu0 %1092  ;;  %v1172_v3 = vadd.f32 %v1167_v61, %v1156_v6 }
 0x2fb   :  { %1236 = vrot.lane.b32.xlu0 %v1231_v40, %s3363_s1  ;;  %v1097_v26 = vadd.f32 %v1093_v0, %v1083_v51  ;;  %s4903_s1 = sld [smem:[#allocation6 + $0x5]] }
 0x2fd   :  { %v885_v11 = vpop.permute.xlu1 %884 }
 0x2fe   :  { %v890_v31 = vadd.f32 %v885_v11, %v876_v62  ;;  %v811_v24 = vpop.permute.xlu0 %810  ;;  %v1190_v62 = vmul.f32 %v1189_v13, %v4348_v7  ;;  %v1004_v13 = vmul.f32 %v1003_v12, %v4366_v53 }
 0x2ff   :  { %1250 = vrot.lane.b32.xlu0 %v1245_v34, %s3365_s16  ;;  %v815_v19 = vadd.f32 %v811_v24, %v801_v39  ;;  %s4923_s16 = sld [smem:[#allocation3 + $0x4e]] }
 0x300   :  { %v896_v9 = vadd.f32 %v894_v45, %v890_v31 }
 0x301   :  { %v981_v54 = vpop.permute.xlu1 %980  ;;  %v4898_v32 = vadd.f32 %v817_v23, %v815_v19  ;;  %v927_v10 = vstv %s4903_s1 }
 0x302   :  { %v907_v55 = vpop.permute.xlu0 %906  ;;  %v986_v51 = vadd.f32 %v981_v54, %v4830_v63 }
 0x303   :  { %v821_v22 = vand.u32 2147483647, %v4898_v32  ;;  %v911_v40 = vadd.f32 %v907_v55, %v4848_v14 }
 0x305   :  { %v1181_v59 = vpop.permute.xlu1 %1180  ;;  %v823_v35 = vadd.f32 %v821_v22, %v4657_v18  ;;  %v1114_v22 = vmul.f32 %v1113_v49, %v4366_v53 }
 0x306   :  { %v1186_v33 = vadd.f32 %v1181_v59, %v1172_v3  ;;  %v1107_v57 = vpop.permute.xlu0 %1106 }
 0x307   :  { %v1111_v56 = vadd.f32 %v1107_v57, %v1097_v26 }
 0x308   :  { %v1192_v41 = vadd.f32 %v1190_v62, %v1186_v33 }
 0x309   :  { %v795_v38 = vpop.permute.xlu1 %794  ;;  %v4907_v43 = vadd.f32 %v1115_v16, %v1111_v56 }
 0x30a   :  { %v4909_v37 = vpop.permute.xlu0 %1202  ;;  %v800_v39 = vadd.f32 %v795_v38, %v4864_v30 }
 0x30d   :  { %v995_v18 = vpop.permute.xlu1 %994 }
 0x30e   :  { %v1000_v7 = vadd.f32 %v995_v18, %v986_v51  ;;  %v921_v28 = vpop.permute.xlu0 %920 }
 0x30f   :  { %v925_v61 = vadd.f32 %v921_v28, %v911_v40  ;;  %v1037_v40 = vstv %s4925_s28 }
 0x310   :  { %v1006_v0 = vadd.f32 %v1004_v13, %v1000_v7 }
 0x311   :  { %v1091_v11 = vpop.permute.xlu1 %1090  ;;  %v4915_v34 = vadd.f32 %v927_v10, %v925_v61 }
 0x312   :  { %v1096_v6 = vadd.f32 %v1091_v11, %v1082_v21 }
 0x313   :  { %v931_v31 = vand.u32 2147483647, %v4915_v34 }
 0x315   :  { %v809_v45 = vpop.permute.xlu1 %808  ;;  %v4919_v24 = vadd.f32 %v931_v31, %v823_v35 }
 0x316   :  { %v814_v63 = vadd.f32 %v809_v45, %v800_v39  ;;  %v1147_v39 = vstv %s4930_s29 }
 0x318   :  { %v818_v19 = vadd.f32 %v817_v23, %v814_v63  ;;  %v1223_v23 = vstv %s4923_s16 }
 0x319   :  { %v905_v14 = vpop.permute.xlu1 %904  ;;  %v1224_v49 = vmul.f32 %v1223_v23, %v4366_v53 }
 0x31a   :  { %v820_v54 = vand.u32 2147483647, %v818_v19  ;;  %v910_v30 = vadd.f32 %v905_v14, %v896_v9 }
 0x31c   :  { %v822_v12 = vadd.f32 %v820_v54, %v4664_v48  ;;  %v1257_v54 = vstv %s4933_s30 }
 0x31d   :  { %v1105_v55 = vpop.permute.xlu1 %1104 }
 0x31e   :  { %v1110_v3 = vadd.f32 %v1105_v55, %v1096_v6 }
 0x320   :  { %v1116_v59 = vadd.f32 %v1114_v22, %v1110_v3 }
 0x321   :  { %v1201_v26 = vpop.permute.xlu1 %1200 }
 0x322   :  { %v1206_v48 = vadd.f32 %v1201_v26, %v1192_v41 }
 0x325   :  { %v919_v33 = vpop.permute.xlu1 %918 }
 0x326   :  { %v924_v35 = vadd.f32 %v919_v33, %v910_v30 }
 0x328   :  { %v928_v62 = vadd.f32 %v927_v10, %v924_v35 }
 0x329   :  { %v1015_v57 = vpop.permute.xlu1 %1014 }
 0x32a   :  { %v930_v21 = vand.u32 2147483647, %v928_v62  ;;  %v1020_v51 = vadd.f32 %v1015_v57, %v1006_v0 }
 0x32c   :  { %v932_v56 = vadd.f32 %v930_v21, %v822_v12 }
 0x32d   :  { %v1215_v16 = vpop.permute.xlu1 %1214 }
 0x32e   :  { %v1220_v38 = vadd.f32 %v1215_v16, %v1206_v48 }
 0x330   :  { %v1226_v18 = vadd.f32 %v1224_v49, %v1220_v38 }
 0x331   :  { %v1029_v7 = vpop.permute.xlu1 %1028 }
 0x332   :  { %v1034_v9 = vadd.f32 %v1029_v7, %v1020_v51 }
 0x334   :  { %v1038_v13 = vadd.f32 %v1037_v40, %v1034_v9 }
 0x335   :  { %v1125_v10 = vpop.permute.xlu1 %1124 }
 0x336   :  { %v1040_v28 = vand.u32 2147483647, %v1038_v13  ;;  %v1130_v11 = vadd.f32 %v1125_v10, %v1116_v59 }
 0x338   :  { %v1042_v61 = vadd.f32 %v1040_v28, %v932_v56  ;;  %v1207_v28 = vadd.f32 %v4909_v37, %v4868_v2 }
 0x339   :  { %v1139_v41 = vpop.permute.xlu1 %1138 }
 0x33a   :  { %v1144_v31 = vadd.f32 %v1139_v41, %v1130_v11 }
 0x33c   :  { %v1148_v53 = vadd.f32 %v1147_v39, %v1144_v31 }
 0x33d   :  { %v1235_v0 = vpop.permute.xlu1 %1234 }
 0x33e   :  { %v1150_v45 = vand.u32 2147483647, %v1148_v53  ;;  %v1240_v14 = vadd.f32 %v1235_v0, %v1226_v18 }
 0x340   :  { %v1152_v63 = vadd.f32 %v1150_v45, %v1042_v61 }
 0x341   :  { %v1249_v6 = vpop.permute.xlu1 %1248 }
 0x342   :  { %v1254_v12 = vadd.f32 %v1249_v6, %v1240_v14 }
 0x344   :  { %v1258_v55 = vadd.f32 %v1257_v54, %v1254_v12 }
 0x345   :  { %v4941_v21 = vpop.permute.xlu1 %1282 }
 0x346   :  { %v1260_v3 = vand.u32 2147483647, %v1258_v55 }
 0x348   :  { %v1262_v22 = vadd.f32 %v1260_v3, %v1152_v63 }
 0x34a   :  { %v1264_v26 = vmax.f32 %v1262_v22, 1e-12 }
 0x34c   :  { %3215 = vrcp.f32 %v1264_v26 }
 0x356   :  { %v3216_v59 = vpop.eup %3215 }
 0x357   :  { %v1268_v30 = vmul.f32 %v3216_v59, %v4441_v58  ;;  %v1274_v33 = vmul.f32 %v3216_v59, %v4449_v15  ;;  %v1287_v35 = vmul.f32 %v3216_v59, %v4641_v8  ;;  %v4939_v57 = vmul.f32 %v3216_v59, %v818_v19 }
 0x358   :  { %v1297_v48 = vmul.f32 %v3216_v59, %v1038_v13  ;;  %v4943_v56 = vmul.f32 %v3216_v59, %v1148_v53  ;;  %v1307_v16 = vmul.f32 %v3216_v59, %v1258_v55  ;;  %v1278_v38 = vmul.f32 %v3216_v59, %v4551_v60  ;;  %v1017_v13 = vpop.permute.xlu0 %1016 }
 0x359   :  { %6181 = vst [vmem:[#allocation52_spill] sm:$0xff] %v4939_v57  ;;  %v1270_v49 = vmul.f32 %v3467_v20, %v1268_v30  ;;  %v4948_v51 = vmul.f32 %v3467_v20, %v1274_v33  ;;  %v4951_v58 = vmul.f32 %v1287_v35, %v4064_v17  ;;  %v1293_v15 = vmul.f32 %v3216_v59, %v928_v62 }
 0x35a   :  { %6182 = vst [vmem:[#allocation53_spill] sm:$0xff] %v4943_v56  ;;  %v4954_v8 = vmul.f32 %v1297_v48, %v4064_v17  ;;  %v1280_v19 = vmul.f32 %v3467_v20, %v1278_v38  ;;  %v4958_v18 = vmul.f32 %v1307_v16, %v4941_v21  ;;  %v1225_v53 = vmul.f32 %v1223_v23, %v4357_v42 }
 0x35b   :  { %6183 = vst [vmem:[#allocation54_spill] sm:$0xff] %v4948_v51  ;;  %6184 = vst [vmem:[#allocation55_spill] sm:$0xff] %v4951_v58  ;;  %v4961_v7 = vmul.f32 %v1270_v49, %v4064_v17  ;;  %v4964_v60 = vmul.f32 %v1293_v15, %v4941_v21  ;;  %v1021_v0 = vadd.f32 %v1017_v13, %v4883_v50 }
 0x35c   :  { %6185 = vst [vmem:[#allocation56_spill] sm:$0xff] %v4954_v8  ;;  %6186 = vst [vmem:[#allocation57_spill] sm:$0xff] %v4958_v18  ;;  %v4967_v9 = vmul.f32 %v4941_v21, %v1280_v19 }
 0x35d   :  { %6187 = vst [vmem:[#allocation58_spill] sm:$0xff] %v4961_v7  ;;  %6188 = vst [vmem:[#allocation59_spill] sm:$0xff] %v4964_v60 }
 0x35e   :  { %6189 = vst [vmem:[#allocation60_spill] sm:$0xff] %v4967_v9 }
 0x362   :  { %v1812_v10 = vpop.xlane.xlu0 %1811 }
 0x363   :  { %v1813_v62 = vrot.slane %v1812_v10, 4 }
 0x365   :  { %v1814_v61 = vadd.f32 %v1813_v62, %v1812_v10 }
 0x366   :  { %v1217_v11 = vpop.permute.xlu0 %1216 }
 0x367   :  { %v1815_v41 = vrot.slane %v1814_v61, 2  ;;  %v1221_v31 = vadd.f32 %v1217_v11, %v1207_v28 }
 0x369   :  { %v1816_v45 = vadd.f32 %v1815_v41, %v1814_v61  ;;  %v1227_v63 = vadd.f32 %v1225_v53, %v1221_v31  ;;  %v5014_v53 = vmov 0.0  }
 0x36a   :  { %v1031_v14 = vpop.permute.xlu0 %1030 }
 0x36b   :  { %v1035_v6 = vadd.f32 %v1031_v14, %v1021_v0  ;;  %v1817_v12 = vrot.slane %v1816_v45, 1  ;;  %v5016_v0 = vmov 0.0  }
 0x36d   :  { %v1039_v55 = vadd.f32 %v1037_v40, %v1035_v6  ;;  %v1818_v3 = vadd.f32 %v1817_v12, %v1816_v45 }
 0x36e   :  { %v1127_v22 = vpop.permute.xlu0 %1126 }
 0x36f   :  { %v1041_v26 = vand.u32 2147483647, %v1039_v55  ;;  %3098 = vpush %v1818_v3  ;;  %v1131_v37 = vadd.f32 %v1127_v22, %v4907_v43 }
 0x371   :  { %v1043_v2 = vadd.f32 %v1041_v26, %v4919_v24 }
 0x372   :  { %v1141_v59 = vpop.permute.xlu0 %1140 }
 0x373   :  { %v1145_v30 = vadd.f32 %v1141_v59, %v1131_v37 }
 0x375   :  { %v1149_v33 = vadd.f32 %v1147_v39, %v1145_v30 }
 0x376   :  { %v1237_v42 = vpop.permute.xlu0 %1236 }
 0x377   :  { %v1151_v23 = vand.u32 2147483647, %v1149_v33  ;;  %v1241_v35 = vadd.f32 %v1237_v42, %v1227_v63 }
 0x379   :  { %v1153_v50 = vadd.f32 %v1151_v23, %v1043_v2 }
 0x37a   :  { %v1251_v48 = vpop.permute.xlu0 %1250 }
 0x37b   :  { %v1255_v16 = vadd.f32 %v1251_v48, %v1241_v35 }
 0x37d   :  { %v1259_v38 = vadd.f32 %v1257_v54, %v1255_v16 }
 0x37f   :  { %v1261_v49 = vand.u32 2147483647, %v1259_v38 }
 0x381   :  { %v1263_v40 = vadd.f32 %v1261_v49, %v1153_v50 }
 0x383   :  { %v1265_v15 = vmax.f32 %v1263_v40, 1e-12 }
 0x385   :  { %3217 = vrcp.f32 %v1265_v15 }
 0x38f   :  { %v3218_v19 = vpop.eup %3217 }
 0x390   :  { %v1269_v13 = vmul.f32 %v3218_v19, %v4447_v47  ;;  %v4977_v24 = vmul.f32 %v3218_v19, %v4456_v29  ;;  %v1279_v43 = vmul.f32 %v3218_v19, %v4542_v27  ;;  %v1288_v39 = vmul.f32 %v3218_v19, %v4633_v1 }
 0x391   :  { %v4982_v10 = vmul.f32 %v3218_v19, %v4898_v32  ;;  %v1294_v62 = vmul.f32 %v3218_v19, %v4915_v34  ;;  %v1298_v54 = vmul.f32 %v3218_v19, %v1039_v55  ;;  %v1304_v28 = vmul.f32 %v3218_v19, %v1149_v33 }
 0x392   :  { %6190 = vst [vmem:[#allocation61_spill] sm:$0xff] %v4977_v24  ;;  %v4986_v61 = vmul.f32 %v1269_v13, %v4064_v17  ;;  %v4989_v11 = vmul.f32 %v4941_v21, %v1279_v43  ;;  %v4992_v47 = vmul.f32 %v1288_v39, %v4064_v17  ;;  %v1308_v29 = vmul.f32 %v3218_v19, %v1259_v38 }
 0x393   :  { %6191 = vst [vmem:[#allocation62_spill] sm:$0xff] %v4982_v10  ;;  %v4995_v27 = vmul.f32 %v1294_v62, %v4941_v21  ;;  %v1300_v1 = vmul.f32 %v3482_v25, %v1298_v54  ;;  %v4999_v32 = vmul.f32 %v3482_v25, %v1304_v28 }
 0x394   :  { %6192 = vst [vmem:[#allocation63_spill] sm:$0xff] %v4986_v61  ;;  %6193 = vst [vmem:[#allocation64_spill] sm:$0xff] %v4989_v11  ;;  %v1310_v34 = vmul.f32 %v3482_v25, %v1308_v29 }
 0x395   :  { %6194 = vst [vmem:[#allocation65_spill] sm:$0xff] %v4992_v47  ;;  %6195 = vst [vmem:[#allocation66_spill] sm:$0xff] %v4995_v27  ;;  %v5003_v41 = vmul.f32 %v1300_v1, %v4064_v17 }
 0x396   :  { %6196 = vst [vmem:[#allocation67_spill] sm:$0xff] %v4999_v32  ;;  %v5006_v31 = vmul.f32 %v1310_v34, %v4941_v21 }
 0x397   :  { %6197 = vst [vmem:[#allocation68_spill] sm:$0xff] %v5003_v41 }
 0x398   :  { %6198 = vst [vmem:[#allocation69_spill] sm:$0xff] %v5006_v31 }
 0x3a0   :  { %s5008_s6 = spop %3098  }
 0x3a1   :  { %s1820_s7 = smul.f32 1e-12, %s5008_s6 }
 0x3a3   :  { %p2962_p10 = scmp.gt.f32.partialorder %s5008_s6, %s1820_s7 }
 0x3a4   :  { %s6199_s8 = smov (%p2962_p10), %s5008_s6  ;;  %v6200_v17 = vmov (%p2962_p10), %v4531_v5  ;;  %v6201_v21 = vmov (%p2962_p10), %v4524_v52  ;;  %v5033_v45 = vmov (%p2962_p10), 0.0   ;;  %v5035_v63 = vmov (%p2962_p10), 0.0   ;;  %s5037_s9 = smov (%p2962_p10), 0  }
 0x3a5   :  { %2964 = sbr.rel (!%p2962_p10) target bundleno = 2884 (0xb44), region = 49 }
 0x3ac LB: > { %v6202_v20 = vld [vmem:[#allocation13_spill] sm:$0xff]  ;;  %v6203_v46 = vld [vmem:[#allocation32_spill] sm:$0xff]  ;;  %v6204_v44 = vld [vmem:[#allocation38_spill] sm:$0xff]  ;;  %6218 = vst [vmem:[#allocation70_spill] sm:$0xff] %v3325_v17  ;;  %s3371_s10 = smov 98   ;;  %s3372_s0 = smov 32   ;;  %s3349_s9 = sphi %s5037_s9, %s5924_s9   ;;  %v3345_v63 = vphi %v5035_v63, %v6322_v63   ;;  %v3341_v45 = vphi %v5033_v45, %v6321_v45   ;;  %v3337_v52 = vphi %v4524_v52, %v2869_v52   ;;  %v3333_v5 = vphi %v4531_v5, %v2870_v5   ;;  %v3329_v21 = vphi %v6201_v21, %v2923_v21   ;;  %v3325_v17 = vphi %v6200_v17, %v2924_v17   ;;  %s3321_s8 = sphi %s6199_s8, %s6320_s8  }
 0x3ad   : > { %v6205_v4 = vld [vmem:[#allocation48_spill] sm:$0xff]  ;;  %v6206_v61 = vld [vmem:[#allocation63_spill] sm:$0xff]  ;;  %v6209_v47 = vld [vmem:[#allocation65_spill] sm:$0xff]  ;;  %6219 = vst [vmem:[#allocation71_spill] sm:$0xff] %v3329_v21  ;;  %1838 = vrot.lane.b32.xlu0 %v3329_v21, %s3371_s10  ;;  %s3373_s11 = smov 31   ;;  %s3374_s12 = smov 1  }
 0x3ae   : > { %v6207_v60 = vld [vmem:[#allocation59_spill] sm:$0xff]  ;;  %v6210_v41 = vld [vmem:[#allocation68_spill] sm:$0xff]  ;;  %v6211_v31 = vld [vmem:[#allocation69_spill] sm:$0xff]  ;;  %6220 = vst [vmem:[#allocation72_spill] sm:$0xff] %v3333_v5  ;;  %s3375_s13 = smov 30   ;;  %s3376_s14 = smov 126  }
 0x3af   : > { %v6208_v58 = vld [vmem:[#allocation55_spill] sm:$0xff]  ;;  %v6212_v27 = vld [vmem:[#allocation66_spill] sm:$0xff]  ;;  %v6213_v18 = vld [vmem:[#allocation57_spill] sm:$0xff]  ;;  %6221 = vst [vmem:[#allocation73_spill] sm:$0xff] %v3337_v52  ;;  %s3377_s17 = smov 97   ;;  %s3378_s18 = smov 127  }
 0x3b0   : > { %v6214_v11 = vld [vmem:[#allocation64_spill] sm:$0xff]  ;;  %v6217_v7 = vld [vmem:[#allocation58_spill] sm:$0xff]  ;;  %6222 = vst [vmem:[#allocation74_spill] sm:$0xff] %v3341_v45  ;;  %6223 = vst [vmem:[#allocation75_spill] sm:$0xff] %v3345_v63  ;;  %s3379_s19 = smov 99   ;;  %s3380_s20 = smov 29  }
 0x3b1   : > { %v6215_v9 = vld [vmem:[#allocation60_spill] sm:$0xff]  ;;  %1840 = vrot.lane.b32.xlu0 %v3325_v17, %s3371_s10  ;;  %v6225_v51 = vld [vmem:[#allocation54_spill] sm:$0xff]  ;;  %v6226_v24 = vld [vmem:[#allocation61_spill] sm:$0xff]  ;;  %s3381_s23 = smov 28   ;;  %s5924_s9 = sadd.s32 1, %s3349_s9  }
 0x3b2   : > { %v6216_v8 = vld [vmem:[#allocation56_spill] sm:$0xff]  ;;  %v6228_v10 = vld [vmem:[#allocation62_spill] sm:$0xff]  ;;  %v6229_v56 = vld [vmem:[#allocation53_spill] sm:$0xff]  ;;  %s2902_s3 = ssub.s32 0, %s5924_s9  ;;  %p2894_p12 = scmp.gt.f32.partialorder %s3321_s8, 0.0 }
 0x3b3   : > { %v6227_v57 = vld [vmem:[#allocation52_spill] sm:$0xff]  ;;  %v6230_v32 = vld [vmem:[#allocation67_spill] sm:$0xff]  ;;  %v6247_v5 = vld [vmem:[#allocation34_spill] sm:$0xff]  ;;  %s3095_s27 = smin.u32 %s2902_s3, %s5924_s9  ;;  %p2901_p13 = scmp.lt.s32.totalorder %s5924_s9, 0 }
 0x3b4   : > { %3221 = sdivrem.u32 %s3095_s27, 50  ;;  %p1830_p2 = scmp.lt.s32.totalorder %s5924_s9, 300 }
 0x3bd   : > { %s3222_s1 = spop.drf %3221 }
 0x3be   : > { %s2906_s16 = ssub.s32 0, %s3222_s1 }
 0x3bf   : > { %s6330_s16 = smov (!%p2901_p13, %s2906_s16), %s3222_s1 }
 0x3c0   : > { %p3097_p0 = scmp.lt.s32.totalorder %s6330_s16, 0  ;;  %s2912_s28 = sadd.s32 50, %s6330_s16 }
 0x3c2   : > { %s6332_s28 = smov (!%p3097_p0, %s2912_s28), %s6330_s16 }
 0x3c3   : > { %p2914_p1 = scmp.eq.s32.totalorder %s6332_s28, 0 }
 0x3c5   : > { %s2920_s29 = scalar_select %p2914_p1, 1, 0 }
 0x41f   : > { %v5067_v14 = vpop.permute.xlu0 %1838 }
 0x420   : > { %1844 = vrot.lane.b32.xlu0 %v5067_v14, %s3372_s0  ;;  %v2470_v12 = vrot.slane %v5067_v14, 1  ;;  %v2466_v3 = vrot.slane %v5067_v14, 7 }
 0x423   : > { %v5071_v6 = vpop.permute.xlu0 %1840 }
 0x424   : > { %v2471_v55 = vrot.slane %v5071_v6, 1  ;;  %v2467_v22 = vrot.slane %v5071_v6, 7 }
 0x426   : > { %v2472_v2 = vsel %vm253_vm11, %v2470_v12, %v2471_v55  ;;  %v2469_v37 = vsel %vm205_vm0, %v2467_v22, %v2466_v3  ;;  %v2468_v59 = vsel %vm205_vm0, %v2466_v3, %v2467_v22  ;;  %v2473_v30 = vsel %vm253_vm11, %v2471_v55, %v2470_v12 }
 0x427   : > { %2538 = vrot.lane.b32.xlu0 %v2472_v2, %s3372_s0  ;;  %2474 = vrot.lane.b32.xlu1 %v2469_v37, %s3372_s0 }
 0x42b   : > { %2477 = vrot.lane.b32.xlu1 %v2468_v59, %s3372_s0 }
 0x42f   : > { %1847 = vrot.lane.b32.xlu1 %v5071_v6, %s3372_s0 }
 0x433   : > { %2541 = vrot.lane.b32.xlu1 %v2473_v30, %s3372_s0 }
 0x492   : > { %v1845_v23 = vpop.permute.xlu0 %1844 }
 0x493   : > { %v1846_v48 = vsel %vm210_vm6, %v1845_v23, %v5067_v14 }
 0x499   : > { %v2475_v33 = vpop.permute.xlu1 %2474  ;;  %v2539_v16 = vpop.permute.xlu0 %2538 }
 0x49a   : > { %v2476_v42 = vsel %vm210_vm6, %v2475_v33, %v2469_v37  ;;  %v2540_v40 = vsel %vm210_vm6, %v2539_v16, %v2472_v2 }
 0x49b   : > { %2480 = vrot.lane.b32.xlu0 %v2476_v42, %s3372_s0 }
 0x49d   : > { %v2478_v50 = vpop.permute.xlu1 %2477 }
 0x49e   : > { %v2479_v35 = vsel %vm210_vm6, %v2478_v50, %v2468_v59 }
 0x49f   : > { %2482 = vrot.lane.b32.xlu1 %v2479_v35, %s3372_s0  ;;  %1850 = vrot.lane.b32.xlu0 %v1846_v48, %s3372_s0 }
 0x4a1   : > { %v1848_v38 = vpop.permute.xlu1 %1847 }
 0x4a2   : > { %v1849_v49 = vsel %vm210_vm6, %v1848_v38, %v5071_v6 }
 0x4a3   : > { %1852 = vrot.lane.b32.xlu1 %v1849_v49, %s3372_s0  ;;  %2544 = vrot.lane.b32.xlu0 %v2540_v40, %s3372_s0 }
 0x4a5   : > { %v2542_v15 = vpop.permute.xlu1 %2541 }
 0x4a6   : > { %v2543_v19 = vsel %vm210_vm6, %v2542_v15, %v2473_v30 }
 0x4a7   : > { %2546 = vrot.lane.b32.xlu1 %v2543_v19, %s3372_s0  ;;  %2492 = vrot.lane.b32.xlu0 %v2469_v37, %s3373_s11 }
 0x4ab   : > { %2494 = vrot.lane.b32.xlu1 %v2468_v59, %s3373_s11  ;;  %2518 = vrot.lane.b32.xlu0 %v3329_v21, %s3374_s12 }
 0x4af   : > { %2520 = vrot.lane.b32.xlu1 %v3325_v17, %s3374_s12  ;;  %v6250_v17 = vld [vmem:[#allocation36_spill] sm:$0xff] }
 0x50d   : > { %v2481_v13 = vpop.permute.xlu0 %2480 }
 0x50e   : > { %v2484_v43 = vsel %vm210_vm6, %v2481_v13, %v2469_v37 }
 0x50f   : > { %2504 = vrot.lane.b32.xlu0 %v2484_v43, %s3375_s13 }
 0x511   : > { %v2483_v39 = vpop.permute.xlu1 %2482  ;;  %v1851_v62 = vpop.permute.xlu0 %1850 }
 0x512   : > { %v5115_v54 = vsel %vm210_vm6, %v1851_v62, %v5067_v14  ;;  %v2485_v28 = vsel %vm210_vm6, %v2483_v39, %v2468_v59  ;;  %v2486_v59 = vmul.f32 %v2484_v43, %v6217_v7 }
 0x513   : > { %2506 = vrot.lane.b32.xlu1 %v2485_v28, %s3375_s13  ;;  %2528 = vrot.lane.b32.xlu0 %v5115_v54, %s3375_s13  ;;  %v2487_v50 = vmul.f32 %v2485_v28, %v6206_v61  ;;  %v2514_v35 = vmul.f32 %v5115_v54, %v6208_v58 }
 0x515   : > { %v1853_v29 = vpop.permute.xlu1 %1852  ;;  %v2545_v34 = vpop.permute.xlu0 %2544 }
 0x516   : > { %v5123_v1 = vsel %vm210_vm6, %v1853_v29, %v5071_v6  ;;  %v2548_v53 = vsel %vm210_vm6, %v2545_v34, %v2472_v2 }
 0x517   : > { %2530 = vrot.lane.b32.xlu1 %v5123_v1, %s3375_s13  ;;  %2556 = vrot.lane.b32.xlu0 %v2472_v2, %s3373_s11  ;;  %v2515_v13 = vmul.f32 %v5123_v1, %v6209_v47  ;;  %v2550_v34 = vmul.f32 %v2548_v53, %v6216_v8 }
 0x519   : > { %v2547_v0 = vpop.permute.xlu1 %2546  ;;  %v2493_v55 = vpop.permute.xlu0 %2492 }
 0x51a   : > { %v2549_v12 = vsel %vm210_vm6, %v2547_v0, %v2473_v30  ;;  %v2498_v37 = vmul.f32 %v2493_v55, %v6225_v51 }
 0x51b   : > { %2558 = vrot.lane.b32.xlu1 %v2473_v30, %s3373_s11  ;;  %2568 = vrot.lane.b32.xlu0 %v2548_v53, %s3375_s13 }
 0x51c   : > { %v2500_v42 = vadd.f32 %v2498_v37, %v2486_v59 }
 0x51d   : > { %v2495_v3 = vpop.permute.xlu1 %2494  ;;  %v2519_v22 = vpop.permute.xlu0 %2518 }
 0x51e   : > { %v2499_v23 = vmul.f32 %v2495_v3, %v6226_v24  ;;  %v2524_v40 = vmul.f32 %v2519_v22, %v6227_v57  ;;  %v6251_v57 = vmov %v6250_v17 }
 0x51f   : > { %2570 = vrot.lane.b32.xlu1 %v2549_v12, %s3375_s13  ;;  %1858 = vrot.lane.b32.xlu0 %v5115_v54, %s3376_s14 }
 0x520   : > { %v2501_v49 = vadd.f32 %v2499_v23, %v2487_v50 }
 0x521   : > { %v2521_v2 = vpop.permute.xlu1 %2520 }
 0x522   : > { %v2525_v0 = vmul.f32 %v2521_v2, %v6228_v10  ;;  %v6248_v10 = vmov %v6247_v5 }
 0x523   : > { %1860 = vrot.lane.b32.xlu1 %v5123_v1, %s3376_s14 }
 0x581   : > { %v2505_v33 = vpop.permute.xlu0 %2504 }
 0x582   : > { %v2510_v30 = vmul.f32 %v2505_v33, %v6215_v9 }
 0x584   : > { %v2512_v48 = vadd.f32 %v2510_v30, %v2500_v42  ;;  %v2551_v30 = vmul.f32 %v2549_v12, %v6210_v41 }
 0x585   : > { %v2507_v16 = vpop.permute.xlu1 %2506  ;;  %v2529_v38 = vpop.permute.xlu0 %2528 }
 0x586   : > { %v2516_v15 = vadd.f32 %v2514_v35, %v2512_v48  ;;  %v2511_v19 = vmul.f32 %v2507_v16, %v6214_v11  ;;  %v2534_v62 = vmul.f32 %v2529_v38, %v6207_v60 }
 0x588   : > { %v2513_v43 = vadd.f32 %v2511_v19, %v2501_v49  ;;  %v2526_v39 = vadd.f32 %v2524_v40, %v2516_v15 }
 0x589   : > { %v2531_v28 = vpop.permute.xlu1 %2530  ;;  %v2557_v29 = vpop.permute.xlu0 %2556 }
 0x58a   : > { %v2517_v55 = vadd.f32 %v2515_v13, %v2513_v43  ;;  %v2536_v3 = vadd.f32 %v2534_v62, %v2526_v39  ;;  %v2535_v22 = vmul.f32 %v2531_v28, %v6212_v27  ;;  %v2562_v33 = vmul.f32 %v2557_v29, %v6229_v56 }
 0x58c   : > { %v2527_v37 = vadd.f32 %v2525_v0, %v2517_v55  ;;  %v2552_v59 = vadd.f32 %v2550_v34, %v2536_v3 }
 0x58d   : > { %v2559_v42 = vpop.permute.xlu1 %2558  ;;  %v2569_v23 = vpop.permute.xlu0 %2568 }
 0x58e   : > { %v2537_v50 = vadd.f32 %v2535_v22, %v2527_v37  ;;  %v2564_v35 = vadd.f32 %v2562_v33, %v2552_v59  ;;  %v2574_v48 = vmul.f32 %v2569_v23, %v6213_v18  ;;  %v2563_v53 = vmul.f32 %v2559_v42, %v6230_v32  ;;  %v6252_v32 = vld [vmem:[#allocation37_spill] sm:$0xff] }
 0x590   : > { %v2553_v16 = vadd.f32 %v2551_v30, %v2537_v50  ;;  %v5154_v2 = vadd.f32 %v2574_v48, %v2564_v35  ;;  %v6239_v35 = vld [vmem:[#allocation27_spill] sm:$0xff] }
 0x591   : > { %v2571_v38 = vpop.permute.xlu1 %2570  ;;  %v1859_v55 = vpop.permute.xlu0 %1858 }
 0x592   : > { %6231 = vst [vmem:[#allocation76_spill] sm:$0xff] %v5154_v2  ;;  %v2565_v49 = vadd.f32 %v2563_v53, %v2553_v16  ;;  %v2575_v40 = vmul.f32 %v2571_v38, %v6211_v31  ;;  %v2614_v15 = vmul.f32 %v5154_v2, %v6215_v9  ;;  %v2774_v13 = vmul.f32 %v5154_v2, %v6213_v18 }
 0x593   : > { %v2696_v39 = vmul.f32 %v5154_v2, %v6207_v60  ;;  %v2578_v28 = vmul.f32 %v5154_v2, %v6217_v7  ;;  %v2738_v34 = vmul.f32 %v5154_v2, %v6216_v8  ;;  %v1888_v16 = vmul.f32 %v5067_v14, %v6203_v46 }
 0x594   : > { %v5159_v19 = vadd.f32 %v2575_v40, %v2565_v49  ;;  %2618 = vrot.lane.b32.xlu0 %v2614_v15, %s3377_s17  ;;  %v1864_v53 = vmul.f32 %v1859_v55, %v6205_v4  ;;  %v1894_v49 = vmul.f32 %v5067_v14, %v3521_v36  ;;  %v6240_v15 = vld [vmem:[#allocation46_spill] sm:$0xff]  ;;  %v1889_v55 = vmul.f32 %v5071_v6, %v6203_v46 }
 0x595   : > { %v1861_v3 = vpop.permute.xlu1 %1860  ;;  %v5248_v8 = vmul.f32 %v5071_v6, %v6240_v15 }
 0x596   : > { %6232 = vst [vmem:[#allocation77_spill] sm:$0xff] %v5159_v19  ;;  %v2615_v12 = vmul.f32 %v5159_v19, %v6214_v11  ;;  %v2775_v43 = vmul.f32 %v5159_v19, %v6211_v31  ;;  %v2697_v62 = vmul.f32 %v5159_v19, %v6212_v27  ;;  %v2579_v29 = vmul.f32 %v5159_v19, %v6206_v61  ;;  %v6245_v11 = vld [vmem:[#allocation44_spill] sm:$0xff] }
 0x597   : > { %v2739_v0 = vmul.f32 %v5159_v19, %v6210_v41  ;;  %v1865_v41 = vmul.f32 %v1861_v3, %v6205_v4  ;;  %v6253_v3 = vld [vmem:[#allocation26_spill] sm:$0xff] }
 0x598   : > { %2620 = vrot.lane.b32.xlu1 %v2615_v12, %s3377_s17  ;;  %2778 = vrot.lane.b32.xlu0 %v2774_v13, %s3377_s17  ;;  %v1922_v12 = vmul.f32 %v5067_v14, %v6240_v15  ;;  %v6241_v13 = vld [vmem:[#allocation47_spill] sm:$0xff] }
 0x599   : > { %v5252_v9 = vmul.f32 %v5071_v6, %v6241_v13 }
 0x59c   : > { %2780 = vrot.lane.b32.xlu1 %v2775_v43, %s3377_s17  ;;  %2700 = vrot.lane.b32.xlu0 %v2696_v39, %s3377_s17  ;;  %v1966_v43 = vmul.f32 %v5067_v14, %v6241_v13 }
 0x5a0   : > { %2702 = vrot.lane.b32.xlu1 %v2697_v62, %s3377_s17  ;;  %1866 = vrot.lane.b32.xlu0 %v5115_v54, %s3378_s18  ;;  %v6242_v62 = vld [vmem:[#allocation49_spill] sm:$0xff] }
 0x5a4   : > { %1868 = vrot.lane.b32.xlu1 %v5123_v1, %s3378_s18  ;;  %1876 = vrot.lane.b32.xlu0 %v5115_v54, %s3377_s17 }
 0x5a8   : > { %1878 = vrot.lane.b32.xlu1 %v5123_v1, %s3377_s17  ;;  %1898 = vrot.lane.b32.xlu0 %v5115_v54, %s3371_s10  ;;  %v2660_v54 = vmul.f32 %v5154_v2, %v6208_v58  ;;  %v6255_v2 = vld [vmem:[#allocation25_spill] sm:$0xff] }
 0x5ac   : > { %1900 = vrot.lane.b32.xlu1 %v5123_v1, %s3371_s10  ;;  %2582 = vrot.lane.b32.xlu0 %v2578_v28, %s3377_s17  ;;  %v2661_v1 = vmul.f32 %v5159_v19, %v6209_v47  ;;  %v5230_v28 = vmul.f32 %v5067_v14, %v6242_v62  ;;  %v6246_v47 = vld [vmem:[#allocation33_spill] sm:$0xff] }
 0x5b0   : > { %2584 = vrot.lane.b32.xlu1 %v2579_v29, %s3377_s17  ;;  %2742 = vrot.lane.b32.xlu0 %v2738_v34, %s3377_s17  ;;  %v6243_v29 = vld [vmem:[#allocation50_spill] sm:$0xff] }
 0x5b1   : > { %v5234_v34 = vmul.f32 %v5067_v14, %v6243_v29  ;;  %v5262_v31 = vmul.f32 %v5071_v6, %v6243_v29 }
 0x5b4   : > { %2744 = vrot.lane.b32.xlu1 %v2739_v0, %s3377_s17  ;;  %2664 = vrot.lane.b32.xlu0 %v2660_v54, %s3377_s17  ;;  %v6244_v0 = vld [vmem:[#allocation51_spill] sm:$0xff] }
 0x5b5   : > { %v5238_v54 = vmul.f32 %v5067_v14, %v6244_v0  ;;  %v5256_v14 = vmul.f32 %v5071_v6, %v6242_v62  ;;  %v5269_v61 = vmul.f32 %v5071_v6, %v6244_v0 }
 0x5b8   : > { %2666 = vrot.lane.b32.xlu1 %v2661_v1, %s3377_s17 }
 0x606   : > { %v5193_v37 = vpop.permute.xlu0 %2618 }
 0x607   : > { %6233 = vst [vmem:[#allocation78_spill] sm:$0xff] %v5193_v37  ;;  %2624 = vrot.lane.b32.xlu0 %v5193_v37, %s3372_s0 }
 0x60a   : > { %v5197_v22 = vpop.permute.xlu1 %2620  ;;  %v5199_v59 = vpop.permute.xlu0 %2778 }
 0x60b   : > { %6234 = vst [vmem:[#allocation79_spill] sm:$0xff] %v5197_v22  ;;  %6235 = vst [vmem:[#allocation80_spill] sm:$0xff] %v5199_v59  ;;  %2627 = vrot.lane.b32.xlu1 %v5197_v22, %s3372_s0  ;;  %2784 = vrot.lane.b32.xlu0 %v5199_v59, %s3372_s0  ;;  %v6260_v22 = vld [vmem:[#allocation39_spill] sm:$0xff] }
 0x60e   : > { %v5205_v33 = vpop.permute.xlu1 %2780  ;;  %v5207_v42 = vpop.permute.xlu0 %2700 }
 0x60f   : > { %6236 = vst [vmem:[#allocation81_spill] sm:$0xff] %v5205_v33  ;;  %6237 = vst [vmem:[#allocation82_spill] sm:$0xff] %v5207_v42  ;;  %2787 = vrot.lane.b32.xlu1 %v5205_v33, %s3372_s0  ;;  %2706 = vrot.lane.b32.xlu0 %v5207_v42, %s3372_s0  ;;  %v6258_v33 = vld [vmem:[#allocation31_spill] sm:$0xff] }
 0x612   : > { %v5213_v23 = vpop.permute.xlu1 %2702  ;;  %v1867_v30 = vpop.permute.xlu0 %1866 }
 0x613   : > { %6238 = vst [vmem:[#allocation83_spill] sm:$0xff] %v5213_v23  ;;  %v1886_v50 = vmul.f32 %v1867_v30, %v6204_v44  ;;  %2709 = vrot.lane.b32.xlu1 %v5213_v23, %s3372_s0  ;;  %v1872_v48 = vmul.f32 %v1867_v30, %v6239_v35  ;;  %v1906_v60 = vmul.f32 %v1867_v30, %v3521_v36 }
 0x615   : > { %v1890_v39 = vadd.f32 %v1888_v16, %v1886_v50  ;;  %v1874_v1 = vadd.f32 %v1872_v48, %v1864_v53  ;;  %v1895_v16 = vmul.f32 %v5071_v6, %v3521_v36 }
 0x616   : > { %v1869_v38 = vpop.permute.xlu1 %1868  ;;  %v1877_v40 = vpop.permute.xlu0 %1876 }
 0x617   : > { %v1887_v7 = vmul.f32 %v1869_v38, %v6204_v44  ;;  %v1882_v50 = vmul.f32 %v1877_v40, %v6203_v46  ;;  %v1873_v48 = vmul.f32 %v1869_v38, %v6239_v35  ;;  %v1892_v18 = vmul.f32 %v1877_v40, %v6245_v11  ;;  %v6254_v44 = vld [vmem:[#allocation29_spill] sm:$0xff] }
 0x618   : > { %v1918_v58 = vmul.f32 %v1890_v39, %v6246_v47  ;;  %v1962_v52 = vmul.f32 %v1890_v39, %v6247_v5  ;;  %v2016_v21 = vmul.f32 %v1890_v39, %v6250_v17  ;;  %v2048_v56 = vmul.f32 %v1890_v39, %v6252_v32  ;;  %v6256_v5 = vld [vmem:[#allocation30_spill] sm:$0xff] }
 0x619   : > { %v1884_v53 = vadd.f32 %v1882_v50, %v1874_v1  ;;  %v6249_v1 = vld [vmem:[#allocation35_spill] sm:$0xff]  ;;  %v1891_v45 = vadd.f32 %v1889_v55, %v1887_v7  ;;  %v1875_v30 = vadd.f32 %v1873_v48, %v1865_v41  ;;  %v1896_v24 = vadd.f32 %v1894_v49, %v1892_v18  ;;  %v6259_v48 = vld [vmem:[#allocation28_spill] sm:$0xff] }
 0x61a   : > { %v1879_v27 = vpop.permute.xlu1 %1878  ;;  %v1994_v50 = vmul.f32 %v1890_v39, %v6249_v1  ;;  %v1910_v6 = vmul.f32 %v1877_v40, %v6255_v2  ;;  %v1907_v51 = vmul.f32 %v1869_v38, %v3521_v36  ;;  %v6257_v23 = vmov %v6256_v5 }
 0x61b   : > { %v1883_v63 = vmul.f32 %v1879_v27, %v6203_v46  ;;  %v1914_v4 = vmul.f32 %v1884_v53, %v6253_v3  ;;  %v1958_v19 = vmul.f32 %v1884_v53, %v6254_v44  ;;  %v2012_v35 = vmul.f32 %v1884_v53, %v6256_v5 }
 0x61c   : > { %v2044_v7 = vmul.f32 %v1884_v53, %v6258_v33  ;;  %v1893_v55 = vmul.f32 %v1879_v27, %v6245_v11  ;;  %v5284_v17 = vmul.f32 %v1879_v27, %v6255_v2  ;;  %v1919_v39 = vmul.f32 %v1891_v45, %v6246_v47 }
 0x61d   : > { %v1963_v46 = vmul.f32 %v1891_v45, %v6248_v10  ;;  %v1995_v41 = vmul.f32 %v1891_v45, %v6249_v1  ;;  %v1885_v18 = vadd.f32 %v1883_v63, %v1875_v30  ;;  %v2017_v49 = vmul.f32 %v1891_v45, %v6251_v57  ;;  %v1899_v30 = vpop.permute.xlu0 %1898  ;;  %v6261_v57 = vld [vmem:[#allocation40_spill] sm:$0xff] }
 0x61e   : > { %v1920_v40 = vadd.f32 %v1918_v58, %v1914_v4  ;;  %v1964_v38 = vadd.f32 %v1962_v52, %v1958_v19  ;;  %v1990_v5 = vmul.f32 %v1884_v53, %v6259_v48  ;;  %v2049_v42 = vmul.f32 %v1891_v45, %v6252_v32  ;;  %v6262_v52 = vld [vmem:[#allocation41_spill] sm:$0xff]  ;;  %v6264_v53 = vld [vmem:[#allocation42_spill] sm:$0xff]  ;;  %v1901_v15 = vpop.permute.xlu1 %1900 }
 0x61f   : > { %v1926_v11 = vmul.f32 %v1896_v24, %v6260_v22  ;;  %v1915_v27 = vmul.f32 %v1885_v18, %v6253_v3  ;;  %v1959_v59 = vmul.f32 %v1885_v18, %v6254_v44  ;;  %v2018_v47 = vadd.f32 %v2016_v21, %v2012_v35  ;;  %v6265_v44 = vld [vmem:[#allocation43_spill] sm:$0xff] }
 0x620   : > { %v2050_v37 = vadd.f32 %v2048_v56, %v2044_v7  ;;  %v1991_v10 = vmul.f32 %v1885_v18, %v6259_v48  ;;  %v2013_v63 = vmul.f32 %v1885_v18, %v6257_v23  ;;  %v1970_v4 = vmul.f32 %v1896_v24, %v6261_v57  ;;  %v6266_v7 = vld [vmem:[#allocation45_spill] sm:$0xff] }
 0x621   : > { %v6263_v58 = vmov %v6262_v52  ;;  %v2002_v19 = vmul.f32 %v1896_v24, %v6262_v52  ;;  %v2024_v1 = vmul.f32 %v1896_v24, %v6264_v53  ;;  %v1897_v45 = vadd.f32 %v1895_v16, %v1893_v55 }
 0x622   : > { %v1996_v32 = vadd.f32 %v1994_v50, %v1990_v5  ;;  %v2045_v0 = vmul.f32 %v1885_v18, %v6258_v33  ;;  %v1924_v3 = vadd.f32 %v1922_v12, %v1920_v40  ;;  %v1968_v29 = vadd.f32 %v1966_v43, %v1964_v38  ;;  %v6268_v18 = vld [vmem:[#allocation20_spill] sm:$0xff] }
 0x623   : > { %v2056_v21 = vmul.f32 %v1896_v24, %v6265_v44  ;;  %v1921_v56 = vadd.f32 %v1919_v39, %v1915_v27  ;;  %v1965_v35 = vadd.f32 %v1963_v46, %v1959_v59  ;;  %v1904_v48 = vmul.f32 %v1899_v30, %v6266_v7 }
 0x624   : > { %v1997_v23 = vadd.f32 %v1995_v41, %v1991_v10  ;;  %v2019_v62 = vadd.f32 %v2017_v49, %v2013_v63  ;;  %v2022_v13 = vadd.f32 %v5234_v34, %v2018_v47  ;;  %v2054_v52 = vadd.f32 %v5238_v54, %v2050_v37 }
 0x625   : > { %v1927_v16 = vmul.f32 %v1897_v45, %v6260_v22  ;;  %v1971_v50 = vmul.f32 %v1897_v45, %v6261_v57  ;;  %v2051_v55 = vadd.f32 %v2049_v42, %v2045_v0  ;;  %v1908_v12 = vadd.f32 %v1906_v60, %v1904_v48  ;;  %v6267_v60 = vld [vmem:[#allocation22_spill] sm:$0xff] }
 0x626   : > { %v2003_v43 = vmul.f32 %v1897_v45, %v6263_v58  ;;  %v1928_v24 = vadd.f32 %v1926_v11, %v1924_v3  ;;  %v1972_v39 = vadd.f32 %v1970_v4, %v1968_v29  ;;  %v2000_v46 = vadd.f32 %v5230_v28, %v1996_v32  ;;  %v6269_v29 = vld [vmem:[#allocation21_spill] sm:$0xff] }
 0x627   : > { %v1912_v59 = vadd.f32 %v1910_v6, %v1908_v12  ;;  %v1925_v10 = vadd.f32 %v5248_v8, %v1921_v56  ;;  %v1969_v47 = vadd.f32 %v5252_v9, %v1965_v35  ;;  %v1905_v37 = vmul.f32 %v1901_v15, %v6266_v7  ;;  %v6270_v8 = vld [vmem:[#allocation23_spill] sm:$0xff]  ;;  %v6271_v9 = vld [vmem:[#allocation24_spill] sm:$0xff] }
 0x628   : > { %v2026_v34 = vadd.f32 %v2024_v1, %v2022_v13  ;;  %v2058_v54 = vadd.f32 %v2056_v21, %v2054_v52  ;;  %v2001_v41 = vadd.f32 %v5256_v14, %v1997_v23  ;;  %v2023_v42 = vadd.f32 %v5262_v31, %v2019_v62  ;;  %v6272_v52 = vld [vmem:[#allocation15_spill] sm:$0xff] }
 0x629   : > { %v1930_v0 = vmul.f32 %v1912_v59, %v6267_v60  ;;  %v1974_v11 = vmul.f32 %v1912_v59, %v6268_v18  ;;  %v2028_v3 = vmul.f32 %v1912_v59, %v6269_v29  ;;  %v2055_v32 = vadd.f32 %v5269_v61, %v2051_v55 }
 0x62a   : > { %v2004_v28 = vadd.f32 %v2002_v19, %v2000_v46  ;;  %v2006_v6 = vmul.f32 %v1912_v59, %v6270_v8  ;;  %v2060_v49 = vmul.f32 %v6271_v9, %v1912_v59  ;;  %v1909_v15 = vadd.f32 %v1907_v51, %v1905_v37 }
 0x62b   : > { %v2025_v13 = vmul.f32 %v1897_v45, %v6264_v53  ;;  %v2057_v23 = vmul.f32 %v1897_v45, %v6265_v44  ;;  %v1932_v14 = vadd.f32 %v1930_v0, %v1928_v24  ;;  %v1976_v31 = vadd.f32 %v1974_v11, %v1972_v39 }
 0x62c   : > { %v2030_v62 = vadd.f32 %v2028_v3, %v2026_v34  ;;  %v1929_v1 = vadd.f32 %v1927_v16, %v1925_v10  ;;  %v1973_v40 = vadd.f32 %v1971_v50, %v1969_v47  ;;  %v1913_v38 = vadd.f32 %v5284_v17, %v1909_v15 }
 0x62d   : > { %v5323_v48 = vadd.f32 %v2060_v49, %v2058_v54  ;;  %v2005_v61 = vadd.f32 %v2003_v43, %v2001_v41  ;;  %v2027_v5 = vadd.f32 %v2025_v13, %v2023_v42  ;;  %v2059_v27 = vadd.f32 %v2057_v23, %v2055_v32  ;;  %v6274_v42 = vld [vmem:[#allocation19_spill] sm:$0xff]  ;;  %v6275_v13 = vld [vmem:[#allocation17_spill] sm:$0xff] }
 0x62e   : > { %v1934_v63 = vrot.slane %v1932_v14, 2  ;;  %v1940_v30 = vrot.slane %v1932_v14, 1  ;;  %v1948_v4 = vrot.slane %v1932_v14, 7  ;;  %v2008_v51 = vadd.f32 %v2006_v6, %v2004_v28 }
 0x62f   : > { %v1978_v19 = vrot.slane %v1976_v31, 1  ;;  %v1984_v21 = vmul.f32 0.0, %v1976_v31  ;;  %v1931_v45 = vmul.f32 %v1913_v38, %v6267_v60  ;;  %v1975_v56 = vmul.f32 %v1913_v38, %v6268_v18  ;;  %v6276_v31 = vld [vmem:[#allocation18_spill] sm:$0xff] }
 0x630   : > { %v2032_v35 = vrot.slane %v2030_v62, 7  ;;  %v6273_v16 = vmov %v6272_v52  ;;  %v2038_v50 = vmul.f32 %v6272_v52, %v2030_v62  ;;  %v2029_v17 = vmul.f32 %v1913_v38, %v6269_v29 }
 0x631   : > { %v2061_v55 = vmul.f32 %v6271_v9, %v1913_v38  ;;  %v2064_v12 = vrot.slane %v5323_v48, 6  ;;  %v2070_v43 = vrot.slane %v5323_v48, 1  ;;  %v1933_v24 = vadd.f32 %v1931_v45, %v1929_v1 }
 0x632   : > { %v1977_v39 = vadd.f32 %v1975_v56, %v1973_v40  ;;  %v2078_v46 = vrot.slane %v5323_v48, 7  ;;  %v2007_v59 = vmul.f32 %v1913_v38, %v6270_v8  ;;  %v2031_v10 = vadd.f32 %v2029_v17, %v2027_v5 }
 0x633   : > { %v2063_v47 = vadd.f32 %v2061_v55, %v2059_v27  ;;  %v1935_v37 = vrot.slane %v1933_v24, 2  ;;  %v1941_v34 = vrot.slane %v1933_v24, 1  ;;  %v1949_v54 = vrot.slane %v1933_v24, 7 }
 0x634   : > { %v1979_v41 = vrot.slane %v1977_v39, 1  ;;  %v1985_v0 = vmul.f32 %v6274_v42, %v1977_v39  ;;  %v2033_v11 = vrot.slane %v2031_v10, 7  ;;  %v2039_v3 = vmul.f32 0.0, %v2031_v10 }
 0x635   : > { %v2065_v32 = vrot.slane %v2063_v47, 6  ;;  %v1936_v28 = vsel %vm1462_vm13, %v1934_v63, %v1935_v37  ;;  %v1937_v6 = vsel %vm1462_vm13, %v1935_v37, %v1934_v63  ;;  %v1942_v49 = vsel %vm253_vm11, %v1940_v30, %v1941_v34 }
 0x636   : > { %v1943_v15 = vsel %vm253_vm11, %v1941_v34, %v1940_v30  ;;  %v1939_v23 = vmul.f32 %v6275_v13, %v1937_v6  ;;  %v1944_v14 = vmul.f32 0.0, %v1942_v49  ;;  %v1950_v1 = vsel %vm205_vm0, %v1948_v4, %v1949_v54 }
 0x637   : > { %v1945_v62 = vmul.f32 %v6276_v31, %v1943_v15  ;;  %v1951_v40 = vsel %vm205_vm0, %v1949_v54, %v1948_v4  ;;  %v1953_v38 = vmul.f32 %v6274_v42, %v1950_v1  ;;  %v1980_v48 = vsel %vm253_vm11, %v1978_v19, %v1979_v41 }
 0x638   : > { %v1981_v5 = vsel %vm253_vm11, %v1979_v41, %v1978_v19  ;;  %v1946_v27 = vadd.f32 %v1944_v14, %v1936_v28  ;;  %v1952_v30 = vmul.f32 0.0, %v1951_v40  ;;  %v1986_v56 = vadd.f32 %v1984_v21, %v1980_v48 }
 0x639   : > { %v1947_v63 = vadd.f32 %v1945_v62, %v1939_v23  ;;  %v1983_v45 = vmul.f32 %v3482_v25, %v1981_v5  ;;  %v2009_v52 = vadd.f32 %v2007_v59, %v2005_v61  ;;  %v2034_v17 = vsel %vm205_vm0, %v2032_v35, %v2033_v11  ;;  %v6277_v59 = vld [vmem:[#allocation14_spill] sm:$0xff]  ;;  %v6278_v23 = vld [vmem:[#allocation16_spill] sm:$0xff] }
 0x63a   : > { %v2035_v4 = vsel %vm205_vm0, %v2033_v11, %v2032_v35  ;;  %v1954_v55 = vadd.f32 %v1952_v30, %v1946_v27  ;;  %v2041_v37 = vadd.f32 %v2039_v3, %v2034_v17  ;;  %v2067_v19 = vsel %vm1421_vm12, %v2065_v32, %v2064_v12 }
 0x63b   : > { %v1955_v24 = vadd.f32 %v1953_v38, %v1947_v63  ;;  %v1987_v39 = vadd.f32 %v1985_v0, %v1983_v45  ;;  %v2036_v10 = vmul.f32 %v6202_v20, %v2035_v4  ;;  %v2071_v34 = vrot.slane %v2063_v47, 1 }
 0x63c   : > { %v2079_v54 = vrot.slane %v2063_v47, 7  ;;  %v1988_v41 = vadd.f32 %v1986_v56, %v1954_v55  ;;  %v2068_v28 = vmul.f32 %v6277_v59, %v2067_v19 }
 0x63d   : > { %v1989_v21 = vadd.f32 %v1987_v39, %v1955_v24  ;;  %v2040_v61 = vadd.f32 %v2038_v50, %v2036_v10  ;;  %v2072_v6 = vsel %vm253_vm11, %v2070_v43, %v2071_v34  ;;  %v2073_v35 = vsel %vm253_vm11, %v2071_v34, %v2070_v43 }
 0x63e   : > { %v2080_v0 = vsel %vm205_vm0, %v2078_v46, %v2079_v54  ;;  %v2081_v11 = vsel %vm205_vm0, %v2079_v54, %v2078_v46  ;;  %v2010_v3 = vadd.f32 %v2008_v51, %v1988_v41  ;;  %v2074_v47 = vmul.f32 %v6273_v16, %v2072_v6 }
 0x63f   : > { %v2011_v49 = vadd.f32 %v2009_v52, %v1989_v21  ;;  %v2075_v15 = vmul.f32 0.0, %v2073_v35  ;;  %v2066_v50 = vsel %vm1421_vm12, %v2064_v12, %v2065_v32  ;;  %v2082_v14 = vmul.f32 %v6278_v23, %v2081_v11 }
 0x640   : > { %v2083_v62 = vmul.f32 0.0, %v2080_v0  ;;  %v2042_v1 = vadd.f32 %v2040_v61, %v2010_v3  ;;  %v2076_v43 = vadd.f32 %v2074_v47, %v2068_v28 }
 0x641   : > { %v2043_v40 = vadd.f32 %v2041_v37, %v2011_v49  ;;  %v2077_v38 = vadd.f32 %v2075_v15, %v2066_v50 }
 0x642   : > { %v2084_v48 = vadd.f32 %v2082_v14, %v2076_v43 }
 0x643   : > { %v2085_v5 = vadd.f32 %v2083_v62, %v2077_v38 }
 0x644   : > { %v5375_v27 = vadd.f32 %v2084_v48, %v2042_v1 }
 0x645   : > { %v5377_v46 = vadd.f32 %v2085_v5, %v2043_v40 }
 0x646   : > { %v2090_v63 = vrot.slane %v5375_v27, 6  ;;  %v2094_v12 = vmul.f32 0.0, %v5375_v27  ;;  %v2112_v56 = vrot.slane %v5375_v27, 7  ;;  %v2118_v52 = vmul.f32 %v6202_v20, %v5375_v27  ;;  %v6294_v20 = vld [vmem:[#allocation81_spill] sm:$0xff] }
 0x647   : > { %v2089_v51 = vmul.f32 %v6275_v13, %v5377_v46  ;;  %v2095_v32 = vmul.f32 %v6276_v31, %v5377_v46  ;;  %v2103_v30 = vmul.f32 %v6274_v42, %v5377_v46  ;;  %v2111_v45 = vmul.f32 %v3482_v25, %v5377_v46 }
 0x648   : > { %v2096_v4 = vrot.slane %v2094_v12, 7  ;;  %v2104_v24 = vrot.slane %v2094_v12, 1  ;;  %v2120_v37 = vrot.slane %v2118_v52, 1  ;;  %v2121_v19 = vrot.slane %v5377_v46, 1 }
 0x649   : > { %v2091_v17 = vrot.slane %v2089_v51, 6  ;;  %v2097_v55 = vrot.slane %v2095_v32, 7  ;;  %v2105_v39 = vrot.slane %v2103_v30, 1  ;;  %v2113_v10 = vrot.slane %v2111_v45, 7 }
 0x64a   : > { %v2124_v41 = vmul.f32 %v6273_v16, %v5375_v27  ;;  %v2125_v21 = vmul.f32 0.0, %v5377_v46  ;;  %v2122_v35 = vsel %vm253_vm11, %v2120_v37, %v2121_v19  ;;  %v2128_v3 = vmul.f32 %v6277_v59, %v5375_v27  ;;  %v6287_v16 = vld [vmem:[#allocation78_spill] sm:$0xff] }
 0x64b   : > { %v2093_v34 = vsel %vm1421_vm12, %v2091_v17, %v2090_v63  ;;  %v2099_v54 = vsel %vm205_vm0, %v2097_v55, %v2096_v4  ;;  %v2106_v28 = vsel %vm253_vm11, %v2104_v24, %v2105_v39  ;;  %v2115_v6 = vsel %vm205_vm0, %v2113_v10, %v2112_v56 }
 0x64c   : > { %v2100_v61 = vadd.f32 %v2099_v54, %v2093_v34  ;;  %v5406_v0 = vadd.f32 %v2115_v6, %v2094_v12  ;;  %v5408_v11 = vadd.f32 %v2124_v41, %v2122_v35  ;;  %v2131_v49 = vrot.slane %v5377_v46, 2 }
 0x64d   : > { %v2134_v15 = vrot.slane %v2124_v41, 7  ;;  %v2135_v50 = vrot.slane %v2125_v21, 7  ;;  %v2140_v14 = vmul.f32 %v6278_v23, %v5375_v27  ;;  %v2130_v62 = vrot.slane %v2128_v3, 2 }
 0x64e   : > { %v5413_v47 = vadd.f32 %v2106_v28, %v2100_v61  ;;  %v2143_v1 = vrot.slane %v2125_v21, 1  ;;  %v2378_v40 = vmul.f32 %v5406_v0, %v6268_v18  ;;  %v2382_v43 = vmul.f32 %v5375_v27, %v6270_v8 }
 0x64f   : > { %v2137_v38 = vsel %vm205_vm0, %v2135_v50, %v2134_v15  ;;  %v2142_v48 = vrot.slane %v2140_v14, 1  ;;  %v2386_v51 = vmul.f32 %v5408_v11, %v6269_v29  ;;  %v2132_v12 = vsel %vm1462_vm13, %v2130_v62, %v2131_v49 }
 0x650   : > { %v2374_v5 = vmul.f32 %v5413_v47, %v6267_v60  ;;  %v2092_v32 = vsel %vm1421_vm12, %v2090_v63, %v2091_v17  ;;  %v2098_v45 = vsel %vm205_vm0, %v2096_v4, %v2097_v55  ;;  %v2107_v52 = vsel %vm253_vm11, %v2105_v39, %v2104_v24 }
 0x651   : > { %v2138_v34 = vadd.f32 %v2137_v38, %v2132_v12  ;;  %v2144_v54 = vsel %vm253_vm11, %v2142_v48, %v2143_v1  ;;  %v2101_v61 = vadd.f32 %v2098_v45, %v2092_v32  ;;  %v2114_v28 = vsel %vm205_vm0, %v2112_v56, %v2113_v10 }
 0x652   : > { %v2380_v41 = vadd.f32 %v2378_v40, %v2374_v5  ;;  %v2123_v6 = vsel %vm253_vm11, %v2121_v19, %v2120_v37  ;;  %v2133_v63 = vsel %vm1462_vm13, %v2131_v49, %v2130_v62  ;;  %v2136_v17 = vsel %vm205_vm0, %v2134_v15, %v2135_v50  ;;  %v5483_v5 = vpop.permute.xlu0 %2582 }
 0x653   : > { %v5445_v4 = vadd.f32 %v2144_v54, %v2138_v34  ;;  %v5447_v24 = vadd.f32 %v2107_v52, %v2101_v61  ;;  %v5449_v39 = vadd.f32 %v2114_v28, %v2103_v30  ;;  %v5451_v35 = vadd.f32 %v2125_v21, %v2123_v6  ;;  %v5505_v54 = vpop.permute.xlu1 %2584 }
 0x654   : > { %v2384_v55 = vadd.f32 %v2382_v43, %v2380_v41  ;;  %v2139_v3 = vadd.f32 %v2136_v17, %v2133_v63  ;;  %v2145_v49 = vsel %vm253_vm11, %v2143_v1, %v2142_v48  ;;  %v2383_v50 = vmul.f32 %v5377_v46, %v6270_v8 }
 0x655   : > { %v2390_v10 = vmul.f32 %v6271_v9, %v5445_v4  ;;  %v2375_v37 = vmul.f32 %v5447_v24, %v6267_v60  ;;  %v2379_v19 = vmul.f32 %v5449_v39, %v6268_v18  ;;  %v2387_v40 = vmul.f32 %v5451_v35, %v6269_v29 }
 0x656   : > { %v2388_v56 = vadd.f32 %v2386_v51, %v2384_v55  ;;  %v5463_v30 = vadd.f32 %v2145_v49, %v2139_v3  ;;  %v2318_v12 = vmul.f32 %v5413_v47, %v6260_v22  ;;  %v2322_v32 = vmul.f32 %v5406_v0, %v6261_v57  ;;  %v5507_v41 = vpop.permute.xlu0 %2742 }
 0x657   : > { %v2381_v21 = vadd.f32 %v2379_v19, %v2375_v37  ;;  %v2326_v34 = vmul.f32 %v5375_v27, %v6263_v58  ;;  %v2319_v61 = vmul.f32 %v5447_v24, %v6260_v22  ;;  %v2323_v28 = vmul.f32 %v5449_v39, %v6261_v57  ;;  %v6279_v19 = vld [vmem:[#allocation46_spill] sm:$0xff] }
 0x658   : > { %v5461_v15 = vadd.f32 %v2390_v10, %v2388_v56  ;;  %v2391_v43 = vmul.f32 %v6271_v9, %v5463_v30  ;;  %v2324_v52 = vadd.f32 %v2322_v32, %v2318_v12  ;;  %v2330_v63 = vmul.f32 %v5408_v11, %v6264_v53 }
 0x659   : > { %v2385_v62 = vadd.f32 %v2383_v50, %v2381_v21  ;;  %v2325_v17 = vadd.f32 %v2323_v28, %v2319_v61  ;;  %v2327_v55 = vmul.f32 %v5377_v46, %v6263_v58  ;;  %v2334_v56 = vmul.f32 %v5445_v4, %v6265_v44  ;;  %v6280_v50 = vld [vmem:[#allocation47_spill] sm:$0xff]  ;;  %v6281_v61 = vld [vmem:[#allocation49_spill] sm:$0xff] }
 0x65a   : > { %v5469_v14 = vmul.f32 %v5461_v15, %v3521_v36  ;;  %v5481_v48 = vmul.f32 %v5461_v15, %v6255_v2  ;;  %v2328_v6 = vadd.f32 %v2326_v34, %v2324_v52  ;;  %v2331_v37 = vmul.f32 %v5451_v35, %v6264_v53 }
 0x65b   : > { %v2389_v1 = vadd.f32 %v2387_v40, %v2385_v62  ;;  %v2329_v10 = vadd.f32 %v2327_v55, %v2325_v17  ;;  %v2288_v49 = vmul.f32 %v5413_v47, %v6279_v19  ;;  %v2292_v62 = vmul.f32 %v5406_v0, %v6280_v50  ;;  %v5533_v40 = vpop.permute.xlu1 %2744 }
 0x65c   : > { %2410 = vrot.lane.b32.xlu0 %v5469_v14, %s3372_s0  ;;  %v2332_v3 = vadd.f32 %v2330_v63, %v2328_v6  ;;  %v2335_v12 = vmul.f32 %v5463_v30, %v6265_v44  ;;  %v2289_v32 = vmul.f32 %v5447_v24, %v6279_v19  ;;  %v2293_v52 = vmul.f32 %v5449_v39, %v6280_v50  ;;  %v6289_v19 = vld [vmem:[#allocation33_spill] sm:$0xff] }
 0x65d   : > { %v5477_v38 = vadd.f32 %v2391_v43, %v2389_v1  ;;  %v5535_v1 = vpop.permute.xlu0 %2664  ;;  %v2333_v43 = vadd.f32 %v2331_v37, %v2329_v10  ;;  %v2294_v34 = vadd.f32 %v2292_v62, %v2288_v49  ;;  %v2296_v28 = vmul.f32 %v5375_v27, %v6281_v61  ;;  %v6283_v10 = vld [vmem:[#allocation26_spill] sm:$0xff] }
 0x65e   : > { %v5529_v21 = vadd.f32 %v2334_v56, %v2332_v3  ;;  %v2295_v63 = vadd.f32 %v2293_v52, %v2289_v32  ;;  %v2297_v17 = vmul.f32 %v5377_v46, %v6281_v61  ;;  %v6282_v3 = vld [vmem:[#allocation50_spill] sm:$0xff]  ;;  %v2148_v37 = vmul.f32 %v5413_v47, %v6283_v10 }
 0x65f   : > { %v5487_v51 = vmul.f32 %v5477_v38, %v3521_v36  ;;  %v5499_v45 = vmul.f32 %v5477_v38, %v6255_v2  ;;  %v5547_v6 = vadd.f32 %v2335_v12, %v2333_v43  ;;  %v2298_v55 = vadd.f32 %v2296_v28, %v2294_v34  ;;  %v6284_v12 = vld [vmem:[#allocation51_spill] sm:$0xff]  ;;  %v5561_v52 = vpop.permute.xlu1 %2666  ;;  %v6285_v2 = vld [vmem:[#allocation29_spill] sm:$0xff] }
 0x660   : > { %2434 = vrot.lane.b32.xlu0 %v5481_v48, %s3372_s0  ;;  %v2300_v56 = vmul.f32 %v5408_v11, %v6282_v3  ;;  %v2299_v49 = vadd.f32 %v2297_v17, %v2295_v63  ;;  %v2301_v62 = vmul.f32 %v5451_v35, %v6282_v3  ;;  %v2304_v32 = vmul.f32 %v5445_v4, %v6284_v12  ;;  %v6286_v3 = vld [vmem:[#allocation28_spill] sm:$0xff] }
 0x661   : > { %2413 = vrot.lane.b32.xlu1 %v5487_v51, %s3372_s0  ;;  %v2152_v8 = vmul.f32 %v5406_v0, %v6285_v2  ;;  %v2305_v28 = vmul.f32 %v5463_v30, %v6284_v12  ;;  %v2156_v9 = vmul.f32 %v5375_v27, %v6286_v3 }
 0x662   : > { %v2302_v43 = vadd.f32 %v2300_v56, %v2298_v55  ;;  %v2303_v34 = vadd.f32 %v2301_v62, %v2299_v49  ;;  %v2149_v55 = vmul.f32 %v5447_v24, %v6283_v10  ;;  %v2153_v49 = vmul.f32 %v5449_v39, %v6285_v2 }
 0x663   : > { %v2154_v17 = vadd.f32 %v2152_v8, %v2148_v37  ;;  %v6288_v8 = vld [vmem:[#allocation30_spill] sm:$0xff]  ;;  %v2232_v2 = vmul.f32 %v5413_v47, %v6289_v19 }
 0x664   : > { %2588 = vrot.lane.b32.xlu0 %v5483_v5, %s3372_s0  ;;  %v5569_v63 = vadd.f32 %v2304_v32, %v2302_v43  ;;  %v5573_v56 = vadd.f32 %v2305_v28, %v2303_v34  ;;  %v2155_v12 = vadd.f32 %v2153_v49, %v2149_v55  ;;  %v2160_v37 = vmul.f32 %v5408_v11, %v6288_v8  ;;  %v6291_v55 = vld [vmem:[#allocation79_spill] sm:$0xff] }
 0x665   : > { %2437 = vrot.lane.b32.xlu1 %v5499_v45, %s3372_s0  ;;  %v2158_v13 = vadd.f32 %v2156_v9, %v2154_v17  ;;  %v2157_v43 = vmul.f32 %v5377_v46, %v6286_v3  ;;  %v6290_v9 = vld [vmem:[#allocation80_spill] sm:$0xff] }
 0x667   : > { %v2162_v28 = vadd.f32 %v2160_v37, %v2158_v13  ;;  %v2159_v10 = vadd.f32 %v2157_v43, %v2155_v12  ;;  %v2161_v13 = vmul.f32 %v5451_v35, %v6288_v8  ;;  %v6292_v12 = vld [vmem:[#allocation34_spill] sm:$0xff] }
 0x668   : > { %2748 = vrot.lane.b32.xlu0 %v5507_v41, %s3372_s0 }
 0x669   : > { %2591 = vrot.lane.b32.xlu1 %v5505_v54, %s3372_s0 }
 0x66c   : > { %2670 = vrot.lane.b32.xlu0 %v5535_v1, %s3372_s0 }
 0x66d   : > { %2751 = vrot.lane.b32.xlu1 %v5533_v40, %s3372_s0 }
 0x671   : > { %2673 = vrot.lane.b32.xlu1 %v5561_v52, %s3372_s0 }
 0x679   : > { %v2625_v62 = vpop.permute.xlu0 %2624 }
 0x67a   : > { %v2626_v18 = vsel %vm210_vm6, %v2625_v62, %v6287_v16  ;;  %v2236_v62 = vmul.f32 %v5406_v0, %v6292_v12  ;;  %v2165_v0 = vmul.f32 %v5463_v30, %v6258_v33 }
 0x67b   : > { %2630 = vrot.lane.b32.xlu0 %v2626_v18, %s3372_s0  ;;  %v2164_v18 = vmul.f32 %v5445_v4, %v6258_v33 }
 0x67c   : > { %v2238_v3 = vadd.f32 %v2236_v62, %v2232_v2  ;;  %v2237_v2 = vmul.f32 %v5449_v39, %v6292_v12  ;;  %v6303_v12 = vld [vmem:[#allocation77_spill] sm:$0xff] }
 0x67d   : > { %v2628_v32 = vpop.permute.xlu1 %2627  ;;  %v2785_v34 = vpop.permute.xlu0 %2784  ;;  %v5600_v43 = vadd.f32 %v2164_v18, %v2162_v28  ;;  %v6295_v28 = vld [vmem:[#allocation35_spill] sm:$0xff] }
 0x67e   : > { %v2786_v17 = vsel %vm210_vm6, %v2785_v34, %v6290_v9  ;;  %v2629_v49 = vsel %vm210_vm6, %v2628_v32, %v6291_v55  ;;  %v2163_v34 = vadd.f32 %v2161_v13, %v2159_v10  ;;  %v2233_v32 = vmul.f32 %v5447_v24, %v6289_v19  ;;  %v6296_v18 = vld [vmem:[#allocation27_spill] sm:$0xff]  ;;  %v6304_v19 = vld [vmem:[#allocation32_spill] sm:$0xff] }
 0x67f   : > { %2632 = vrot.lane.b32.xlu1 %v2629_v49, %s3372_s0  ;;  %2790 = vrot.lane.b32.xlu0 %v2786_v17, %s3372_s0  ;;  %v6293_v49 = vld [vmem:[#allocation82_spill] sm:$0xff]  ;;  %v2240_v10 = vmul.f32 %v5375_v27, %v6295_v28  ;;  %v5618_v13 = vmul.f32 %v5600_v43, %v6296_v18  ;;  %v6298_v27 = vld [vmem:[#allocation36_spill] sm:$0xff]  ;;  %v2241_v8 = vmul.f32 %v5377_v46, %v6295_v28 }
 0x680   : > { %v5620_v62 = vadd.f32 %v2165_v0, %v2163_v34  ;;  %v2244_v39 = vmul.f32 %v5408_v11, %v6298_v27  ;;  %v2245_v46 = vmul.f32 %v5451_v35, %v6298_v27  ;;  %v5648_v23 = vmul.f32 %v5600_v43, %v6304_v19 }
 0x681   : > { %v2788_v47 = vpop.permute.xlu1 %2787  ;;  %v2707_v37 = vpop.permute.xlu0 %2706 }
 0x682   : > { %v2708_v17 = vsel %vm210_vm6, %v2707_v37, %v6293_v49  ;;  %v2789_v22 = vsel %vm210_vm6, %v2788_v47, %v6294_v20  ;;  %v2242_v47 = vadd.f32 %v2240_v10, %v2238_v3  ;;  %v6297_v37 = vld [vmem:[#allocation83_spill] sm:$0xff]  ;;  %v5633_v34 = vmul.f32 %v5620_v62, %v6296_v18  ;;  %v6299_v3 = vld [vmem:[#allocation54_spill] sm:$0xff] }
 0x683   : > { %2792 = vrot.lane.b32.xlu1 %v2789_v22, %s3372_s0  ;;  %2712 = vrot.lane.b32.xlu0 %v2708_v17, %s3372_s0  ;;  %v2239_v22 = vadd.f32 %v2237_v2, %v2233_v32  ;;  %v6300_v32 = vld [vmem:[#allocation76_spill] sm:$0xff]  ;;  %v5659_v35 = vmul.f32 %v5620_v62, %v6304_v19 }
 0x684   : > { %v2602_v0 = vmul.f32 %v6300_v32, %v6299_v3  ;;  %v2246_v10 = vadd.f32 %v2244_v39, %v2242_v47 }
 0x685   : > { %v2710_v24 = vpop.permute.xlu1 %2709  ;;  %v2243_v2 = vadd.f32 %v2241_v8, %v2239_v22  ;;  %v6305_v22 = vld [vmem:[#allocation38_spill] sm:$0xff] }
 0x686   : > { %v2711_v17 = vsel %vm210_vm6, %v2710_v24, %v6297_v37  ;;  %v6301_v24 = vld [vmem:[#allocation37_spill] sm:$0xff] }
 0x687   : > { %2714 = vrot.lane.b32.xlu1 %v2711_v17, %s3372_s0  ;;  %2184 = vrot.lane.b32.xlu0 %v5618_v13, %s3372_s0  ;;  %v2248_v11 = vmul.f32 %v5445_v4, %v6301_v24  ;;  %v6302_v17 = vld [vmem:[#allocation61_spill] sm:$0xff]  ;;  %v2247_v8 = vadd.f32 %v2245_v46, %v2243_v2  ;;  %v2249_v4 = vmul.f32 %v5463_v30, %v6301_v24 }
 0x688   : > { %v2603_v18 = vmul.f32 %v6303_v12, %v6302_v17  ;;  %v6306_v30 = vld [vmem:[#allocation53_spill] sm:$0xff]  ;;  %v6309_v17 = vld [vmem:[#allocation62_spill] sm:$0xff] }
 0x689   : > { %v5650_v47 = vadd.f32 %v2248_v11, %v2246_v10  ;;  %v5665_v3 = vadd.f32 %v2249_v4, %v2247_v8  ;;  %v6307_v10 = vld [vmem:[#allocation67_spill] sm:$0xff]  ;;  %v6308_v11 = vld [vmem:[#allocation52_spill] sm:$0xff]  ;;  %v2685_v8 = vmul.f32 %v6303_v12, %v6309_v17 }
 0x68a   : > { %v2763_v2 = vmul.f32 %v6303_v12, %v6307_v10  ;;  %v2684_v46 = vmul.f32 %v6300_v32, %v6308_v11  ;;  %v6310_v4 = vld [vmem:[#allocation44_spill] sm:$0xff]  ;;  %v5709_v12 = vmul.f32 %v5477_v38, %v6266_v7 }
 0x68b   : > { %2187 = vrot.lane.b32.xlu1 %v5633_v34, %s3372_s0  ;;  %2606 = vrot.lane.b32.xlu0 %v2602_v0, %s3371_s10  ;;  %v5663_v39 = vmul.f32 %v5650_v47, %v6305_v22  ;;  %v2762_v0 = vmul.f32 %v6300_v32, %v6306_v30  ;;  %v5697_v30 = vmul.f32 %v5547_v6, %v6310_v4 }
 0x68c   : > { %v5701_v32 = vmul.f32 %v5461_v15, %v6266_v7 }
 0x68f   : > { %2608 = vrot.lane.b32.xlu1 %v2603_v18, %s3371_s10  ;;  %2208 = vrot.lane.b32.xlu0 %v5648_v23, %s3372_s0  ;;  %v5673_v18 = vmul.f32 %v5665_v3, %v6305_v22  ;;  %v5690_v22 = vmul.f32 %v5529_v21, %v6310_v4 }
 0x693   : > { %2211 = vrot.lane.b32.xlu1 %v5659_v35, %s3372_s0  ;;  %2254 = vrot.lane.b32.xlu0 %v5663_v39, %s3372_s0 }
 0x697   : > { %2257 = vrot.lane.b32.xlu1 %v5673_v18, %s3372_s0  ;;  %2766 = vrot.lane.b32.xlu0 %v2762_v0, %s3371_s10 }
 0x69b   : > { %2768 = vrot.lane.b32.xlu1 %v2763_v2, %s3371_s10  ;;  %2688 = vrot.lane.b32.xlu0 %v2684_v46, %s3371_s10 }
 0x69f   : > { %2690 = vrot.lane.b32.xlu1 %v2685_v8, %s3371_s10  ;;  %2340 = vrot.lane.b32.xlu0 %v5690_v22, %s3372_s0 }
 0x6a3   : > { %2343 = vrot.lane.b32.xlu1 %v5697_v30, %s3372_s0  ;;  %2396 = vrot.lane.b32.xlu0 %v5701_v32, %s3372_s0 }
 0x6a7   : > { %2399 = vrot.lane.b32.xlu1 %v5709_v12, %s3372_s0 }
 0x6ce   : > { %v2411_v0 = vpop.permute.xlu0 %2410 }
 0x6cf   : > { %v2412_v10 = vsel %vm210_vm6, %v2411_v0, %v5469_v14 }
 0x6d0   : > { %2416 = vrot.lane.b32.xlu0 %v2412_v10, %s3372_s0 }
 0x6d2   : > { %v2435_v15 = vpop.permute.xlu0 %2434 }
 0x6d3   : > { %v2414_v2 = vpop.permute.xlu1 %2413 }
 0x6d4   : > { %v2415_v11 = vsel %vm210_vm6, %v2414_v2, %v5487_v51 }
 0x6d5   : > { %2418 = vrot.lane.b32.xlu1 %v2415_v11, %s3372_s0 }
 0x6d6   : > { %v2589_v46 = vpop.permute.xlu0 %2588 }
 0x6d7   : > { %v2590_v38 = vsel %vm210_vm6, %v2589_v46, %v5483_v5  ;;  %v2438_v17 = vpop.permute.xlu1 %2437 }
 0x6d8   : > { %2594 = vrot.lane.b32.xlu0 %v2590_v38, %s3372_s0 }
 0x6da   : > { %v2749_v8 = vpop.permute.xlu0 %2748 }
 0x6db   : > { %v2750_v0 = vsel %vm210_vm6, %v2749_v8, %v5507_v41  ;;  %v2592_v4 = vpop.permute.xlu1 %2591 }
 0x6dc   : > { %2754 = vrot.lane.b32.xlu0 %v2750_v0, %s3372_s0  ;;  %v2593_v10 = vsel %vm210_vm6, %v2592_v4, %v5505_v54 }
 0x6dd   : > { %2596 = vrot.lane.b32.xlu1 %v2593_v10, %s3372_s0 }
 0x6de   : > { %v2671_v2 = vpop.permute.xlu0 %2670 }
 0x6df   : > { %v2672_v11 = vsel %vm210_vm6, %v2671_v2, %v5535_v1  ;;  %v2752_v46 = vpop.permute.xlu1 %2751 }
 0x6e0   : > { %2676 = vrot.lane.b32.xlu0 %v2672_v11, %s3372_s0  ;;  %v2753_v38 = vsel %vm210_vm6, %v2752_v46, %v5533_v40 }
 0x6e1   : > { %2756 = vrot.lane.b32.xlu1 %v2753_v38, %s3372_s0 }
 0x6e3   : > { %v2674_v8 = vpop.permute.xlu1 %2673 }
 0x6e4   : > { %v2675_v0 = vsel %vm210_vm6, %v2674_v8, %v5561_v52 }
 0x6e5   : > { %2678 = vrot.lane.b32.xlu1 %v2675_v0, %s3372_s0 }
 0x6ed   : > { %v2631_v4 = vpop.permute.xlu0 %2630 }
 0x6ee   : > { %v2634_v10 = vsel %vm210_vm6, %v2631_v4, %v6287_v16 }
 0x6ef   : > { %2638 = vrot.lane.b32.xlu0 %v2634_v10, %s3371_s10 }
 0x6f1   : > { %v2633_v2 = vpop.permute.xlu1 %2632  ;;  %v2791_v7 = vpop.permute.xlu0 %2790 }
 0x6f2   : > { %v2635_v11 = vsel %vm210_vm6, %v2633_v2, %v6291_v55  ;;  %v2794_v46 = vsel %vm210_vm6, %v2791_v7, %v6290_v9  ;;  %v2436_v7 = vsel %vm210_vm6, %v2435_v15, %v5481_v48  ;;  %v6311_v2 = vld [vmem:[#allocation48_spill] sm:$0xff] }
 0x6f3   : > { %2640 = vrot.lane.b32.xlu1 %v2635_v11, %s3371_s10  ;;  %2798 = vrot.lane.b32.xlu0 %v2794_v46, %s3371_s10  ;;  %v2439_v11 = vsel %vm210_vm6, %v2438_v17, %v5499_v45  ;;  %v5769_v46 = vmul.f32 %v5620_v62, %v6311_v2 }
 0x6f5   : > { %v2793_v38 = vpop.permute.xlu1 %2792  ;;  %v2713_v8 = vpop.permute.xlu0 %2712 }
 0x6f6   : > { %v2795_v0 = vsel %vm210_vm6, %v2793_v38, %v6294_v20  ;;  %v2716_v16 = vsel %vm210_vm6, %v2713_v8, %v6293_v49  ;;  %v5760_v49 = vmul.f32 %v5600_v43, %v6311_v2 }
 0x6f7   : > { %2800 = vrot.lane.b32.xlu1 %v2795_v0, %s3371_s10  ;;  %2720 = vrot.lane.b32.xlu0 %v2716_v16, %s3371_s10 }
 0x6f9   : > { %v2715_v55 = vpop.permute.xlu1 %2714  ;;  %v2185_v4 = vpop.permute.xlu0 %2184 }
 0x6fa   : > { %v2717_v9 = vsel %vm210_vm6, %v2715_v55, %v6297_v37  ;;  %v2186_v38 = vsel %vm210_vm6, %v2185_v4, %v5618_v13 }
 0x6fb   : > { %2722 = vrot.lane.b32.xlu1 %v2717_v9, %s3371_s10  ;;  %2440 = vrot.lane.b32.xlu0 %v2436_v7, %s3372_s0 }
 0x6fd   : > { %v2188_v20 = vpop.permute.xlu1 %2187  ;;  %v2607_v10 = vpop.permute.xlu0 %2606 }
 0x6fe   : > { %v2189_v8 = vsel %vm210_vm6, %v2188_v20, %v5633_v34  ;;  %v2266_v20 = vmul.f32 %v5650_v47, %v6304_v19 }
 0x6ff   : > { %2442 = vrot.lane.b32.xlu1 %v2439_v11, %s3372_s0  ;;  %2170 = vrot.lane.b32.xlu0 %v5760_v49, %s3372_s0 }
 0x701   : > { %v2609_v15 = vpop.permute.xlu1 %2608  ;;  %v2209_v37 = vpop.permute.xlu0 %2208 }
 0x702   : > { %v2210_v0 = vsel %vm210_vm6, %v2209_v37, %v5648_v23 }
 0x703   : > { %2173 = vrot.lane.b32.xlu1 %v5769_v46, %s3372_s0  ;;  %2190 = vrot.lane.b32.xlu0 %v2186_v38, %s3372_s0  ;;  %v2267_v38 = vmul.f32 %v5665_v3, %v6304_v19  ;;  %v2352_v3 = vmul.f32 %v5529_v21, %v3521_v36 }
 0x705   : > { %v2212_v43 = vpop.permute.xlu1 %2211  ;;  %v2255_v17 = vpop.permute.xlu0 %2254 }
 0x706   : > { %v2213_v55 = vsel %vm210_vm6, %v2212_v43, %v5659_v35  ;;  %v2256_v4 = vsel %vm210_vm6, %v2255_v17, %v5663_v39 }
 0x707   : > { %2192 = vrot.lane.b32.xlu1 %v2189_v8, %s3372_s0  ;;  %2214 = vrot.lane.b32.xlu0 %v2210_v0, %s3372_s0 }
 0x709   : > { %v2258_v62 = vpop.permute.xlu1 %2257  ;;  %v2767_v16 = vpop.permute.xlu0 %2766 }
 0x70a   : > { %v2259_v2 = vsel %vm210_vm6, %v2258_v62, %v5673_v18 }
 0x70b   : > { %2216 = vrot.lane.b32.xlu1 %v2213_v55, %s3372_s0  ;;  %2260 = vrot.lane.b32.xlu0 %v2256_v4, %s3372_s0  ;;  %v2353_v55 = vmul.f32 %v5547_v6, %v3521_v36 }
 0x70d   : > { %v2769_v7 = vpop.permute.xlu1 %2768  ;;  %v2689_v9 = vpop.permute.xlu0 %2688 }
 0x70f   : > { %2262 = vrot.lane.b32.xlu1 %v2259_v2, %s3372_s0  ;;  %2270 = vrot.lane.b32.xlu0 %v2266_v20, %s3373_s11 }
 0x711   : > { %v2691_v11 = vpop.permute.xlu1 %2690  ;;  %v2341_v37 = vpop.permute.xlu0 %2340 }
 0x712   : > { %v2342_v43 = vsel %vm210_vm6, %v2341_v37, %v5690_v22 }
 0x713   : > { %2272 = vrot.lane.b32.xlu1 %v2267_v38, %s3373_s11  ;;  %2346 = vrot.lane.b32.xlu0 %v2342_v43, %s3372_s0 }
 0x715   : > { %v2344_v47 = vpop.permute.xlu1 %2343  ;;  %v2397_v17 = vpop.permute.xlu0 %2396 }
 0x716   : > { %v2345_v8 = vsel %vm210_vm6, %v2344_v47, %v5697_v30  ;;  %v2398_v0 = vsel %vm210_vm6, %v2397_v17, %v5701_v32 }
 0x717   : > { %2348 = vrot.lane.b32.xlu1 %v2345_v8, %s3372_s0  ;;  %2402 = vrot.lane.b32.xlu0 %v2398_v0, %s3372_s0 }
 0x719   : > { %v2400_v19 = vpop.permute.xlu1 %2399 }
 0x71a   : > { %v2401_v62 = vsel %vm210_vm6, %v2400_v19, %v5709_v12 }
 0x71b   : > { %2404 = vrot.lane.b32.xlu1 %v2401_v62, %s3372_s0  ;;  %2356 = vrot.lane.b32.xlu0 %v2352_v3, %s3374_s12 }
 0x71f   : > { %2358 = vrot.lane.b32.xlu1 %v2353_v55, %s3374_s12 }
 0x742   : > { %v2417_v4 = vpop.permute.xlu0 %2416 }
 0x743   : > { %v2420_v20 = vsel %vm210_vm6, %v2417_v4, %v5469_v14 }
 0x744   : > { %2424 = vrot.lane.b32.xlu0 %v2420_v20, %s3379_s19 }
 0x747   : > { %v2419_v2 = vpop.permute.xlu1 %2418 }
 0x748   : > { %v2421_v21 = vsel %vm210_vm6, %v2419_v2, %v5487_v51 }
 0x749   : > { %2426 = vrot.lane.b32.xlu1 %v2421_v21, %s3379_s19 }
 0x74a   : > { %v2595_v37 = vpop.permute.xlu0 %2594 }
 0x74b   : > { %v2598_v6 = vsel %vm210_vm6, %v2595_v37, %v5483_v5 }
 0x74c   : > { %v2612_v8 = vadd.f32 %v2607_v10, %v2598_v6 }
 0x74e   : > { %v2755_v43 = vpop.permute.xlu0 %2754 }
 0x74f   : > { %v2597_v38 = vpop.permute.xlu1 %2596  ;;  %v2758_v14 = vsel %vm210_vm6, %v2755_v43, %v5507_v41 }
 0x750   : > { %v2599_v0 = vsel %vm210_vm6, %v2597_v38, %v5505_v54  ;;  %v2772_v55 = vadd.f32 %v2767_v16, %v2758_v14 }
 0x751   : > { %v2613_v51 = vadd.f32 %v2609_v15, %v2599_v0 }
 0x752   : > { %v2677_v17 = vpop.permute.xlu0 %2676 }
 0x753   : > { %v2757_v47 = vpop.permute.xlu1 %2756  ;;  %v2680_v5 = vsel %vm210_vm6, %v2677_v17, %v5535_v1 }
 0x754   : > { %v2759_v4 = vsel %vm210_vm6, %v2757_v47, %v5533_v40  ;;  %v2694_v37 = vadd.f32 %v2689_v9, %v2680_v5 }
 0x755   : > { %v2773_v21 = vadd.f32 %v2769_v7, %v2759_v4 }
 0x757   : > { %v2679_v19 = vpop.permute.xlu1 %2678 }
 0x758   : > { %v2681_v41 = vsel %vm210_vm6, %v2679_v19, %v5561_v52 }
 0x759   : > { %v2695_v43 = vadd.f32 %v2691_v11, %v2681_v41 }
 0x761   : > { %v2639_v3 = vpop.permute.xlu0 %2638 }
 0x762   : > { %v2644_v62 = vadd.f32 %v2639_v3, %v2612_v8 }
 0x764   : > { %2648 = vrot.lane.b32.xlu0 %v2644_v62, %s3378_s18 }
 0x765   : > { %v2641_v10 = vpop.permute.xlu1 %2640  ;;  %v2799_v20 = vpop.permute.xlu0 %2798 }
 0x766   : > { %v2645_v2 = vadd.f32 %v2641_v10, %v2613_v51  ;;  %v2804_v54 = vadd.f32 %v2799_v20, %v2772_v55 }
 0x768   : > { %2650 = vrot.lane.b32.xlu1 %v2645_v2, %s3378_s18  ;;  %2808 = vrot.lane.b32.xlu0 %v2804_v54, %s3378_s18 }
 0x769   : > { %v2801_v15 = vpop.permute.xlu1 %2800  ;;  %v2721_v16 = vpop.permute.xlu0 %2720 }
 0x76a   : > { %v2805_v38 = vadd.f32 %v2801_v15, %v2773_v21  ;;  %v2726_v40 = vadd.f32 %v2721_v16, %v2694_v37 }
 0x76c   : > { %2810 = vrot.lane.b32.xlu1 %v2805_v38, %s3378_s18  ;;  %2730 = vrot.lane.b32.xlu0 %v2726_v40, %s3378_s18 }
 0x76d   : > { %v2723_v1 = vpop.permute.xlu1 %2722  ;;  %v2441_v47 = vpop.permute.xlu0 %2440 }
 0x76e   : > { %v2727_v7 = vadd.f32 %v2723_v1, %v2695_v43  ;;  %v2444_v9 = vsel %vm210_vm6, %v2441_v47, %v5481_v48 }
 0x770   : > { %2732 = vrot.lane.b32.xlu1 %v2727_v7, %s3378_s18  ;;  %2448 = vrot.lane.b32.xlu0 %v2444_v9, %s3374_s12 }
 0x771   : > { %v2443_v52 = vpop.permute.xlu1 %2442  ;;  %v2171_v6 = vpop.permute.xlu0 %2170 }
 0x772   : > { %v2445_v17 = vsel %vm210_vm6, %v2443_v52, %v5499_v45  ;;  %v2172_v11 = vsel %vm210_vm6, %v2171_v6, %v5760_v49 }
 0x774   : > { %2450 = vrot.lane.b32.xlu1 %v2445_v17, %s3374_s12  ;;  %2176 = vrot.lane.b32.xlu0 %v2172_v11, %s3372_s0 }
 0x775   : > { %v2174_v8 = vpop.permute.xlu1 %2173  ;;  %v2191_v0 = vpop.permute.xlu0 %2190 }
 0x776   : > { %v2175_v48 = vsel %vm210_vm6, %v2174_v8, %v5769_v46  ;;  %v2194_v14 = vsel %vm210_vm6, %v2191_v0, %v5618_v13 }
 0x778   : > { %2178 = vrot.lane.b32.xlu1 %v2175_v48, %s3372_s0  ;;  %2198 = vrot.lane.b32.xlu0 %v2194_v14, %s3378_s18 }
 0x779   : > { %v2193_v45 = vpop.permute.xlu1 %2192  ;;  %v2215_v19 = vpop.permute.xlu0 %2214 }
 0x77a   : > { %v2195_v3 = vsel %vm210_vm6, %v2193_v45, %v5633_v34  ;;  %v2218_v62 = vsel %vm210_vm6, %v2215_v19, %v5648_v23 }
 0x77c   : > { %2200 = vrot.lane.b32.xlu1 %v2195_v3, %s3378_s18  ;;  %2222 = vrot.lane.b32.xlu0 %v2218_v62, %s3380_s20 }
 0x77d   : > { %v2217_v51 = vpop.permute.xlu1 %2216  ;;  %v2261_v55 = vpop.permute.xlu0 %2260 }
 0x77e   : > { %v2219_v13 = vsel %vm210_vm6, %v2217_v51, %v5659_v35  ;;  %v2264_v4 = vsel %vm210_vm6, %v2261_v55, %v5663_v39  ;;  %v2820_v55 = vstv %s5985_s4 }
 0x780   : > { %2224 = vrot.lane.b32.xlu1 %v2219_v13, %s3380_s20 }
 0x781   : > { %v2263_v5 = vpop.permute.xlu1 %2262  ;;  %v2271_v10 = vpop.permute.xlu0 %2270 }
 0x782   : > { %v2276_v20 = vadd.f32 %v2271_v10, %v2264_v4  ;;  %v2265_v23 = vsel %vm210_vm6, %v2263_v5, %v5673_v18 }
 0x784   : > { %2280 = vrot.lane.b32.xlu0 %v2276_v20, %s3378_s18 }
 0x785   : > { %v2273_v34 = vpop.permute.xlu1 %2272  ;;  %v2347_v2 = vpop.permute.xlu0 %2346 }
 0x786   : > { %v2277_v54 = vadd.f32 %v2273_v34, %v2265_v23  ;;  %v2350_v39 = vsel %vm210_vm6, %v2347_v2, %v5690_v22 }
 0x788   : > { %2282 = vrot.lane.b32.xlu1 %v2277_v54, %s3378_s18  ;;  %2310 = vrot.lane.b32.xlu0 %v5569_v63, %s3375_s13 }
 0x789   : > { %v2349_v35 = vpop.permute.xlu1 %2348  ;;  %v2403_v21 = vpop.permute.xlu0 %2402 }
 0x78a   : > { %v2351_v18 = vsel %vm210_vm6, %v2349_v35, %v5697_v30  ;;  %v2406_v30 = vsel %vm210_vm6, %v2403_v21, %v5701_v32 }
 0x78c   : > { %2312 = vrot.lane.b32.xlu1 %v5573_v56, %s3375_s13 }
 0x78d   : > { %v2405_v37 = vpop.permute.xlu1 %2404  ;;  %v2357_v41 = vpop.permute.xlu0 %2356 }
 0x78e   : > { %v2362_v15 = vadd.f32 %v2357_v41, %v2350_v39  ;;  %v2407_v51 = vsel %vm210_vm6, %v2405_v37, %v5709_v12 }
 0x790   : > { %2366 = vrot.lane.b32.xlu0 %v2362_v15, %s3380_s20 }
 0x791   : > { %v2359_v16 = vpop.permute.xlu1 %2358 }
 0x792   : > { %v2363_v38 = vadd.f32 %v2359_v16, %v2351_v18 }
 0x794   : > { %2368 = vrot.lane.b32.xlu1 %v2363_v38, %s3380_s20 }
 0x7b6   : > { %v2425_v40 = vpop.permute.xlu0 %2424 }
 0x7b7   : > { %v2430_v8 = vadd.f32 %v2425_v40, %v2406_v30 }
 0x7bb   : > { %v2427_v63 = vpop.permute.xlu1 %2426 }
 0x7bc   : > { %v2431_v32 = vadd.f32 %v2427_v63, %v2407_v51 }
 0x7d6   : > { %v2649_v43 = vpop.permute.xlu0 %2648 }
 0x7d7   : > { %v2654_v7 = vrot.slane %v2649_v43, 1 }
 0x7da   : > { %v2651_v1 = vpop.permute.xlu1 %2650  ;;  %v2809_v47 = vpop.permute.xlu0 %2808 }
 0x7db   : > { %v2655_v56 = vrot.slane %v2651_v1, 1  ;;  %v2814_v6 = vrot.slane %v2809_v47, 7 }
 0x7dd   : > { %v2656_v22 = vsel %vm253_vm11, %v2654_v7, %v2655_v56  ;;  %v2657_v14 = vsel %vm253_vm11, %v2655_v56, %v2654_v7 }
 0x7de   : > { %v2811_v9 = vpop.permute.xlu1 %2810  ;;  %v2731_v52 = vpop.permute.xlu0 %2730 }
 0x7df   : > { %v2815_v17 = vrot.slane %v2811_v9, 7  ;;  %v2736_v11 = vadd.f32 %v2731_v52, %v2656_v22 }
 0x7e1   : > { %v2817_v0 = vsel %vm205_vm0, %v2815_v17, %v2814_v6  ;;  %v2816_v13 = vsel %vm205_vm0, %v2814_v6, %v2815_v17 }
 0x7e2   : > { %v2733_v48 = vpop.permute.xlu1 %2732  ;;  %v2449_v45 = vpop.permute.xlu0 %2448  ;;  %v2818_v19 = vadd.f32 %v2817_v0, %v2736_v11 }
 0x7e3   : > { %v2737_v3 = vadd.f32 %v2733_v48, %v2657_v14  ;;  %v2454_v62 = vadd.f32 %v2449_v45, %v2430_v8  ;;  %v6312_v48 = vld [vmem:[#allocation71_spill] sm:$0xff] }
 0x7e4   : > { %v2821_v5 = vmul.f32 %v2820_v55, %v2818_v19  ;;  %v6313_v19 = vld [vmem:[#allocation70_spill] sm:$0xff] }
 0x7e5   : > { %2458 = vrot.lane.b32.xlu0 %v2454_v62, %s3381_s23  ;;  %v2819_v10 = vadd.f32 %v2816_v13, %v2737_v3 }
 0x7e6   : > { %v2451_v4 = vpop.permute.xlu1 %2450  ;;  %v2177_v12 = vpop.permute.xlu0 %2176 }
 0x7e7   : > { %v2455_v20 = vadd.f32 %v2451_v4, %v2431_v32  ;;  %v2822_v23 = vmul.f32 %v2820_v55, %v2819_v10  ;;  %v2180_v41 = vsel %vm210_vm6, %v2177_v12, %v5760_v49 }
 0x7e9   : > { %2460 = vrot.lane.b32.xlu1 %v2455_v20, %s3381_s23  ;;  %2825 = vrot.lane.b32.xlu0 %v2821_v5, %s3375_s13 }
 0x7ea   : > { %v2179_v34 = vpop.permute.xlu1 %2178  ;;  %v2199_v2 = vpop.permute.xlu0 %2198 }
 0x7eb   : > { %v2204_v18 = vadd.f32 %v2199_v2, %v2180_v41  ;;  %v2181_v38 = vsel %vm210_vm6, %v2179_v34, %v5769_v46 }
 0x7ed   : > { %2827 = vrot.lane.b32.xlu1 %v2822_v23, %s3375_s13 }
 0x7ee   : > { %v2201_v54 = vpop.permute.xlu1 %2200  ;;  %v2223_v35 = vpop.permute.xlu0 %2222 }
 0x7ef   : > { %v2228_v16 = vadd.f32 %v2223_v35, %v2204_v18  ;;  %v2205_v43 = vadd.f32 %v2201_v54, %v2181_v38 }
 0x7f2   : > { %v2225_v21 = vpop.permute.xlu1 %2224 }
 0x7f3   : > { %v2229_v47 = vadd.f32 %v2225_v21, %v2205_v43  ;;  %v6319_v43 = vld [vmem:[#allocation72_spill] sm:$0xff] }
 0x7f6   : > { %v2281_v39 = vpop.permute.xlu0 %2280 }
 0x7f7   : > { %v2286_v1 = vadd.f32 %v2281_v39, %v2228_v16  ;;  %v6316_v16 = vld [vmem:[#allocation74_spill] sm:$0xff] }
 0x7fa   : > { %v2283_v37 = vpop.permute.xlu1 %2282  ;;  %v2311_v15 = vpop.permute.xlu0 %2310 }
 0x7fb   : > { %v2316_v7 = vadd.f32 %v2311_v15, %v2286_v1  ;;  %v2287_v9 = vadd.f32 %v2283_v37, %v2229_v47  ;;  %v6314_v15 = vld [vmem:[#allocation75_spill] sm:$0xff] }
 0x7fe   : > { %v2313_v40 = vpop.permute.xlu1 %2312 }
 0x7ff   : > { %v2317_v6 = vadd.f32 %v2313_v40, %v2287_v9  ;;  %v6318_v40 = vld [vmem:[#allocation73_spill] sm:$0xff] }
 0x802   : > { %v2367_v63 = vpop.permute.xlu0 %2366 }
 0x803   : > { %v2372_v52 = vadd.f32 %v2367_v63, %v2316_v7 }
 0x806   : > { %v2369_v56 = vpop.permute.xlu1 %2368 }
 0x807   : > { %v2373_v30 = vadd.f32 %v2369_v56, %v2317_v6 }
 0x857   : > { %v2459_v22 = vpop.permute.xlu0 %2458 }
 0x858   : > { %v2464_v17 = vadd.f32 %v2459_v22, %v2372_v52 }
 0x85b   : > { %v2461_v11 = vpop.permute.xlu1 %2460  ;;  %v2826_v49 = vpop.permute.xlu0 %2825 }
 0x85c   : > { %v2831_v8 = vadd.f32 %v2826_v49, %v2464_v17  ;;  %v2465_v0 = vadd.f32 %v2461_v11, %v2373_v30 }
 0x85e   : > { %v2833_v14 = vmul.f32 %v6312_v48, %v2831_v8 }
 0x85f   : > { %v2828_v46 = vpop.permute.xlu1 %2827 }
 0x860   : > { %v2832_v45 = vadd.f32 %v2828_v46, %v2465_v0  ;;  %2837 = vrot.lane.b32.xlu0 %v2833_v14, %s3371_s10 }
 0x862   : > { %v2834_v3 = vmul.f32 %v6313_v19, %v2832_v45 }
 0x864   : > { %2839 = vrot.lane.b32.xlu1 %v2834_v3, %s3371_s10 }
 0x8d2   : > { %v2838_v62 = vpop.permute.xlu0 %2837 }
 0x8d3   : > { %v2843_v55 = vsel %vm1807_vm10, %v2838_v62, 0.0 }
 0x8d6   : > { %v2840_v51 = vpop.permute.xlu1 %2839 }
 0x8d7   : > { %v2844_v32 = vsel %vm1807_vm10, %v2840_v51, 0.0  ;;  %v2921_v51 = vstv %s2920_s29 }
 0x8d8   : > { %v2845_v13 = vadd.f32 %v2844_v32, %v2843_v55  ;;  %vm2922_vm15 = vcmp.eq.s32.totalorder %v2921_v51, 1 }
 0x8da   : > { %2846 = vadd.xlane.f32.xlu0 %v2845_v13 }
 0x967   : > { %v2847_v4 = vpop.xlane.xlu0 %2846 }
 0x968   : > { %v2848_v5 = vrot.slane %v2847_v4, 4 }
 0x96a   : > { %v2849_v10 = vadd.f32 %v2848_v5, %v2847_v4 }
 0x96c   : > { %v2850_v20 = vrot.slane %v2849_v10, 2 }
 0x96e   : > { %v2851_v23 = vadd.f32 %v2850_v20, %v2849_v10 }
 0x970   : > { %v2852_v12 = vrot.slane %v2851_v23, 1 }
 0x972   : > { %v2853_v34 = vadd.f32 %v2852_v12, %v2851_v23 }
 0x974   : > { %3100 = vpush %v2853_v34 }
 0x9a5   : > { %s5900_s24 = spop %3100 }
 0x9a6   : > { %p2855_p11 = scmp.gt.f32.partialorder %s5900_s24, 1e-30 }
 0x9a8   : > { %s2856_s25 = scalar_select %p2855_p11, %s5900_s24, 1.0 }
 0x9aa   : > { %v2857_v2 = vstv %s2856_s25 }
 0x9ab   : > { %3223 = vrcp.f32 %v2857_v2 }
 0x9b5   : > { %v3224_v54 = vpop.eup %3223 }
 0x9b6   : > { %3102 = vpush %v3224_v54 }
 0x9e7   : > { %s3103_s26 = spop %3102 }
 0x9e8   : > { %s2860_s2 = smul.f32 %s3321_s8, %s3103_s26  ;;  %s6328_s8 = smov (!%p2894_p12, %s3321_s8), 1.0 }
 0x9e9   : > { %v2896_v6 = vstv %s6328_s8 }
 0x9ea   : > { %s6326_s2 = smov (!%p2855_p11, %s2860_s2), 0.0  ;;  %3225 = vrcp.f32 %v2896_v6 }
 0x9eb   : > { %v2862_v35 = vstv %s6326_s2 }
 0x9ec   : > { %v2863_v21 = vmul.f32 %v6312_v48, %v2862_v35  ;;  %v2864_v39 = vmul.f32 %v6313_v19, %v2862_v35  ;;  %v2867_v37 = vmul.f32 %v2862_v35, %v2831_v8  ;;  %v2868_v41 = vmul.f32 %v2862_v35, %v2832_v45 }
 0x9ee   : > { %v5912_v63 = vadd.f32 %v6314_v15, %v2863_v21   ;;  %v5915_v45 = vadd.f32 %v6316_v16, %v2864_v39   ;;  %v2869_v52 = vsub.f32 %v6318_v40, %v2867_v37   ;;  %v2870_v5 = vsub.f32 %v6319_v43, %v2868_v41  }
 0x9f0   : > { %v6315_v18 = vmov %v5912_v63  ;;  %v6317_v38 = vmov %v5915_v45  ;;  %v2871_v1 = vmul.f32 %v2869_v52, %v2869_v52  ;;  %v2872_v47 = vmul.f32 %v2870_v5, %v2870_v5 }
 0x9f2   : > { %2875 = vrot.lane.b32.xlu1 %v2871_v1, %s3371_s10 }
 0x9f4   : > { %v3226_v14 = vpop.eup %3225 }
 0x9f6   : > { %2877 = vrot.lane.b32.xlu1 %v2872_v47, %s3371_s10 }
 0xa64   : > { %v2876_v7 = vpop.permute.xlu1 %2875 }
 0xa65   : > { %v2881_v22 = vsel %vm1807_vm10, %v2876_v7, 0.0 }
 0xa68   : > { %v2878_v56 = vpop.permute.xlu1 %2877 }
 0xa69   : > { %v2882_v63 = vsel %vm1807_vm10, %v2878_v56, 0.0 }
 0xa6a   : > { %v2883_v9 = vadd.f32 %v2882_v63, %v2881_v22  ;;  %v6322_v63 = vmov %v6315_v18 }
 0xa6c   : > { %2884 = vadd.xlane.f32.xlu1 %v2883_v9 }
 0xaf9   : > { %v2885_v17 = vpop.xlane.xlu1 %2884 }
 0xafa   : > { %v2886_v11 = vrot.slane %v2885_v17, 4 }
 0xafc   : > { %v2887_v49 = vadd.f32 %v2886_v11, %v2885_v17 }
 0xafe   : > { %v2888_v30 = vrot.slane %v2887_v49, 2 }
 0xb00   : > { %v2889_v8 = vadd.f32 %v2888_v30, %v2887_v49 }
 0xb02   : > { %v2890_v0 = vrot.slane %v2889_v8, 1 }
 0xb04   : > { %v2891_v46 = vadd.f32 %v2890_v0, %v2889_v8 }
 0xb06   : > { %3104 = vpush %v2891_v46 }
 0xb07   : > { %3106 = vpush %v3226_v14 }
 0xb37   : > { %s3105_s30 = spop %3104 }
 0xb38   : > { %s6334_s30 = smov (!%p2855_p11, %s3105_s30), 0.0  ;;  %s3107_s8 = spop %3106 }
 0xb39   : > { %s2899_s10 = smul.f32 %s3107_s8, %s6334_s30  ;;  %p1831_p3 = scmp.gt.f32.partialorder %s6334_s30, %s1820_s7 }
 0xb3a   : > { %s6320_s8 = smov %s6334_s30 }
 0xb3b   : > { %v2915_v45 = vstv %s2899_s10  ;;  %p1832_p4 = pnand %p1831_p3, %p1830_p2 }
 0xb3c   : > { %v2916_v3 = vmul.f32 %v6312_v48, %v2915_v45  ;;  %v2917_v62 = vmul.f32 %v6313_v19, %v2915_v45  ;;  %v6321_v45 = vmov %v6317_v38  ;;  %v6323_v53 = vmov (%p1832_p4), %v6317_v38 }
 0xb3d   :  { %1835 = sbr.rel (!%p1832_p4) target bundleno = 940 (0x3ac), region = 55  ;;  %v6324_v0 = vmov (%p1832_p4), %v6315_v18 }
 0xb3e   : > { %v2918_v55 = vadd.f32 %v2916_v3, %v2869_v52  ;;  %v2919_v32 = vadd.f32 %v2917_v62, %v2870_v5 }
 0xb40   : > { %v2923_v21 = vsel %vm2922_vm15, %v2869_v52, %v2918_v55   ;;  %v2924_v17 = vsel %vm2922_vm15, %v2870_v5, %v2919_v32  }
 0xb44 PF:  { %2927 = vrot.lane.b32.xlu0 %v3357_v0, %s3370_s15  ;;  %s3382_s0 = smov [#allocation8]   ;;  %v3357_v0 = vphi %v5016_v0, %v6324_v0   ;;  %v3353_v53 = vphi %v5014_v53, %v6323_v53  }
 0xb45   :  { %s2940_s9 = sshll.u32 %s3382_s0, 4  ;;  %s2941_s9 = int_to_ptr.vmem [resolvable:$true] %s2940_s9 }
 0xb46   :  { %s3251_s4 = scalar_lea.vmem %s2941_s9, 256  ;;  %p3256_p6 = scmp.lt.s32.totalorder %s2941_s9, %s2941_s9 }
 0xb47   :  { %p3252_p5 = scmp.ne.s32.totalorder %s2941_s9, %s3251_s4  ;;  %p3257_p7 = scmp.lt.s32.totalorder %s3251_s4, %s3251_s4 }
 0xb48   :  { %2929 = vrot.lane.b32.xlu0 %v3353_v53, %s3370_s15 }
 0xb49   :  { %p3258_p8 = por %p3257_p7, %p3256_p6 }
 0xb4b   :  { %p3259_p9 = pnand %p3258_p8, %p3252_p5 }
 0xbb6   :  { %v2928_v48 = vpop.permute.xlu0 %2927 }
 0xbb7   :  { %2933 = vst.msk [vmem:[#allocation8] sm:$0xff] %vm1807_vm10, %v2928_v48 }
 0xbba   :  { %v2930_v25 = vpop.permute.xlu0 %2929 }
 0xbbb   :  { %2934 = vst.msk [vmem:[#allocation8 + $0x8] sm:$0xff] %vm1807_vm10, %v2930_v25 }
 0xbbc   :  { %3262 = shalt.err (!%p3259_p9)
}
 0xbbd   :  { %s3263_s15 = scalar_lea.hbm %s5986_s5, 256 }
 0xbbe   :  { %p3264_p10 = scmp.ne.s32.totalorder %s5986_s5, %s3263_s15  ;;  %p3267_p11 = scmp.lt.u32.totalorder %s3263_s15, %s5986_s5 }
 0xbc0   :  { %p3269_p12 = pnand %p3267_p11, %p3264_p10 }
 0xbc2   :  { %3272 = shalt.err (!%p3269_p12)
}
 0xbc3   :  { %s3383_s17 = smov 128   ;;  %s3384_s18 = smov 8  }
 0xbc4   :  { %2946 = dma.vmem_to_hbm [thread:$0]  %s2941_s9, 256, %s5986_s5, [#allocation4], %s3383_s17, %s3383_s17, %s3384_s18  }
 0xbc5   :  { %3317 = dma.done.wait [#allocation4], 256  }
 0xbc6   :  { %3318 = vsyncadd [#allocation4], 4294967040 }
 0xbc7   :  { %2950 = vsyncpa [#allocation4], 1 }
 0xbc8   :  { %2951 = vsyncpa [#allocation5], 1 }
 0xbc9   :  { %2952 = vsyncpa [#allocation7], 1 }

</bundles_post_ra>
